<compile_context>
chip_gen: v7x
topology: tpu7x:2x2x1
jax: 0.10.0
libtpu: 0.0.40
codegen_flags: <defaults>
</compile_context>

<pallas_src>
import functools
from typing import List, Tuple

import jax
import jax.numpy as jnp
from jax import lax
from jax.experimental import pallas as pl
from jax.experimental.pallas import tpu as pltpu


def _round_up(x: int, m: int) -> int:
    return ((x + m - 1) // m) * m


# ----------------------------------------------------------------------------
# Pallas kernel: on-chip gather of sampled rows -> 2-layer MLP -> L2 normalize
# ----------------------------------------------------------------------------
def _gather_mlp_norm_kernel(
    pid_ref,    # SMEM int32 [P_pad]           (scalar prefetch: patch ids)
    feat_ref,   # VMEM f32  [1, S_TILE, C]     (auto-DMA'd feature slab / s-tile)
    w1_ref,     # VMEM bf16 [C, Dp]
    b1_ref,     # VMEM f32  [1, Dp]
    w2_ref,     # VMEM bf16 [Dp, D]
    b2_ref,     # VMEM f32  [1, D]
    out_ref,    # VMEM f32  [1, TP, D]
    x_vmem,     # scratch VMEM f32 [TP, C]     (gathered rows, persists over s)
    *, D: int, TP: int, S_TILE: int, NUM_S: int,
):
    base = pl.program_id(1) * TP

    # ---- On-chip gather: copy sampled rows out of the resident slab --------
    if NUM_S == 1:
        # Whole feature slab is VMEM-resident: direct dynamic-slice copies.
        for j in range(TP):                       # static unroll
            idx = pid_ref[base + j]
            x_vmem[j:j + 1, :] = feat_ref[0, pl.ds(idx, 1), :]
    else:
        # Streaming S tiles: copy only the rows that live in this tile.
        s_start = pl.program_id(2) * S_TILE
        for j in range(TP):                       # static unroll
            local = pid_ref[base + j] - s_start

            def _copy(j=j, local=local):
                x_vmem[j:j + 1, :] = feat_ref[0, pl.ds(local, 1), :]

            pl.when(jnp.logical_and(local >= 0, local < S_TILE))(_copy)

    # ---- MLP + L2 normalize, once all rows have been gathered --------------
    def _mlp():
        x = x_vmem[...]                                          # (TP, C) f32
        h = jnp.dot(x.astype(jnp.bfloat16), w1_ref[...],
                    preferred_element_type=jnp.float32) + b1_ref[...]
        h = jnp.maximum(h, 0.0)                                  # (TP, Dp)
        y = jnp.dot(h.astype(jnp.bfloat16), w2_ref[...],
                    preferred_element_type=jnp.float32) + b2_ref[...]   # (TP, D)
        ssq = jnp.sum(y * y, axis=-1, keepdims=True)
        out_ref[...] = (y * lax.rsqrt(ssq + 1e-12)).reshape(1, TP, D)

    if NUM_S == 1:
        _mlp()
    else:
        pl.when(pl.program_id(2) == NUM_S - 1)(_mlp)


# ----------------------------------------------------------------------------
# Wrapper: one fused pallas_call per feature level
# ----------------------------------------------------------------------------
def gathered_mlp_l2norm(feat_bsc, patch_id, w1, b1, w2, b2, *,
                        tile_patches=256, max_slab_bytes=None):
    """feat_bsc: [B, S, C] f32 (NHWC-flattened feature map).
    patch_id: [P] int spatial indices.  Returns [B*P, D] f32 (L2-normalized)."""
    B, S, C = feat_bsc.shape
    D = int(w1.shape[1])
    P = int(patch_id.shape[0])
    Dp = _round_up(D, 128)                        # lane-dense hidden width

    # --- patch tiling: guarantee >= 2 parallel grid steps when possible -----
    min_tiles = 1 if B >= 2 else min(2, max(1, P // 8))
    TP = min(int(tile_patches), P)
    TP = min(TP, -(-P // min_tiles))
    TP = max(8, _round_up(TP, 8))
    num_tiles = -(-P // TP)
    P_pad = num_tiles * TP

    # --- S tiling: VMEM-budget aware (v7x 64 MiB vs v5e/v6e 128 MiB) --------
    try:
        vmem_cap = int(pltpu.get_tpu_info().vmem_capacity_bytes)
    except Exception:                             # conservative default (v7x)
        vmem_cap = 64 * 1024 * 1024
    slab_budget = (int(max_slab_bytes) if max_slab_bytes is not None
                   else min(16 << 20, vmem_cap // 4))
    row_bytes = _round_up(C, 128) * 4             # lane-padded VMEM row
    if _round_up(S, 8) * row_bytes <= slab_budget:
        S_TILE, NUM_S = S, 1                      # whole per-batch slab resident
    else:
        S_TILE = max(8, min(S, (slab_budget // (2 * row_bytes)) // 8 * 8))
        NUM_S = -(-S // S_TILE)

    # --- zero-pad the HIDDEN dim only (zeros are transparent to the L2 norm);
    #     the output stays at true width D (no padded writeback). ------------
    w1p = jnp.zeros((C, Dp), jnp.bfloat16).at[:, :D].set(w1.astype(jnp.bfloat16))
    b1p = jnp.zeros((1, Dp), jnp.float32).at[:, :D].set(
        b1.reshape(1, D).astype(jnp.float32))
    w2p = jnp.zeros((Dp, D), jnp.bfloat16).at[:D, :].set(w2.astype(jnp.bfloat16))
    b2p = b2.reshape(1, D).astype(jnp.float32)

    pid = patch_id.astype(jnp.int32)
    if P_pad > P:
        pid = jnp.pad(pid, (0, P_pad - P))        # pad with valid index 0

    kernel = functools.partial(_gather_mlp_norm_kernel,
                               D=D, TP=TP, S_TILE=S_TILE, NUM_S=NUM_S)

    grid_spec = pltpu.PrefetchScalarGridSpec(
        num_scalar_prefetch=1,
        grid=(B, num_tiles, NUM_S),               # batch outermost: slab fetched
        in_specs=[                                # once per batch when NUM_S == 1
            pl.BlockSpec((1, S_TILE, C), lambda b, i, s, _p: (b, s, 0)),
            # constant index maps -> weights DMA'd once, stay VMEM-resident
            pl.BlockSpec((C, Dp), lambda b, i, s, _p: (0, 0)),
            pl.BlockSpec((1, Dp), lambda b, i, s, _p: (0, 0)),
            pl.BlockSpec((Dp, D), lambda b, i, s, _p: (0, 0)),
            pl.BlockSpec((1, D), lambda b, i, s, _p: (0, 0)),
        ],
        out_specs=pl.BlockSpec((1, TP, D), lambda b, i, s, _p: (b, i, 0)),
        scratch_shapes=[pltpu.VMEM((TP, C), jnp.float32)],
    )

    est = (2 * _round_up(S_TILE, 8) * row_bytes           # feat double buffer
           + 2 * TP * _round_up(D, 128) * 4               # out double buffer
           + 2 * (_round_up(C, 16) * Dp * 2 + 8 * Dp * 4
                  + Dp * _round_up(D, 128) * 2 + 8 * _round_up(D, 128) * 4)
           + TP * _round_up(C, 128) * 4)                  # gather scratch
    vmem_limit = int(min(int(0.85 * vmem_cap),
                         max(4 * est + (16 << 20), 32 << 20)))

    out = pl.pallas_call(
        kernel,
        out_shape=jax.ShapeDtypeStruct((B, P_pad, D), jnp.float32),
        grid_spec=grid_spec,
        compiler_params=pltpu.CompilerParams(
            dimension_semantics=("parallel", "parallel", "arbitrary"),
            vmem_limit_bytes=vmem_limit),
    )(pid, feat_bsc, w1p, b1p, w2p, b2p)

    return out[:, :P, :].reshape(B * P, D)


# ----------------------------------------------------------------------------
# PatchSample forward
# ----------------------------------------------------------------------------
def patch_sample_forward(
    feats: List[jnp.ndarray],
    mlp_params: List[Tuple[jnp.ndarray, jnp.ndarray, jnp.ndarray, jnp.ndarray]],
    num_patches: int = 64,
    patch_ids=None,
    key=None,
    tile_patches: int = 256,
):
    return_ids = []
    return_feats = []
    for feat_id, feat in enumerate(feats):
        B, C, H, Wd = feat.shape
        # NCHW -> NHWC -> [B, H*W, C]  (layout only; gather+MLP fused in kernel)
        feat_reshape = jnp.transpose(feat, (0, 2, 3, 1)).reshape(B, H * Wd, C)
        if num_patches > 0:
            if patch_ids is not None:
                patch_id = patch_ids[feat_id]
            else:
                subkey = jax.random.fold_in(key, feat_id)
                patch_id = jax.random.permutation(subkey, H * Wd)
                patch_id = patch_id[: int(min(num_patches, H * Wd))]
            w1, b1, w2, b2 = mlp_params[feat_id]
            x_sample = gathered_mlp_l2norm(feat_reshape, patch_id, w1, b1, w2, b2,
                                           tile_patches=tile_patches)
        else:
            # TODO(synk): num_patches == 0 path (full-map MLP + spatial Normalize
            # + reshape back to NCHW) is not lowered to the Pallas kernel.
            raise NotImplementedError("num_patches == 0 path not implemented")
        return_ids.append(patch_id)
        return_feats.append(x_sample)
    return return_feats, return_ids


# ----------------------------------------------------------------------------
# Deterministic per-level MLP parameters (Linear(C,D) -> ReLU -> Linear(D,D))
# ----------------------------------------------------------------------------
def make_mlp_params(key, in_dims, hidden_dim):
    params = []
    for i, c in enumerate(in_dims):
        k = jax.random.fold_in(key, i)
        k1, k2, k3, k4 = jax.random.split(k, 4)
        w1 = jax.random.normal(k1, (c, hidden_dim), jnp.float32) * 0.1
        b1 = jax.random.normal(k2, (1, hidden_dim), jnp.float32) * 0.01
        w2 = jax.random.normal(k3, (hidden_dim, hidden_dim), jnp.float32) * 0.1
        b2 = jax.random.normal(k4, (1, hidden_dim), jnp.float32) * 0.01
        params.append((w1, b1, w2, b2))
    return params


# ----------------------------------------------------------------------------
# Pure-JAX reference (mirrors the kernel's bf16 casts / f32 accumulation)
# ----------------------------------------------------------------------------
def _ref_gathered_mlp_l2norm(feat_bsc, patch_id, w1, b1, w2, b2):
    B, S, C = feat_bsc.shape
    D = w1.shape[1]
    x = jnp.take(feat_bsc, patch_id, axis=1).reshape(-1, C)       # [B*P, C] f32
    h = jnp.dot(x.astype(jnp.bfloat16), w1.astype(jnp.bfloat16),
                preferred_element_type=jnp.float32) + b1.reshape(1, D)
    h = jnp.maximum(h, 0.0)
    y = jnp.dot(h.astype(jnp.bfloat16), w2.astype(jnp.bfloat16),
                preferred_element_type=jnp.float32) + b2.reshape(1, D)
    return y * lax.rsqrt(jnp.sum(y * y, axis=-1, keepdims=True) + 1e-12)


if __name__ == "__main__":
    key = jax.random.PRNGKey(0)
    k_feat0, k_feat1, k_params, k_perm = jax.random.split(key, 4)

    # Two feature maps (NCHW), small shapes.
    feats = [
        jax.random.normal(k_feat0, (2, 4, 16, 16), jnp.float32),
        jax.random.normal(k_feat1, (2, 8, 8, 8), jnp.float32),
    ]
    hidden_dim = 32
    num_patches = 64
    mlp_params = make_mlp_params(k_params, [f.shape[1] for f in feats], hidden_dim)

    # One jit over all levels (VMEM-resident-slab path).
    fwd = jax.jit(lambda fs, ps, k: patch_sample_forward(
        fs, ps, num_patches=num_patches, patch_ids=None, key=k))
    out_feats, out_ids = fwd(feats, mlp_params, k_perm)
    out_feats = [jax.block_until_ready(o) for o in out_feats]

    ok = True
    for feat_id, feat in enumerate(feats):
        B, C, H, Wd = feat.shape
        fr = jnp.transpose(feat, (0, 2, 3, 1)).reshape(B, H * Wd, C)
        pid = out_ids[feat_id]
        ref = _ref_gathered_mlp_l2norm(fr, pid, *mlp_params[feat_id])
        got = out_feats[feat_id]
        if got.shape != (B * int(pid.shape[0]), hidden_dim):
            ok = False
        if not jnp.allclose(got, ref, atol=2e-3, rtol=2e-3):
            ok = False

    # Also exercise the S-tiled streaming path (large-feature-map fallback)
    # by forcing a tiny slab budget, and verify against the same reference.
    f0 = feats[0]
    fr0 = jnp.transpose(f0, (0, 2, 3, 1)).reshape(
        f0.shape[0], f0.shape[2] * f0.shape[3], f0.shape[1])
    pid0 = out_ids[0]
    tiled_fn = jax.jit(functools.partial(gathered_mlp_l2norm,
                                         max_slab_bytes=32 * 1024))
    got_tiled = jax.block_until_ready(tiled_fn(fr0, pid0, *mlp_params[0]))
    ref0 = _ref_gathered_mlp_l2norm(fr0, pid0, *mlp_params[0])
    if got_tiled.shape != ref0.shape:
        ok = False
    if not jnp.allclose(got_tiled, ref0, atol=2e-3, rtol=2e-3):
        ok = False

    assert ok
    print("KERNEL_OK")
</pallas_src>

<mosaic_0001>
module attributes {stable_mosaic.version = 11 : i64} {
  func.func @_gather_mlp_norm_kernel(%arg0: i32, %arg1: i32, %arg2: i32, %arg3: memref<64xi32, #tpu.memory_space<smem>>, %arg4: memref<1x64x8xf32, #tpu.memory_space<vmem>>, %arg5: memref<8x128xbf16, #tpu.memory_space<vmem>>, %arg6: memref<1x128xf32, #tpu.memory_space<vmem>>, %arg7: memref<128x32xbf16, #tpu.memory_space<vmem>>, %arg8: memref<1x32xf32, #tpu.memory_space<vmem>>, %arg9: memref<1x64x32xf32, #tpu.memory_space<vmem>>, %arg10: memref<64x8xf32, #tpu.memory_space<vmem>>) attributes {dimension_semantics = [#tpu.dimension_semantics<parallel>, #tpu.dimension_semantics<parallel>, #tpu.dimension_semantics<arbitrary>], iteration_bounds = array<i64: 2, 1, 1>, scalar_prefetch = 1 : i64, scratch_operands = 1 : i64, tpu.core_type = #tpu.core_type<tc>, window_params = [{transform_indices = @transform_0, window_bounds = array<i64: 1, 64, 8>}, {pipeline_mode = #tpu.pipeline_mode<synchronous>, transform_indices = @transform_1, window_bounds = array<i64: 8, 128>}, {pipeline_mode = #tpu.pipeline_mode<synchronous>, transform_indices = @transform_2, window_bounds = array<i64: 1, 128>}, {pipeline_mode = #tpu.pipeline_mode<synchronous>, transform_indices = @transform_3, window_bounds = array<i64: 128, 32>}, {pipeline_mode = #tpu.pipeline_mode<synchronous>, transform_indices = @transform_4, window_bounds = array<i64: 1, 32>}, {transform_indices = @transform_5, window_bounds = array<i64: 1, 64, 32>}]} {
    %c64_i32 = arith.constant 64 : i32
    %0 = arith.muli %arg1, %c64_i32 : i32
    %c0_i32 = arith.constant 0 : i32
    %1 = arith.addi %0, %c0_i32 : i32
    %2 = arith.index_cast %1 : i32 to index
    %3 = memref.load %arg3[%2] : memref<64xi32, #tpu.memory_space<smem>>
    %c0 = arith.constant 0 : index
    %4 = arith.index_cast %3 : i32 to index
    %c0_0 = arith.constant 0 : index
    %5 = vector.load %arg4[%c0, %4, %c0_0] : memref<1x64x8xf32, #tpu.memory_space<vmem>>, vector<1x1x8xf32>
    %6 = vector.shape_cast %5 : vector<1x1x8xf32> to vector<1x8xf32>
    %c0_1 = arith.constant 0 : index
    %c0_2 = arith.constant 0 : index
    %7 = vector.load %arg10[%c0_1, %c0_2] : memref<64x8xf32, #tpu.memory_space<vmem>>, vector<1x8xf32>
    tpu.vector_store %arg10[%c0_1, %c0_2], %6 {strides = array<i32>} : memref<64x8xf32, #tpu.memory_space<vmem>>, vector<1x8xf32>,
    %c1_i32 = arith.constant 1 : i32
    %8 = arith.addi %0, %c1_i32 : i32
    %9 = arith.index_cast %8 : i32 to index
    %10 = memref.load %arg3[%9] : memref<64xi32, #tpu.memory_space<smem>>
    %c0_3 = arith.constant 0 : index
    %11 = arith.index_cast %10 : i32 to index
    %c0_4 = arith.constant 0 : index
    %12 = vector.load %arg4[%c0_3, %11, %c0_4] : memref<1x64x8xf32, #tpu.memory_space<vmem>>, vector<1x1x8xf32>
    %13 = vector.shape_cast %12 : vector<1x1x8xf32> to vector<1x8xf32>
    %c1 = arith.constant 1 : index
    %c0_5 = arith.constant 0 : index
    %14 = vector.load %arg10[%c1, %c0_5] : memref<64x8xf32, #tpu.memory_space<vmem>>, vector<1x8xf32>
    tpu.vector_store %arg10[%c1, %c0_5], %13 {strides = array<i32>} : memref<64x8xf32, #tpu.memory_space<vmem>>, vector<1x8xf32>,
    %c2_i32 = arith.constant 2 : i32
    %15 = arith.addi %0, %c2_i32 : i32
    %16 = arith.index_cast %15 : i32 to index
    %17 = memref.load %arg3[%16] : memref<64xi32, #tpu.memory_space<smem>>
    %c0_6 = arith.constant 0 : index
    %18 = arith.index_cast %17 : i32 to index
    %c0_7 = arith.constant 0 : index
    %19 = vector.load %arg4[%c0_6, %18, %c0_7] : memref<1x64x8xf32, #tpu.memory_space<vmem>>, vector<1x1x8xf32>
    %20 = vector.shape_cast %19 : vector<1x1x8xf32> to vector<1x8xf32>
    %c2 = arith.constant 2 : index
    %c0_8 = arith.constant 0 : index
    %21 = vector.load %arg10[%c2, %c0_8] : memref<64x8xf32, #tpu.memory_space<vmem>>, vector<1x8xf32>
    tpu.vector_store %arg10[%c2, %c0_8], %20 {strides = array<i32>} : memref<64x8xf32, #tpu.memory_space<vmem>>, vector<1x8xf32>,
    %c3_i32 = arith.constant 3 : i32
    %22 = arith.addi %0, %c3_i32 : i32
    %23 = arith.index_cast %22 : i32 to index
    %24 = memref.load %arg3[%23] : memref<64xi32, #tpu.memory_space<smem>>
    %c0_9 = arith.constant 0 : index
    %25 = arith.index_cast %24 : i32 to index
    %c0_10 = arith.constant 0 : index
    %26 = vector.load %arg4[%c0_9, %25, %c0_10] : memref<1x64x8xf32, #tpu.memory_space<vmem>>, vector<1x1x8xf32>
    %27 = vector.shape_cast %26 : vector<1x1x8xf32> to vector<1x8xf32>
    %c3 = arith.constant 3 : index
    %c0_11 = arith.constant 0 : index
    %28 = vector.load %arg10[%c3, %c0_11] : memref<64x8xf32, #tpu.memory_space<vmem>>, vector<1x8xf32>
    tpu.vector_store %arg10[%c3, %c0_11], %27 {strides = array<i32>} : memref<64x8xf32, #tpu.memory_space<vmem>>, vector<1x8xf32>,
    %c4_i32 = arith.constant 4 : i32
    %29 = arith.addi %0, %c4_i32 : i32
    %30 = arith.index_cast %29 : i32 to index
    %31 = memref.load %arg3[%30] : memref<64xi32, #tpu.memory_space<smem>>
    %c0_12 = arith.constant 0 : index
    %32 = arith.index_cast %31 : i32 to index
    %c0_13 = arith.constant 0 : index
    %33 = vector.load %arg4[%c0_12, %32, %c0_13] : memref<1x64x8xf32, #tpu.memory_space<vmem>>, vector<1x1x8xf32>
    %34 = vector.shape_cast %33 : vector<1x1x8xf32> to vector<1x8xf32>
    %c4 = arith.constant 4 : index
    %c0_14 = arith.constant 0 : index
    %35 = vector.load %arg10[%c4, %c0_14] : memref<64x8xf32, #tpu.memory_space<vmem>>, vector<1x8xf32>
    tpu.vector_store %arg10[%c4, %c0_14], %34 {strides = array<i32>} : memref<64x8xf32, #tpu.memory_space<vmem>>, vector<1x8xf32>,
    %c5_i32 = arith.constant 5 : i32
    %36 = arith.addi %0, %c5_i32 : i32
    %37 = arith.index_cast %36 : i32 to index
    %38 = memref.load %arg3[%37] : memref<64xi32, #tpu.memory_space<smem>>
    %c0_15 = arith.constant 0 : index
    %39 = arith.index_cast %38 : i32 to index
    %c0_16 = arith.constant 0 : index
    %40 = vector.load %arg4[%c0_15, %39, %c0_16] : memref<1x64x8xf32, #tpu.memory_space<vmem>>, vector<1x1x8xf32>
    %41 = vector.shape_cast %40 : vector<1x1x8xf32> to vector<1x8xf32>
    %c5 = arith.constant 5 : index
    %c0_17 = arith.constant 0 : index
    %42 = vector.load %arg10[%c5, %c0_17] : memref<64x8xf32, #tpu.memory_space<vmem>>, vector<1x8xf32>
    tpu.vector_store %arg10[%c5, %c0_17], %41 {strides = array<i32>} : memref<64x8xf32, #tpu.memory_space<vmem>>, vector<1x8xf32>,
    %c6_i32 = arith.constant 6 : i32
    %43 = arith.addi %0, %c6_i32 : i32
    %44 = arith.index_cast %43 : i32 to index
    %45 = memref.load %arg3[%44] : memref<64xi32, #tpu.memory_space<smem>>
    %c0_18 = arith.constant 0 : index
    %46 = arith.index_cast %45 : i32 to index
    %c0_19 = arith.constant 0 : index
    %47 = vector.load %arg4[%c0_18, %46, %c0_19] : memref<1x64x8xf32, #tpu.memory_space<vmem>>, vector<1x1x8xf32>
    %48 = vector.shape_cast %47 : vector<1x1x8xf32> to vector<1x8xf32>
    %c6 = arith.constant 6 : index
    %c0_20 = arith.constant 0 : index
    %49 = vector.load %arg10[%c6, %c0_20] : memref<64x8xf32, #tpu.memory_space<vmem>>, vector<1x8xf32>
    tpu.vector_store %arg10[%c6, %c0_20], %48 {strides = array<i32>} : memref<64x8xf32, #tpu.memory_space<vmem>>, vector<1x8xf32>,
    %c7_i32 = arith.constant 7 : i32
    %50 = arith.addi %0, %c7_i32 : i32
    %51 = arith.index_cast %50 : i32 to index
    %52 = memref.load %arg3[%51] : memref<64xi32, #tpu.memory_space<smem>>
    %c0_21 = arith.constant 0 : index
    %53 = arith.index_cast %52 : i32 to index
    %c0_22 = arith.constant 0 : index
    %54 = vector.load %arg4[%c0_21, %53, %c0_22] : memref<1x64x8xf32, #tpu.memory_space<vmem>>, vector<1x1x8xf32>
    %55 = vector.shape_cast %54 : vector<1x1x8xf32> to vector<1x8xf32>
    %c7 = arith.constant 7 : index
    %c0_23 = arith.constant 0 : index
    %56 = vector.load %arg10[%c7, %c0_23] : memref<64x8xf32, #tpu.memory_space<vmem>>, vector<1x8xf32>
    tpu.vector_store %arg10[%c7, %c0_23], %55 {strides = array<i32>} : memref<64x8xf32, #tpu.memory_space<vmem>>, vector<1x8xf32>,
    %c8_i32 = arith.constant 8 : i32
    %57 = arith.addi %0, %c8_i32 : i32
    %58 = arith.index_cast %57 : i32 to index
    %59 = memref.load %arg3[%58] : memref<64xi32, #tpu.memory_space<smem>>
    %c0_24 = arith.constant 0 : index
    %60 = arith.index_cast %59 : i32 to index
    %c0_25 = arith.constant 0 : index
    %61 = vector.load %arg4[%c0_24, %60, %c0_25] : memref<1x64x8xf32, #tpu.memory_space<vmem>>, vector<1x1x8xf32>
    %62 = vector.shape_cast %61 : vector<1x1x8xf32> to vector<1x8xf32>
    %c8 = arith.constant 8 : index
    %c0_26 = arith.constant 0 : index
    %63 = vector.load %arg10[%c8, %c0_26] : memref<64x8xf32, #tpu.memory_space<vmem>>, vector<1x8xf32>
    tpu.vector_store %arg10[%c8, %c0_26], %62 {strides = array<i32>} : memref<64x8xf32, #tpu.memory_space<vmem>>, vector<1x8xf32>,
    %c9_i32 = arith.constant 9 : i32
    %64 = arith.addi %0, %c9_i32 : i32
    %65 = arith.index_cast %64 : i32 to index
    %66 = memref.load %arg3[%65] : memref<64xi32, #tpu.memory_space<smem>>
    %c0_27 = arith.constant 0 : index
    %67 = arith.index_cast %66 : i32 to index
    %c0_28 = arith.constant 0 : index
    %68 = vector.load %arg4[%c0_27, %67, %c0_28] : memref<1x64x8xf32, #tpu.memory_space<vmem>>, vector<1x1x8xf32>
    %69 = vector.shape_cast %68 : vector<1x1x8xf32> to vector<1x8xf32>
    %c9 = arith.constant 9 : index
    %c0_29 = arith.constant 0 : index
    %70 = vector.load %arg10[%c9, %c0_29] : memref<64x8xf32, #tpu.memory_space<vmem>>, vector<1x8xf32>
    tpu.vector_store %arg10[%c9, %c0_29], %69 {strides = array<i32>} : memref<64x8xf32, #tpu.memory_space<vmem>>, vector<1x8xf32>,
    %c10_i32 = arith.constant 10 : i32
    %71 = arith.addi %0, %c10_i32 : i32
    %72 = arith.index_cast %71 : i32 to index
    %73 = memref.load %arg3[%72] : memref<64xi32, #tpu.memory_space<smem>>
    %c0_30 = arith.constant 0 : index
    %74 = arith.index_cast %73 : i32 to index
    %c0_31 = arith.constant 0 : index
    %75 = vector.load %arg4[%c0_30, %74, %c0_31] : memref<1x64x8xf32, #tpu.memory_space<vmem>>, vector<1x1x8xf32>
    %76 = vector.shape_cast %75 : vector<1x1x8xf32> to vector<1x8xf32>
    %c10 = arith.constant 10 : index
    %c0_32 = arith.constant 0 : index
    %77 = vector.load %arg10[%c10, %c0_32] : memref<64x8xf32, #tpu.memory_space<vmem>>, vector<1x8xf32>
    tpu.vector_store %arg10[%c10, %c0_32], %76 {strides = array<i32>} : memref<64x8xf32, #tpu.memory_space<vmem>>, vector<1x8xf32>,
    %c11_i32 = arith.constant 11 : i32
    %78 = arith.addi %0, %c11_i32 : i32
    %79 = arith.index_cast %78 : i32 to index
    %80 = memref.load %arg3[%79] : memref<64xi32, #tpu.memory_space<smem>>
    %c0_33 = arith.constant 0 : index
    %81 = arith.index_cast %80 : i32 to index
    %c0_34 = arith.constant 0 : index
    %82 = vector.load %arg4[%c0_33, %81, %c0_34] : memref<1x64x8xf32, #tpu.memory_space<vmem>>, vector<1x1x8xf32>
    %83 = vector.shape_cast %82 : vector<1x1x8xf32> to vector<1x8xf32>
    %c11 = arith.constant 11 : index
    %c0_35 = arith.constant 0 : index
    %84 = vector.load %arg10[%c11, %c0_35] : memref<64x8xf32, #tpu.memory_space<vmem>>, vector<1x8xf32>
    tpu.vector_store %arg10[%c11, %c0_35], %83 {strides = array<i32>} : memref<64x8xf32, #tpu.memory_space<vmem>>, vector<1x8xf32>,
    %c12_i32 = arith.constant 12 : i32
    %85 = arith.addi %0, %c12_i32 : i32
    %86 = arith.index_cast %85 : i32 to index
    %87 = memref.load %arg3[%86] : memref<64xi32, #tpu.memory_space<smem>>
    %c0_36 = arith.constant 0 : index
    %88 = arith.index_cast %87 : i32 to index
    %c0_37 = arith.constant 0 : index
    %89 = vector.load %arg4[%c0_36, %88, %c0_37] : memref<1x64x8xf32, #tpu.memory_space<vmem>>, vector<1x1x8xf32>
    %90 = vector.shape_cast %89 : vector<1x1x8xf32> to vector<1x8xf32>
    %c12 = arith.constant 12 : index
    %c0_38 = arith.constant 0 : index
    %91 = vector.load %arg10[%c12, %c0_38] : memref<64x8xf32, #tpu.memory_space<vmem>>, vector<1x8xf32>
    tpu.vector_store %arg10[%c12, %c0_38], %90 {strides = array<i32>} : memref<64x8xf32, #tpu.memory_space<vmem>>, vector<1x8xf32>,
    %c13_i32 = arith.constant 13 : i32
    %92 = arith.addi %0, %c13_i32 : i32
    %93 = arith.index_cast %92 : i32 to index
    %94 = memref.load %arg3[%93] : memref<64xi32, #tpu.memory_space<smem>>
    %c0_39 = arith.constant 0 : index
    %95 = arith.index_cast %94 : i32 to index
    %c0_40 = arith.constant 0 : index
    %96 = vector.load %arg4[%c0_39, %95, %c0_40] : memref<1x64x8xf32, #tpu.memory_space<vmem>>, vector<1x1x8xf32>
    %97 = vector.shape_cast %96 : vector<1x1x8xf32> to vector<1x8xf32>
    %c13 = arith.constant 13 : index
    %c0_41 = arith.constant 0 : index
    %98 = vector.load %arg10[%c13, %c0_41] : memref<64x8xf32, #tpu.memory_space<vmem>>, vector<1x8xf32>
    tpu.vector_store %arg10[%c13, %c0_41], %97 {strides = array<i32>} : memref<64x8xf32, #tpu.memory_space<vmem>>, vector<1x8xf32>,
    %c14_i32 = arith.constant 14 : i32
    %99 = arith.addi %0, %c14_i32 : i32
    %100 = arith.index_cast %99 : i32 to index
    %101 = memref.load %arg3[%100] : memref<64xi32, #tpu.memory_space<smem>>
    %c0_42 = arith.constant 0 : index
    %102 = arith.index_cast %101 : i32 to index
    %c0_43 = arith.constant 0 : index
    %103 = vector.load %arg4[%c0_42, %102, %c0_43] : memref<1x64x8xf32, #tpu.memory_space<vmem>>, vector<1x1x8xf32>
    %104 = vector.shape_cast %103 : vector<1x1x8xf32> to vector<1x8xf32>
    %c14 = arith.constant 14 : index
    %c0_44 = arith.constant 0 : index
    %105 = vector.load %arg10[%c14, %c0_44] : memref<64x8xf32, #tpu.memory_space<vmem>>, vector<1x8xf32>
    tpu.vector_store %arg10[%c14, %c0_44], %104 {strides = array<i32>} : memref<64x8xf32, #tpu.memory_space<vmem>>, vector<1x8xf32>,
    %c15_i32 = arith.constant 15 : i32
    %106 = arith.addi %0, %c15_i32 : i32
    %107 = arith.index_cast %106 : i32 to index
    %108 = memref.load %arg3[%107] : memref<64xi32, #tpu.memory_space<smem>>
    %c0_45 = arith.constant 0 : index
    %109 = arith.index_cast %108 : i32 to index
    %c0_46 = arith.constant 0 : index
    %110 = vector.load %arg4[%c0_45, %109, %c0_46] : memref<1x64x8xf32, #tpu.memory_space<vmem>>, vector<1x1x8xf32>
    %111 = vector.shape_cast %110 : vector<1x1x8xf32> to vector<1x8xf32>
    %c15 = arith.constant 15 : index
    %c0_47 = arith.constant 0 : index
    %112 = vector.load %arg10[%c15, %c0_47] : memref<64x8xf32, #tpu.memory_space<vmem>>, vector<1x8xf32>
    tpu.vector_store %arg10[%c15, %c0_47], %111 {strides = array<i32>} : memref<64x8xf32, #tpu.memory_space<vmem>>, vector<1x8xf32>,
    %c16_i32 = arith.constant 16 : i32
    %113 = arith.addi %0, %c16_i32 : i32
    %114 = arith.index_cast %113 : i32 to index
    %115 = memref.load %arg3[%114] : memref<64xi32, #tpu.memory_space<smem>>
    %c0_48 = arith.constant 0 : index
    %116 = arith.index_cast %115 : i32 to index
    %c0_49 = arith.constant 0 : index
    %117 = vector.load %arg4[%c0_48, %116, %c0_49] : memref<1x64x8xf32, #tpu.memory_space<vmem>>, vector<1x1x8xf32>
    %118 = vector.shape_cast %117 : vector<1x1x8xf32> to vector<1x8xf32>
    %c16 = arith.constant 16 : index
    %c0_50 = arith.constant 0 : index
    %119 = vector.load %arg10[%c16, %c0_50] : memref<64x8xf32, #tpu.memory_space<vmem>>, vector<1x8xf32>
    tpu.vector_store %arg10[%c16, %c0_50], %118 {strides = array<i32>} : memref<64x8xf32, #tpu.memory_space<vmem>>, vector<1x8xf32>,
    %c17_i32 = arith.constant 17 : i32
    %120 = arith.addi %0, %c17_i32 : i32
    %121 = arith.index_cast %120 : i32 to index
    %122 = memref.load %arg3[%121] : memref<64xi32, #tpu.memory_space<smem>>
    %c0_51 = arith.constant 0 : index
    %123 = arith.index_cast %122 : i32 to index
    %c0_52 = arith.constant 0 : index
    %124 = vector.load %arg4[%c0_51, %123, %c0_52] : memref<1x64x8xf32, #tpu.memory_space<vmem>>, vector<1x1x8xf32>
    %125 = vector.shape_cast %124 : vector<1x1x8xf32> to vector<1x8xf32>
    %c17 = arith.constant 17 : index
    %c0_53 = arith.constant 0 : index
    %126 = vector.load %arg10[%c17, %c0_53] : memref<64x8xf32, #tpu.memory_space<vmem>>, vector<1x8xf32>
    tpu.vector_store %arg10[%c17, %c0_53], %125 {strides = array<i32>} : memref<64x8xf32, #tpu.memory_space<vmem>>, vector<1x8xf32>,
    %c18_i32 = arith.constant 18 : i32
    %127 = arith.addi %0, %c18_i32 : i32
    %128 = arith.index_cast %127 : i32 to index
    %129 = memref.load %arg3[%128] : memref<64xi32, #tpu.memory_space<smem>>
    %c0_54 = arith.constant 0 : index
    %130 = arith.index_cast %129 : i32 to index
    %c0_55 = arith.constant 0 : index
    %131 = vector.load %arg4[%c0_54, %130, %c0_55] : memref<1x64x8xf32, #tpu.memory_space<vmem>>, vector<1x1x8xf32>
    %132 = vector.shape_cast %131 : vector<1x1x8xf32> to vector<1x8xf32>
    %c18 = arith.constant 18 : index
    %c0_56 = arith.constant 0 : index
    %133 = vector.load %arg10[%c18, %c0_56] : memref<64x8xf32, #tpu.memory_space<vmem>>, vector<1x8xf32>
    tpu.vector_store %arg10[%c18, %c0_56], %132 {strides = array<i32>} : memref<64x8xf32, #tpu.memory_space<vmem>>, vector<1x8xf32>,
    %c19_i32 = arith.constant 19 : i32
    %134 = arith.addi %0, %c19_i32 : i32
    %135 = arith.index_cast %134 : i32 to index
    %136 = memref.load %arg3[%135] : memref<64xi32, #tpu.memory_space<smem>>
    %c0_57 = arith.constant 0 : index
    %137 = arith.index_cast %136 : i32 to index
    %c0_58 = arith.constant 0 : index
    %138 = vector.load %arg4[%c0_57, %137, %c0_58] : memref<1x64x8xf32, #tpu.memory_space<vmem>>, vector<1x1x8xf32>
    %139 = vector.shape_cast %138 : vector<1x1x8xf32> to vector<1x8xf32>
    %c19 = arith.constant 19 : index
    %c0_59 = arith.constant 0 : index
    %140 = vector.load %arg10[%c19, %c0_59] : memref<64x8xf32, #tpu.memory_space<vmem>>, vector<1x8xf32>
    tpu.vector_store %arg10[%c19, %c0_59], %139 {strides = array<i32>} : memref<64x8xf32, #tpu.memory_space<vmem>>, vector<1x8xf32>,
    %c20_i32 = arith.constant 20 : i32
    %141 = arith.addi %0, %c20_i32 : i32
    %142 = arith.index_cast %141 : i32 to index
    %143 = memref.load %arg3[%142] : memref<64xi32, #tpu.memory_space<smem>>
    %c0_60 = arith.constant 0 : index
    %144 = arith.index_cast %143 : i32 to index
    %c0_61 = arith.constant 0 : index
    %145 = vector.load %arg4[%c0_60, %144, %c0_61] : memref<1x64x8xf32, #tpu.memory_space<vmem>>, vector<1x1x8xf32>
    %146 = vector.shape_cast %145 : vector<1x1x8xf32> to vector<1x8xf32>
    %c20 = arith.constant 20 : index
    %c0_62 = arith.constant 0 : index
    %147 = vector.load %arg10[%c20, %c0_62] : memref<64x8xf32, #tpu.memory_space<vmem>>, vector<1x8xf32>
    tpu.vector_store %arg10[%c20, %c0_62], %146 {strides = array<i32>} : memref<64x8xf32, #tpu.memory_space<vmem>>, vector<1x8xf32>,
    %c21_i32 = arith.constant 21 : i32
    %148 = arith.addi %0, %c21_i32 : i32
    %149 = arith.index_cast %148 : i32 to index
    %150 = memref.load %arg3[%149] : memref<64xi32, #tpu.memory_space<smem>>
    %c0_63 = arith.constant 0 : index
    %151 = arith.index_cast %150 : i32 to index
    %c0_64 = arith.constant 0 : index
    %152 = vector.load %arg4[%c0_63, %151, %c0_64] : memref<1x64x8xf32, #tpu.memory_space<vmem>>, vector<1x1x8xf32>
    %153 = vector.shape_cast %152 : vector<1x1x8xf32> to vector<1x8xf32>
    %c21 = arith.constant 21 : index
    %c0_65 = arith.constant 0 : index
    %154 = vector.load %arg10[%c21, %c0_65] : memref<64x8xf32, #tpu.memory_space<vmem>>, vector<1x8xf32>
    tpu.vector_store %arg10[%c21, %c0_65], %153 {strides = array<i32>} : memref<64x8xf32, #tpu.memory_space<vmem>>, vector<1x8xf32>,
    %c22_i32 = arith.constant 22 : i32
    %155 = arith.addi %0, %c22_i32 : i32
    %156 = arith.index_cast %155 : i32 to index
    %157 = memref.load %arg3[%156] : memref<64xi32, #tpu.memory_space<smem>>
    %c0_66 = arith.constant 0 : index
    %158 = arith.index_cast %157 : i32 to index
    %c0_67 = arith.constant 0 : index
    %159 = vector.load %arg4[%c0_66, %158, %c0_67] : memref<1x64x8xf32, #tpu.memory_space<vmem>>, vector<1x1x8xf32>
    %160 = vector.shape_cast %159 : vector<1x1x8xf32> to vector<1x8xf32>
    %c22 = arith.constant 22 : index
    %c0_68 = arith.constant 0 : index
    %161 = vector.load %arg10[%c22, %c0_68] : memref<64x8xf32, #tpu.memory_space<vmem>>, vector<1x8xf32>
    tpu.vector_store %arg10[%c22, %c0_68], %160 {strides = array<i32>} : memref<64x8xf32, #tpu.memory_space<vmem>>, vector<1x8xf32>,
    %c23_i32 = arith.constant 23 : i32
    %162 = arith.addi %0, %c23_i32 : i32
    %163 = arith.index_cast %162 : i32 to index
    %164 = memref.load %arg3[%163] : memref<64xi32, #tpu.memory_space<smem>>
    %c0_69 = arith.constant 0 : index
    %165 = arith.index_cast %164 : i32 to index
    %c0_70 = arith.constant 0 : index
    %166 = vector.load %arg4[%c0_69, %165, %c0_70] : memref<1x64x8xf32, #tpu.memory_space<vmem>>, vector<1x1x8xf32>
    %167 = vector.shape_cast %166 : vector<1x1x8xf32> to vector<1x8xf32>
    %c23 = arith.constant 23 : index
    %c0_71 = arith.constant 0 : index
    %168 = vector.load %arg10[%c23, %c0_71] : memref<64x8xf32, #tpu.memory_space<vmem>>, vector<1x8xf32>
    tpu.vector_store %arg10[%c23, %c0_71], %167 {strides = array<i32>} : memref<64x8xf32, #tpu.memory_space<vmem>>, vector<1x8xf32>,
    %c24_i32 = arith.constant 24 : i32
    %169 = arith.addi %0, %c24_i32 : i32
    %170 = arith.index_cast %169 : i32 to index
    %171 = memref.load %arg3[%170] : memref<64xi32, #tpu.memory_space<smem>>
    %c0_72 = arith.constant 0 : index
    %172 = arith.index_cast %171 : i32 to index
    %c0_73 = arith.constant 0 : index
    %173 = vector.load %arg4[%c0_72, %172, %c0_73] : memref<1x64x8xf32, #tpu.memory_space<vmem>>, vector<1x1x8xf32>
    %174 = vector.shape_cast %173 : vector<1x1x8xf32> to vector<1x8xf32>
    %c24 = arith.constant 24 : index
    %c0_74 = arith.constant 0 : index
    %175 = vector.load %arg10[%c24, %c0_74] : memref<64x8xf32, #tpu.memory_space<vmem>>, vector<1x8xf32>
    tpu.vector_store %arg10[%c24, %c0_74], %174 {strides = array<i32>} : memref<64x8xf32, #tpu.memory_space<vmem>>, vector<1x8xf32>,
    %c25_i32 = arith.constant 25 : i32
    %176 = arith.addi %0, %c25_i32 : i32
    %177 = arith.index_cast %176 : i32 to index
    %178 = memref.load %arg3[%177] : memref<64xi32, #tpu.memory_space<smem>>
    %c0_75 = arith.constant 0 : index
    %179 = arith.index_cast %178 : i32 to index
    %c0_76 = arith.constant 0 : index
    %180 = vector.load %arg4[%c0_75, %179, %c0_76] : memref<1x64x8xf32, #tpu.memory_space<vmem>>, vector<1x1x8xf32>
    %181 = vector.shape_cast %180 : vector<1x1x8xf32> to vector<1x8xf32>
    %c25 = arith.constant 25 : index
    %c0_77 = arith.constant 0 : index
    %182 = vector.load %arg10[%c25, %c0_77] : memref<64x8xf32, #tpu.memory_space<vmem>>, vector<1x8xf32>
    tpu.vector_store %arg10[%c25, %c0_77], %181 {strides = array<i32>} : memref<64x8xf32, #tpu.memory_space<vmem>>, vector<1x8xf32>,
    %c26_i32 = arith.constant 26 : i32
    %183 = arith.addi %0, %c26_i32 : i32
    %184 = arith.index_cast %183 : i32 to index
    %185 = memref.load %arg3[%184] : memref<64xi32, #tpu.memory_space<smem>>
    %c0_78 = arith.constant 0 : index
    %186 = arith.index_cast %185 : i32 to index
    %c0_79 = arith.constant 0 : index
    %187 = vector.load %arg4[%c0_78, %186, %c0_79] : memref<1x64x8xf32, #tpu.memory_space<vmem>>, vector<1x1x8xf32>
    %188 = vector.shape_cast %187 : vector<1x1x8xf32> to vector<1x8xf32>
    %c26 = arith.constant 26 : index
    %c0_80 = arith.constant 0 : index
    %189 = vector.load %arg10[%c26, %c0_80] : memref<64x8xf32, #tpu.memory_space<vmem>>, vector<1x8xf32>
    tpu.vector_store %arg10[%c26, %c0_80], %188 {strides = array<i32>} : memref<64x8xf32, #tpu.memory_space<vmem>>, vector<1x8xf32>,
    %c27_i32 = arith.constant 27 : i32
    %190 = arith.addi %0, %c27_i32 : i32
    %191 = arith.index_cast %190 : i32 to index
    %192 = memref.load %arg3[%191] : memref<64xi32, #tpu.memory_space<smem>>
    %c0_81 = arith.constant 0 : index
    %193 = arith.index_cast %192 : i32 to index
    %c0_82 = arith.constant 0 : index
    %194 = vector.load %arg4[%c0_81, %193, %c0_82] : memref<1x64x8xf32, #tpu.memory_space<vmem>>, vector<1x1x8xf32>
    %195 = vector.shape_cast %194 : vector<1x1x8xf32> to vector<1x8xf32>
    %c27 = arith.constant 27 : index
    %c0_83 = arith.constant 0 : index
    %196 = vector.load %arg10[%c27, %c0_83] : memref<64x8xf32, #tpu.memory_space<vmem>>, vector<1x8xf32>
    tpu.vector_store %arg10[%c27, %c0_83], %195 {strides = array<i32>} : memref<64x8xf32, #tpu.memory_space<vmem>>, vector<1x8xf32>,
    %c28_i32 = arith.constant 28 : i32
    %197 = arith.addi %0, %c28_i32 : i32
    %198 = arith.index_cast %197 : i32 to index
    %199 = memref.load %arg3[%198] : memref<64xi32, #tpu.memory_space<smem>>
    %c0_84 = arith.constant 0 : index
    %200 = arith.index_cast %199 : i32 to index
    %c0_85 = arith.constant 0 : index
    %201 = vector.load %arg4[%c0_84, %200, %c0_85] : memref<1x64x8xf32, #tpu.memory_space<vmem>>, vector<1x1x8xf32>
    %202 = vector.shape_cast %201 : vector<1x1x8xf32> to vector<1x8xf32>
    %c28 = arith.constant 28 : index
    %c0_86 = arith.constant 0 : index
    %203 = vector.load %arg10[%c28, %c0_86] : memref<64x8xf32, #tpu.memory_space<vmem>>, vector<1x8xf32>
    tpu.vector_store %arg10[%c28, %c0_86], %202 {strides = array<i32>} : memref<64x8xf32, #tpu.memory_space<vmem>>, vector<1x8xf32>,
    %c29_i32 = arith.constant 29 : i32
    %204 = arith.addi %0, %c29_i32 : i32
    %205 = arith.index_cast %204 : i32 to index
    %206 = memref.load %arg3[%205] : memref<64xi32, #tpu.memory_space<smem>>
    %c0_87 = arith.constant 0 : index
    %207 = arith.index_cast %206 : i32 to index
    %c0_88 = arith.constant 0 : index
    %208 = vector.load %arg4[%c0_87, %207, %c0_88] : memref<1x64x8xf32, #tpu.memory_space<vmem>>, vector<1x1x8xf32>
    %209 = vector.shape_cast %208 : vector<1x1x8xf32> to vector<1x8xf32>
    %c29 = arith.constant 29 : index
    %c0_89 = arith.constant 0 : index
    %210 = vector.load %arg10[%c29, %c0_89] : memref<64x8xf32, #tpu.memory_space<vmem>>, vector<1x8xf32>
    tpu.vector_store %arg10[%c29, %c0_89], %209 {strides = array<i32>} : memref<64x8xf32, #tpu.memory_space<vmem>>, vector<1x8xf32>,
    %c30_i32 = arith.constant 30 : i32
    %211 = arith.addi %0, %c30_i32 : i32
    %212 = arith.index_cast %211 : i32 to index
    %213 = memref.load %arg3[%212] : memref<64xi32, #tpu.memory_space<smem>>
    %c0_90 = arith.constant 0 : index
    %214 = arith.index_cast %213 : i32 to index
    %c0_91 = arith.constant 0 : index
    %215 = vector.load %arg4[%c0_90, %214, %c0_91] : memref<1x64x8xf32, #tpu.memory_space<vmem>>, vector<1x1x8xf32>
    %216 = vector.shape_cast %215 : vector<1x1x8xf32> to vector<1x8xf32>
    %c30 = arith.constant 30 : index
    %c0_92 = arith.constant 0 : index
    %217 = vector.load %arg10[%c30, %c0_92] : memref<64x8xf32, #tpu.memory_space<vmem>>, vector<1x8xf32>
    tpu.vector_store %arg10[%c30, %c0_92], %216 {strides = array<i32>} : memref<64x8xf32, #tpu.memory_space<vmem>>, vector<1x8xf32>,
    %c31_i32 = arith.constant 31 : i32
    %218 = arith.addi %0, %c31_i32 : i32
    %219 = arith.index_cast %218 : i32 to index
    %220 = memref.load %arg3[%219] : memref<64xi32, #tpu.memory_space<smem>>
    %c0_93 = arith.constant 0 : index
    %221 = arith.index_cast %220 : i32 to index
    %c0_94 = arith.constant 0 : index
    %222 = vector.load %arg4[%c0_93, %221, %c0_94] : memref<1x64x8xf32, #tpu.memory_space<vmem>>, vector<1x1x8xf32>
    %223 = vector.shape_cast %222 : vector<1x1x8xf32> to vector<1x8xf32>
    %c31 = arith.constant 31 : index
    %c0_95 = arith.constant 0 : index
    %224 = vector.load %arg10[%c31, %c0_95] : memref<64x8xf32, #tpu.memory_space<vmem>>, vector<1x8xf32>
    tpu.vector_store %arg10[%c31, %c0_95], %223 {strides = array<i32>} : memref<64x8xf32, #tpu.memory_space<vmem>>, vector<1x8xf32>,
    %c32_i32 = arith.constant 32 : i32
    %225 = arith.addi %0, %c32_i32 : i32
    %226 = arith.index_cast %225 : i32 to index
    %227 = memref.load %arg3[%226] : memref<64xi32, #tpu.memory_space<smem>>
    %c0_96 = arith.constant 0 : index
    %228 = arith.index_cast %227 : i32 to index
    %c0_97 = arith.constant 0 : index
    %229 = vector.load %arg4[%c0_96, %228, %c0_97] : memref<1x64x8xf32, #tpu.memory_space<vmem>>, vector<1x1x8xf32>
    %230 = vector.shape_cast %229 : vector<1x1x8xf32> to vector<1x8xf32>
    %c32 = arith.constant 32 : index
    %c0_98 = arith.constant 0 : index
    %231 = vector.load %arg10[%c32, %c0_98] : memref<64x8xf32, #tpu.memory_space<vmem>>, vector<1x8xf32>
    tpu.vector_store %arg10[%c32, %c0_98], %230 {strides = array<i32>} : memref<64x8xf32, #tpu.memory_space<vmem>>, vector<1x8xf32>,
    %c33_i32 = arith.constant 33 : i32
    %232 = arith.addi %0, %c33_i32 : i32
    %233 = arith.index_cast %232 : i32 to index
    %234 = memref.load %arg3[%233] : memref<64xi32, #tpu.memory_space<smem>>
    %c0_99 = arith.constant 0 : index
    %235 = arith.index_cast %234 : i32 to index
    %c0_100 = arith.constant 0 : index
    %236 = vector.load %arg4[%c0_99, %235, %c0_100] : memref<1x64x8xf32, #tpu.memory_space<vmem>>, vector<1x1x8xf32>
    %237 = vector.shape_cast %236 : vector<1x1x8xf32> to vector<1x8xf32>
    %c33 = arith.constant 33 : index
    %c0_101 = arith.constant 0 : index
    %238 = vector.load %arg10[%c33, %c0_101] : memref<64x8xf32, #tpu.memory_space<vmem>>, vector<1x8xf32>
    tpu.vector_store %arg10[%c33, %c0_101], %237 {strides = array<i32>} : memref<64x8xf32, #tpu.memory_space<vmem>>, vector<1x8xf32>,
    %c34_i32 = arith.constant 34 : i32
    %239 = arith.addi %0, %c34_i32 : i32
    %240 = arith.index_cast %239 : i32 to index
    %241 = memref.load %arg3[%240] : memref<64xi32, #tpu.memory_space<smem>>
    %c0_102 = arith.constant 0 : index
    %242 = arith.index_cast %241 : i32 to index
    %c0_103 = arith.constant 0 : index
    %243 = vector.load %arg4[%c0_102, %242, %c0_103] : memref<1x64x8xf32, #tpu.memory_space<vmem>>, vector<1x1x8xf32>
    %244 = vector.shape_cast %243 : vector<1x1x8xf32> to vector<1x8xf32>
    %c34 = arith.constant 34 : index
    %c0_104 = arith.constant 0 : index
    %245 = vector.load %arg10[%c34, %c0_104] : memref<64x8xf32, #tpu.memory_space<vmem>>, vector<1x8xf32>
    tpu.vector_store %arg10[%c34, %c0_104], %244 {strides = array<i32>} : memref<64x8xf32, #tpu.memory_space<vmem>>, vector<1x8xf32>,
    %c35_i32 = arith.constant 35 : i32
    %246 = arith.addi %0, %c35_i32 : i32
    %247 = arith.index_cast %246 : i32 to index
    %248 = memref.load %arg3[%247] : memref<64xi32, #tpu.memory_space<smem>>
    %c0_105 = arith.constant 0 : index
    %249 = arith.index_cast %248 : i32 to index
    %c0_106 = arith.constant 0 : index
    %250 = vector.load %arg4[%c0_105, %249, %c0_106] : memref<1x64x8xf32, #tpu.memory_space<vmem>>, vector<1x1x8xf32>
    %251 = vector.shape_cast %250 : vector<1x1x8xf32> to vector<1x8xf32>
    %c35 = arith.constant 35 : index
    %c0_107 = arith.constant 0 : index
    %252 = vector.load %arg10[%c35, %c0_107] : memref<64x8xf32, #tpu.memory_space<vmem>>, vector<1x8xf32>
    tpu.vector_store %arg10[%c35, %c0_107], %251 {strides = array<i32>} : memref<64x8xf32, #tpu.memory_space<vmem>>, vector<1x8xf32>,
    %c36_i32 = arith.constant 36 : i32
    %253 = arith.addi %0, %c36_i32 : i32
    %254 = arith.index_cast %253 : i32 to index
    %255 = memref.load %arg3[%254] : memref<64xi32, #tpu.memory_space<smem>>
    %c0_108 = arith.constant 0 : index
    %256 = arith.index_cast %255 : i32 to index
    %c0_109 = arith.constant 0 : index
    %257 = vector.load %arg4[%c0_108, %256, %c0_109] : memref<1x64x8xf32, #tpu.memory_space<vmem>>, vector<1x1x8xf32>
    %258 = vector.shape_cast %257 : vector<1x1x8xf32> to vector<1x8xf32>
    %c36 = arith.constant 36 : index
    %c0_110 = arith.constant 0 : index
    %259 = vector.load %arg10[%c36, %c0_110] : memref<64x8xf32, #tpu.memory_space<vmem>>, vector<1x8xf32>
    tpu.vector_store %arg10[%c36, %c0_110], %258 {strides = array<i32>} : memref<64x8xf32, #tpu.memory_space<vmem>>, vector<1x8xf32>,
    %c37_i32 = arith.constant 37 : i32
    %260 = arith.addi %0, %c37_i32 : i32
    %261 = arith.index_cast %260 : i32 to index
    %262 = memref.load %arg3[%261] : memref<64xi32, #tpu.memory_space<smem>>
    %c0_111 = arith.constant 0 : index
    %263 = arith.index_cast %262 : i32 to index
    %c0_112 = arith.constant 0 : index
    %264 = vector.load %arg4[%c0_111, %263, %c0_112] : memref<1x64x8xf32, #tpu.memory_space<vmem>>, vector<1x1x8xf32>
    %265 = vector.shape_cast %264 : vector<1x1x8xf32> to vector<1x8xf32>
    %c37 = arith.constant 37 : index
    %c0_113 = arith.constant 0 : index
    %266 = vector.load %arg10[%c37, %c0_113] : memref<64x8xf32, #tpu.memory_space<vmem>>, vector<1x8xf32>
    tpu.vector_store %arg10[%c37, %c0_113], %265 {strides = array<i32>} : memref<64x8xf32, #tpu.memory_space<vmem>>, vector<1x8xf32>,
    %c38_i32 = arith.constant 38 : i32
    %267 = arith.addi %0, %c38_i32 : i32
    %268 = arith.index_cast %267 : i32 to index
    %269 = memref.load %arg3[%268] : memref<64xi32, #tpu.memory_space<smem>>
    %c0_114 = arith.constant 0 : index
    %270 = arith.index_cast %269 : i32 to index
    %c0_115 = arith.constant 0 : index
    %271 = vector.load %arg4[%c0_114, %270, %c0_115] : memref<1x64x8xf32, #tpu.memory_space<vmem>>, vector<1x1x8xf32>
    %272 = vector.shape_cast %271 : vector<1x1x8xf32> to vector<1x8xf32>
    %c38 = arith.constant 38 : index
    %c0_116 = arith.constant 0 : index
    %273 = vector.load %arg10[%c38, %c0_116] : memref<64x8xf32, #tpu.memory_space<vmem>>, vector<1x8xf32>
    tpu.vector_store %arg10[%c38, %c0_116], %272 {strides = array<i32>} : memref<64x8xf32, #tpu.memory_space<vmem>>, vector<1x8xf32>,
    %c39_i32 = arith.constant 39 : i32
    %274 = arith.addi %0, %c39_i32 : i32
    %275 = arith.index_cast %274 : i32 to index
    %276 = memref.load %arg3[%275] : memref<64xi32, #tpu.memory_space<smem>>
    %c0_117 = arith.constant 0 : index
    %277 = arith.index_cast %276 : i32 to index
    %c0_118 = arith.constant 0 : index
    %278 = vector.load %arg4[%c0_117, %277, %c0_118] : memref<1x64x8xf32, #tpu.memory_space<vmem>>, vector<1x1x8xf32>
    %279 = vector.shape_cast %278 : vector<1x1x8xf32> to vector<1x8xf32>
    %c39 = arith.constant 39 : index
    %c0_119 = arith.constant 0 : index
    %280 = vector.load %arg10[%c39, %c0_119] : memref<64x8xf32, #tpu.memory_space<vmem>>, vector<1x8xf32>
    tpu.vector_store %arg10[%c39, %c0_119], %279 {strides = array<i32>} : memref<64x8xf32, #tpu.memory_space<vmem>>, vector<1x8xf32>,
    %c40_i32 = arith.constant 40 : i32
    %281 = arith.addi %0, %c40_i32 : i32
    %282 = arith.index_cast %281 : i32 to index
    %283 = memref.load %arg3[%282] : memref<64xi32, #tpu.memory_space<smem>>
    %c0_120 = arith.constant 0 : index
    %284 = arith.index_cast %283 : i32 to index
    %c0_121 = arith.constant 0 : index
    %285 = vector.load %arg4[%c0_120, %284, %c0_121] : memref<1x64x8xf32, #tpu.memory_space<vmem>>, vector<1x1x8xf32>
    %286 = vector.shape_cast %285 : vector<1x1x8xf32> to vector<1x8xf32>
    %c40 = arith.constant 40 : index
    %c0_122 = arith.constant 0 : index
    %287 = vector.load %arg10[%c40, %c0_122] : memref<64x8xf32, #tpu.memory_space<vmem>>, vector<1x8xf32>
    tpu.vector_store %arg10[%c40, %c0_122], %286 {strides = array<i32>} : memref<64x8xf32, #tpu.memory_space<vmem>>, vector<1x8xf32>,
    %c41_i32 = arith.constant 41 : i32
    %288 = arith.addi %0, %c41_i32 : i32
    %289 = arith.index_cast %288 : i32 to index
    %290 = memref.load %arg3[%289] : memref<64xi32, #tpu.memory_space<smem>>
    %c0_123 = arith.constant 0 : index
    %291 = arith.index_cast %290 : i32 to index
    %c0_124 = arith.constant 0 : index
    %292 = vector.load %arg4[%c0_123, %291, %c0_124] : memref<1x64x8xf32, #tpu.memory_space<vmem>>, vector<1x1x8xf32>
    %293 = vector.shape_cast %292 : vector<1x1x8xf32> to vector<1x8xf32>
    %c41 = arith.constant 41 : index
    %c0_125 = arith.constant 0 : index
    %294 = vector.load %arg10[%c41, %c0_125] : memref<64x8xf32, #tpu.memory_space<vmem>>, vector<1x8xf32>
    tpu.vector_store %arg10[%c41, %c0_125], %293 {strides = array<i32>} : memref<64x8xf32, #tpu.memory_space<vmem>>, vector<1x8xf32>,
    %c42_i32 = arith.constant 42 : i32
    %295 = arith.addi %0, %c42_i32 : i32
    %296 = arith.index_cast %295 : i32 to index
    %297 = memref.load %arg3[%296] : memref<64xi32, #tpu.memory_space<smem>>
    %c0_126 = arith.constant 0 : index
    %298 = arith.index_cast %297 : i32 to index
    %c0_127 = arith.constant 0 : index
    %299 = vector.load %arg4[%c0_126, %298, %c0_127] : memref<1x64x8xf32, #tpu.memory_space<vmem>>, vector<1x1x8xf32>
    %300 = vector.shape_cast %299 : vector<1x1x8xf32> to vector<1x8xf32>
    %c42 = arith.constant 42 : index
    %c0_128 = arith.constant 0 : index
    %301 = vector.load %arg10[%c42, %c0_128] : memref<64x8xf32, #tpu.memory_space<vmem>>, vector<1x8xf32>
    tpu.vector_store %arg10[%c42, %c0_128], %300 {strides = array<i32>} : memref<64x8xf32, #tpu.memory_space<vmem>>, vector<1x8xf32>,
    %c43_i32 = arith.constant 43 : i32
    %302 = arith.addi %0, %c43_i32 : i32
    %303 = arith.index_cast %302 : i32 to index
    %304 = memref.load %arg3[%303] : memref<64xi32, #tpu.memory_space<smem>>
    %c0_129 = arith.constant 0 : index
    %305 = arith.index_cast %304 : i32 to index
    %c0_130 = arith.constant 0 : index
    %306 = vector.load %arg4[%c0_129, %305, %c0_130] : memref<1x64x8xf32, #tpu.memory_space<vmem>>, vector<1x1x8xf32>
    %307 = vector.shape_cast %306 : vector<1x1x8xf32> to vector<1x8xf32>
    %c43 = arith.constant 43 : index
    %c0_131 = arith.constant 0 : index
    %308 = vector.load %arg10[%c43, %c0_131] : memref<64x8xf32, #tpu.memory_space<vmem>>, vector<1x8xf32>
    tpu.vector_store %arg10[%c43, %c0_131], %307 {strides = array<i32>} : memref<64x8xf32, #tpu.memory_space<vmem>>, vector<1x8xf32>,
    %c44_i32 = arith.constant 44 : i32
    %309 = arith.addi %0, %c44_i32 : i32
    %310 = arith.index_cast %309 : i32 to index
    %311 = memref.load %arg3[%310] : memref<64xi32, #tpu.memory_space<smem>>
    %c0_132 = arith.constant 0 : index
    %312 = arith.index_cast %311 : i32 to index
    %c0_133 = arith.constant 0 : index
    %313 = vector.load %arg4[%c0_132, %312, %c0_133] : memref<1x64x8xf32, #tpu.memory_space<vmem>>, vector<1x1x8xf32>
    %314 = vector.shape_cast %313 : vector<1x1x8xf32> to vector<1x8xf32>
    %c44 = arith.constant 44 : index
    %c0_134 = arith.constant 0 : index
    %315 = vector.load %arg10[%c44, %c0_134] : memref<64x8xf32, #tpu.memory_space<vmem>>, vector<1x8xf32>
    tpu.vector_store %arg10[%c44, %c0_134], %314 {strides = array<i32>} : memref<64x8xf32, #tpu.memory_space<vmem>>, vector<1x8xf32>,
    %c45_i32 = arith.constant 45 : i32
    %316 = arith.addi %0, %c45_i32 : i32
    %317 = arith.index_cast %316 : i32 to index
    %318 = memref.load %arg3[%317] : memref<64xi32, #tpu.memory_space<smem>>
    %c0_135 = arith.constant 0 : index
    %319 = arith.index_cast %318 : i32 to index
    %c0_136 = arith.constant 0 : index
    %320 = vector.load %arg4[%c0_135, %319, %c0_136] : memref<1x64x8xf32, #tpu.memory_space<vmem>>, vector<1x1x8xf32>
    %321 = vector.shape_cast %320 : vector<1x1x8xf32> to vector<1x8xf32>
    %c45 = arith.constant 45 : index
    %c0_137 = arith.constant 0 : index
    %322 = vector.load %arg10[%c45, %c0_137] : memref<64x8xf32, #tpu.memory_space<vmem>>, vector<1x8xf32>
    tpu.vector_store %arg10[%c45, %c0_137], %321 {strides = array<i32>} : memref<64x8xf32, #tpu.memory_space<vmem>>, vector<1x8xf32>,
    %c46_i32 = arith.constant 46 : i32
    %323 = arith.addi %0, %c46_i32 : i32
    %324 = arith.index_cast %323 : i32 to index
    %325 = memref.load %arg3[%324] : memref<64xi32, #tpu.memory_space<smem>>
    %c0_138 = arith.constant 0 : index
    %326 = arith.index_cast %325 : i32 to index
    %c0_139 = arith.constant 0 : index
    %327 = vector.load %arg4[%c0_138, %326, %c0_139] : memref<1x64x8xf32, #tpu.memory_space<vmem>>, vector<1x1x8xf32>
    %328 = vector.shape_cast %327 : vector<1x1x8xf32> to vector<1x8xf32>
    %c46 = arith.constant 46 : index
    %c0_140 = arith.constant 0 : index
    %329 = vector.load %arg10[%c46, %c0_140] : memref<64x8xf32, #tpu.memory_space<vmem>>, vector<1x8xf32>
    tpu.vector_store %arg10[%c46, %c0_140], %328 {strides = array<i32>} : memref<64x8xf32, #tpu.memory_space<vmem>>, vector<1x8xf32>,
    %c47_i32 = arith.constant 47 : i32
    %330 = arith.addi %0, %c47_i32 : i32
    %331 = arith.index_cast %330 : i32 to index
    %332 = memref.load %arg3[%331] : memref<64xi32, #tpu.memory_space<smem>>
    %c0_141 = arith.constant 0 : index
    %333 = arith.index_cast %332 : i32 to index
    %c0_142 = arith.constant 0 : index
    %334 = vector.load %arg4[%c0_141, %333, %c0_142] : memref<1x64x8xf32, #tpu.memory_space<vmem>>, vector<1x1x8xf32>
    %335 = vector.shape_cast %334 : vector<1x1x8xf32> to vector<1x8xf32>
    %c47 = arith.constant 47 : index
    %c0_143 = arith.constant 0 : index
    %336 = vector.load %arg10[%c47, %c0_143] : memref<64x8xf32, #tpu.memory_space<vmem>>, vector<1x8xf32>
    tpu.vector_store %arg10[%c47, %c0_143], %335 {strides = array<i32>} : memref<64x8xf32, #tpu.memory_space<vmem>>, vector<1x8xf32>,
    %c48_i32 = arith.constant 48 : i32
    %337 = arith.addi %0, %c48_i32 : i32
    %338 = arith.index_cast %337 : i32 to index
    %339 = memref.load %arg3[%338] : memref<64xi32, #tpu.memory_space<smem>>
    %c0_144 = arith.constant 0 : index
    %340 = arith.index_cast %339 : i32 to index
    %c0_145 = arith.constant 0 : index
    %341 = vector.load %arg4[%c0_144, %340, %c0_145] : memref<1x64x8xf32, #tpu.memory_space<vmem>>, vector<1x1x8xf32>
    %342 = vector.shape_cast %341 : vector<1x1x8xf32> to vector<1x8xf32>
    %c48 = arith.constant 48 : index
    %c0_146 = arith.constant 0 : index
    %343 = vector.load %arg10[%c48, %c0_146] : memref<64x8xf32, #tpu.memory_space<vmem>>, vector<1x8xf32>
    tpu.vector_store %arg10[%c48, %c0_146], %342 {strides = array<i32>} : memref<64x8xf32, #tpu.memory_space<vmem>>, vector<1x8xf32>,
    %c49_i32 = arith.constant 49 : i32
    %344 = arith.addi %0, %c49_i32 : i32
    %345 = arith.index_cast %344 : i32 to index
    %346 = memref.load %arg3[%345] : memref<64xi32, #tpu.memory_space<smem>>
    %c0_147 = arith.constant 0 : index
    %347 = arith.index_cast %346 : i32 to index
    %c0_148 = arith.constant 0 : index
    %348 = vector.load %arg4[%c0_147, %347, %c0_148] : memref<1x64x8xf32, #tpu.memory_space<vmem>>, vector<1x1x8xf32>
    %349 = vector.shape_cast %348 : vector<1x1x8xf32> to vector<1x8xf32>
    %c49 = arith.constant 49 : index
    %c0_149 = arith.constant 0 : index
    %350 = vector.load %arg10[%c49, %c0_149] : memref<64x8xf32, #tpu.memory_space<vmem>>, vector<1x8xf32>
    tpu.vector_store %arg10[%c49, %c0_149], %349 {strides = array<i32>} : memref<64x8xf32, #tpu.memory_space<vmem>>, vector<1x8xf32>,
    %c50_i32 = arith.constant 50 : i32
    %351 = arith.addi %0, %c50_i32 : i32
    %352 = arith.index_cast %351 : i32 to index
    %353 = memref.load %arg3[%352] : memref<64xi32, #tpu.memory_space<smem>>
    %c0_150 = arith.constant 0 : index
    %354 = arith.index_cast %353 : i32 to index
    %c0_151 = arith.constant 0 : index
    %355 = vector.load %arg4[%c0_150, %354, %c0_151] : memref<1x64x8xf32, #tpu.memory_space<vmem>>, vector<1x1x8xf32>
    %356 = vector.shape_cast %355 : vector<1x1x8xf32> to vector<1x8xf32>
    %c50 = arith.constant 50 : index
    %c0_152 = arith.constant 0 : index
    %357 = vector.load %arg10[%c50, %c0_152] : memref<64x8xf32, #tpu.memory_space<vmem>>, vector<1x8xf32>
    tpu.vector_store %arg10[%c50, %c0_152], %356 {strides = array<i32>} : memref<64x8xf32, #tpu.memory_space<vmem>>, vector<1x8xf32>,
    %c51_i32 = arith.constant 51 : i32
    %358 = arith.addi %0, %c51_i32 : i32
    %359 = arith.index_cast %358 : i32 to index
    %360 = memref.load %arg3[%359] : memref<64xi32, #tpu.memory_space<smem>>
    %c0_153 = arith.constant 0 : index
    %361 = arith.index_cast %360 : i32 to index
    %c0_154 = arith.constant 0 : index
    %362 = vector.load %arg4[%c0_153, %361, %c0_154] : memref<1x64x8xf32, #tpu.memory_space<vmem>>, vector<1x1x8xf32>
    %363 = vector.shape_cast %362 : vector<1x1x8xf32> to vector<1x8xf32>
    %c51 = arith.constant 51 : index
    %c0_155 = arith.constant 0 : index
    %364 = vector.load %arg10[%c51, %c0_155] : memref<64x8xf32, #tpu.memory_space<vmem>>, vector<1x8xf32>
    tpu.vector_store %arg10[%c51, %c0_155], %363 {strides = array<i32>} : memref<64x8xf32, #tpu.memory_space<vmem>>, vector<1x8xf32>,
    %c52_i32 = arith.constant 52 : i32
    %365 = arith.addi %0, %c52_i32 : i32
    %366 = arith.index_cast %365 : i32 to index
    %367 = memref.load %arg3[%366] : memref<64xi32, #tpu.memory_space<smem>>
    %c0_156 = arith.constant 0 : index
    %368 = arith.index_cast %367 : i32 to index
    %c0_157 = arith.constant 0 : index
    %369 = vector.load %arg4[%c0_156, %368, %c0_157] : memref<1x64x8xf32, #tpu.memory_space<vmem>>, vector<1x1x8xf32>
    %370 = vector.shape_cast %369 : vector<1x1x8xf32> to vector<1x8xf32>
    %c52 = arith.constant 52 : index
    %c0_158 = arith.constant 0 : index
    %371 = vector.load %arg10[%c52, %c0_158] : memref<64x8xf32, #tpu.memory_space<vmem>>, vector<1x8xf32>
    tpu.vector_store %arg10[%c52, %c0_158], %370 {strides = array<i32>} : memref<64x8xf32, #tpu.memory_space<vmem>>, vector<1x8xf32>,
    %c53_i32 = arith.constant 53 : i32
    %372 = arith.addi %0, %c53_i32 : i32
    %373 = arith.index_cast %372 : i32 to index
    %374 = memref.load %arg3[%373] : memref<64xi32, #tpu.memory_space<smem>>
    %c0_159 = arith.constant 0 : index
    %375 = arith.index_cast %374 : i32 to index
    %c0_160 = arith.constant 0 : index
    %376 = vector.load %arg4[%c0_159, %375, %c0_160] : memref<1x64x8xf32, #tpu.memory_space<vmem>>, vector<1x1x8xf32>
    %377 = vector.shape_cast %376 : vector<1x1x8xf32> to vector<1x8xf32>
    %c53 = arith.constant 53 : index
    %c0_161 = arith.constant 0 : index
    %378 = vector.load %arg10[%c53, %c0_161] : memref<64x8xf32, #tpu.memory_space<vmem>>, vector<1x8xf32>
    tpu.vector_store %arg10[%c53, %c0_161], %377 {strides = array<i32>} : memref<64x8xf32, #tpu.memory_space<vmem>>, vector<1x8xf32>,
    %c54_i32 = arith.constant 54 : i32
    %379 = arith.addi %0, %c54_i32 : i32
    %380 = arith.index_cast %379 : i32 to index
    %381 = memref.load %arg3[%380] : memref<64xi32, #tpu.memory_space<smem>>
    %c0_162 = arith.constant 0 : index
    %382 = arith.index_cast %381 : i32 to index
    %c0_163 = arith.constant 0 : index
    %383 = vector.load %arg4[%c0_162, %382, %c0_163] : memref<1x64x8xf32, #tpu.memory_space<vmem>>, vector<1x1x8xf32>
    %384 = vector.shape_cast %383 : vector<1x1x8xf32> to vector<1x8xf32>
    %c54 = arith.constant 54 : index
    %c0_164 = arith.constant 0 : index
    %385 = vector.load %arg10[%c54, %c0_164] : memref<64x8xf32, #tpu.memory_space<vmem>>, vector<1x8xf32>
    tpu.vector_store %arg10[%c54, %c0_164], %384 {strides = array<i32>} : memref<64x8xf32, #tpu.memory_space<vmem>>, vector<1x8xf32>,
    %c55_i32 = arith.constant 55 : i32
    %386 = arith.addi %0, %c55_i32 : i32
    %387 = arith.index_cast %386 : i32 to index
    %388 = memref.load %arg3[%387] : memref<64xi32, #tpu.memory_space<smem>>
    %c0_165 = arith.constant 0 : index
    %389 = arith.index_cast %388 : i32 to index
    %c0_166 = arith.constant 0 : index
    %390 = vector.load %arg4[%c0_165, %389, %c0_166] : memref<1x64x8xf32, #tpu.memory_space<vmem>>, vector<1x1x8xf32>
    %391 = vector.shape_cast %390 : vector<1x1x8xf32> to vector<1x8xf32>
    %c55 = arith.constant 55 : index
    %c0_167 = arith.constant 0 : index
    %392 = vector.load %arg10[%c55, %c0_167] : memref<64x8xf32, #tpu.memory_space<vmem>>, vector<1x8xf32>
    tpu.vector_store %arg10[%c55, %c0_167], %391 {strides = array<i32>} : memref<64x8xf32, #tpu.memory_space<vmem>>, vector<1x8xf32>,
    %c56_i32 = arith.constant 56 : i32
    %393 = arith.addi %0, %c56_i32 : i32
    %394 = arith.index_cast %393 : i32 to index
    %395 = memref.load %arg3[%394] : memref<64xi32, #tpu.memory_space<smem>>
    %c0_168 = arith.constant 0 : index
    %396 = arith.index_cast %395 : i32 to index
    %c0_169 = arith.constant 0 : index
    %397 = vector.load %arg4[%c0_168, %396, %c0_169] : memref<1x64x8xf32, #tpu.memory_space<vmem>>, vector<1x1x8xf32>
    %398 = vector.shape_cast %397 : vector<1x1x8xf32> to vector<1x8xf32>
    %c56 = arith.constant 56 : index
    %c0_170 = arith.constant 0 : index
    %399 = vector.load %arg10[%c56, %c0_170] : memref<64x8xf32, #tpu.memory_space<vmem>>, vector<1x8xf32>
    tpu.vector_store %arg10[%c56, %c0_170], %398 {strides = array<i32>} : memref<64x8xf32, #tpu.memory_space<vmem>>, vector<1x8xf32>,
    %c57_i32 = arith.constant 57 : i32
    %400 = arith.addi %0, %c57_i32 : i32
    %401 = arith.index_cast %400 : i32 to index
    %402 = memref.load %arg3[%401] : memref<64xi32, #tpu.memory_space<smem>>
    %c0_171 = arith.constant 0 : index
    %403 = arith.index_cast %402 : i32 to index
    %c0_172 = arith.constant 0 : index
    %404 = vector.load %arg4[%c0_171, %403, %c0_172] : memref<1x64x8xf32, #tpu.memory_space<vmem>>, vector<1x1x8xf32>
    %405 = vector.shape_cast %404 : vector<1x1x8xf32> to vector<1x8xf32>
    %c57 = arith.constant 57 : index
    %c0_173 = arith.constant 0 : index
    %406 = vector.load %arg10[%c57, %c0_173] : memref<64x8xf32, #tpu.memory_space<vmem>>, vector<1x8xf32>
    tpu.vector_store %arg10[%c57, %c0_173], %405 {strides = array<i32>} : memref<64x8xf32, #tpu.memory_space<vmem>>, vector<1x8xf32>,
    %c58_i32 = arith.constant 58 : i32
    %407 = arith.addi %0, %c58_i32 : i32
    %408 = arith.index_cast %407 : i32 to index
    %409 = memref.load %arg3[%408] : memref<64xi32, #tpu.memory_space<smem>>
    %c0_174 = arith.constant 0 : index
    %410 = arith.index_cast %409 : i32 to index
    %c0_175 = arith.constant 0 : index
    %411 = vector.load %arg4[%c0_174, %410, %c0_175] : memref<1x64x8xf32, #tpu.memory_space<vmem>>, vector<1x1x8xf32>
    %412 = vector.shape_cast %411 : vector<1x1x8xf32> to vector<1x8xf32>
    %c58 = arith.constant 58 : index
    %c0_176 = arith.constant 0 : index
    %413 = vector.load %arg10[%c58, %c0_176] : memref<64x8xf32, #tpu.memory_space<vmem>>, vector<1x8xf32>
    tpu.vector_store %arg10[%c58, %c0_176], %412 {strides = array<i32>} : memref<64x8xf32, #tpu.memory_space<vmem>>, vector<1x8xf32>,
    %c59_i32 = arith.constant 59 : i32
    %414 = arith.addi %0, %c59_i32 : i32
    %415 = arith.index_cast %414 : i32 to index
    %416 = memref.load %arg3[%415] : memref<64xi32, #tpu.memory_space<smem>>
    %c0_177 = arith.constant 0 : index
    %417 = arith.index_cast %416 : i32 to index
    %c0_178 = arith.constant 0 : index
    %418 = vector.load %arg4[%c0_177, %417, %c0_178] : memref<1x64x8xf32, #tpu.memory_space<vmem>>, vector<1x1x8xf32>
    %419 = vector.shape_cast %418 : vector<1x1x8xf32> to vector<1x8xf32>
    %c59 = arith.constant 59 : index
    %c0_179 = arith.constant 0 : index
    %420 = vector.load %arg10[%c59, %c0_179] : memref<64x8xf32, #tpu.memory_space<vmem>>, vector<1x8xf32>
    tpu.vector_store %arg10[%c59, %c0_179], %419 {strides = array<i32>} : memref<64x8xf32, #tpu.memory_space<vmem>>, vector<1x8xf32>,
    %c60_i32 = arith.constant 60 : i32
    %421 = arith.addi %0, %c60_i32 : i32
    %422 = arith.index_cast %421 : i32 to index
    %423 = memref.load %arg3[%422] : memref<64xi32, #tpu.memory_space<smem>>
    %c0_180 = arith.constant 0 : index
    %424 = arith.index_cast %423 : i32 to index
    %c0_181 = arith.constant 0 : index
    %425 = vector.load %arg4[%c0_180, %424, %c0_181] : memref<1x64x8xf32, #tpu.memory_space<vmem>>, vector<1x1x8xf32>
    %426 = vector.shape_cast %425 : vector<1x1x8xf32> to vector<1x8xf32>
    %c60 = arith.constant 60 : index
    %c0_182 = arith.constant 0 : index
    %427 = vector.load %arg10[%c60, %c0_182] : memref<64x8xf32, #tpu.memory_space<vmem>>, vector<1x8xf32>
    tpu.vector_store %arg10[%c60, %c0_182], %426 {strides = array<i32>} : memref<64x8xf32, #tpu.memory_space<vmem>>, vector<1x8xf32>,
    %c61_i32 = arith.constant 61 : i32
    %428 = arith.addi %0, %c61_i32 : i32
    %429 = arith.index_cast %428 : i32 to index
    %430 = memref.load %arg3[%429] : memref<64xi32, #tpu.memory_space<smem>>
    %c0_183 = arith.constant 0 : index
    %431 = arith.index_cast %430 : i32 to index
    %c0_184 = arith.constant 0 : index
    %432 = vector.load %arg4[%c0_183, %431, %c0_184] : memref<1x64x8xf32, #tpu.memory_space<vmem>>, vector<1x1x8xf32>
    %433 = vector.shape_cast %432 : vector<1x1x8xf32> to vector<1x8xf32>
    %c61 = arith.constant 61 : index
    %c0_185 = arith.constant 0 : index
    %434 = vector.load %arg10[%c61, %c0_185] : memref<64x8xf32, #tpu.memory_space<vmem>>, vector<1x8xf32>
    tpu.vector_store %arg10[%c61, %c0_185], %433 {strides = array<i32>} : memref<64x8xf32, #tpu.memory_space<vmem>>, vector<1x8xf32>,
    %c62_i32 = arith.constant 62 : i32
    %435 = arith.addi %0, %c62_i32 : i32
    %436 = arith.index_cast %435 : i32 to index
    %437 = memref.load %arg3[%436] : memref<64xi32, #tpu.memory_space<smem>>
    %c0_186 = arith.constant 0 : index
    %438 = arith.index_cast %437 : i32 to index
    %c0_187 = arith.constant 0 : index
    %439 = vector.load %arg4[%c0_186, %438, %c0_187] : memref<1x64x8xf32, #tpu.memory_space<vmem>>, vector<1x1x8xf32>
    %440 = vector.shape_cast %439 : vector<1x1x8xf32> to vector<1x8xf32>
    %c62 = arith.constant 62 : index
    %c0_188 = arith.constant 0 : index
    %441 = vector.load %arg10[%c62, %c0_188] : memref<64x8xf32, #tpu.memory_space<vmem>>, vector<1x8xf32>
    tpu.vector_store %arg10[%c62, %c0_188], %440 {strides = array<i32>} : memref<64x8xf32, #tpu.memory_space<vmem>>, vector<1x8xf32>,
    %c63_i32 = arith.constant 63 : i32
    %442 = arith.addi %0, %c63_i32 : i32
    %443 = arith.index_cast %442 : i32 to index
    %444 = memref.load %arg3[%443] : memref<64xi32, #tpu.memory_space<smem>>
    %c0_189 = arith.constant 0 : index
    %445 = arith.index_cast %444 : i32 to index
    %c0_190 = arith.constant 0 : index
    %446 = vector.load %arg4[%c0_189, %445, %c0_190] : memref<1x64x8xf32, #tpu.memory_space<vmem>>, vector<1x1x8xf32>
    %447 = vector.shape_cast %446 : vector<1x1x8xf32> to vector<1x8xf32>
    %c63 = arith.constant 63 : index
    %c0_191 = arith.constant 0 : index
    %448 = vector.load %arg10[%c63, %c0_191] : memref<64x8xf32, #tpu.memory_space<vmem>>, vector<1x8xf32>
    tpu.vector_store %arg10[%c63, %c0_191], %447 {strides = array<i32>} : memref<64x8xf32, #tpu.memory_space<vmem>>, vector<1x8xf32>,
    %c0_192 = arith.constant 0 : index
    %c0_193 = arith.constant 0 : index
    %449 = vector.load %arg10[%c0_192, %c0_193] : memref<64x8xf32, #tpu.memory_space<vmem>>, vector<64x8xf32>
    %450 = arith.truncf %449 : vector<64x8xf32> to vector<64x8xbf16>
    %c0_194 = arith.constant 0 : index
    %c0_195 = arith.constant 0 : index
    %451 = vector.load %arg5[%c0_194, %c0_195] : memref<8x128xbf16, #tpu.memory_space<vmem>>, vector<8x128xbf16>
    %cst = arith.constant dense<0.000000e+00> : vector<64x128xf32>
    %452 = tpu.matmul %450, %451, %cst {dimension_numbers = #tpu.dot_dimension_numbers<[1], [0], [0], [1], [0, 0, 1, 1], [], []>} : vector<64x8xbf16>, vector<8x128xbf16>, vector<64x128xf32> -> vector<64x128xf32>
    %c0_196 = arith.constant 0 : index
    %c0_197 = arith.constant 0 : index
    %453 = vector.load %arg6[%c0_196, %c0_197] : memref<1x128xf32, #tpu.memory_space<vmem>>, vector<1x128xf32>
    %454 = vector.broadcast %453 : vector<1x128xf32> to vector<64x128xf32>
    %455 = arith.addf %452, %454 : vector<64x128xf32>
    %cst_198 = arith.constant 0.000000e+00 : f32
    %456 = vector.broadcast %cst_198 : f32 to vector<64x128xf32>
    %457 = arith.maximumf %455, %456 : vector<64x128xf32>
    %458 = arith.truncf %457 : vector<64x128xf32> to vector<64x128xbf16>
    %c0_199 = arith.constant 0 : index
    %c0_200 = arith.constant 0 : index
    %459 = vector.load %arg7[%c0_199, %c0_200] : memref<128x32xbf16, #tpu.memory_space<vmem>>, vector<128x32xbf16>
    %cst_201 = arith.constant dense<0.000000e+00> : vector<64x32xf32>
    %460 = tpu.matmul %458, %459, %cst_201 {dimension_numbers = #tpu.dot_dimension_numbers<[1], [0], [0], [1], [0, 0, 1, 1], [], []>} : vector<64x128xbf16>, vector<128x32xbf16>, vector<64x32xf32> -> vector<64x32xf32>
    %c0_202 = arith.constant 0 : index
    %c0_203 = arith.constant 0 : index
    %461 = vector.load %arg8[%c0_202, %c0_203] : memref<1x32xf32, #tpu.memory_space<vmem>>, vector<1x32xf32>
    %462 = vector.broadcast %461 : vector<1x32xf32> to vector<64x32xf32>
    %463 = arith.addf %460, %462 : vector<64x32xf32>
    %464 = arith.mulf %463, %463 : vector<64x32xf32>
    %cst_204 = arith.constant dense<0.000000e+00> : vector<64xf32>
    %465 = vector.multi_reduction <add>, %464, %cst_204 [1] : vector<64x32xf32> to vector<64xf32>
    %466 = vector.shape_cast %465 : vector<64xf32> to vector<64x1xf32>
    %cst_205 = arith.constant 9.99999996E-13 : f32
    %467 = vector.broadcast %cst_205 : f32 to vector<64x1xf32>
    %468 = arith.addf %466, %467 : vector<64x1xf32>
    %469 = math.rsqrt %468 : vector<64x1xf32>
    %470 = vector.broadcast %469 : vector<64x1xf32> to vector<64x32xf32>
    %471 = arith.mulf %463, %470 : vector<64x32xf32>
    %472 = vector.shape_cast %471 : vector<64x32xf32> to vector<1x64x32xf32>
    %c0_206 = arith.constant 0 : index
    %c0_207 = arith.constant 0 : index
    %c0_208 = arith.constant 0 : index
    %473 = vector.load %arg9[%c0_206, %c0_207, %c0_208] : memref<1x64x32xf32, #tpu.memory_space<vmem>>, vector<1x64x32xf32>
    tpu.vector_store %arg9[%c0_206, %c0_207, %c0_208], %472 {strides = array<i32>} : memref<1x64x32xf32, #tpu.memory_space<vmem>>, vector<1x64x32xf32>,
    return
  }
  func.func @transform_0(%arg0: i32, %arg1: i32, %arg2: i32, %arg3: memref<64xi32, #tpu.memory_space<smem>>) -> (i32, i32, i32) {
    %c0_i32 = arith.constant 0 : i32
    %c0_i32_0 = arith.constant 0 : i32
    return %arg0, %arg2, %c0_i32 : i32, i32, i32
  }
  func.func @transform_1(%arg0: i32, %arg1: i32, %arg2: i32, %arg3: memref<64xi32, #tpu.memory_space<smem>>) -> (i32, i32) {
    %c0_i32 = arith.constant 0 : i32
    %c0_i32_0 = arith.constant 0 : i32
    %c0_i32_1 = arith.constant 0 : i32
    return %c0_i32, %c0_i32_0 : i32, i32
  }
  func.func @transform_2(%arg0: i32, %arg1: i32, %arg2: i32, %arg3: memref<64xi32, #tpu.memory_space<smem>>) -> (i32, i32) {
    %c0_i32 = arith.constant 0 : i32
    %c0_i32_0 = arith.constant 0 : i32
    %c0_i32_1 = arith.constant 0 : i32
    return %c0_i32, %c0_i32_0 : i32, i32
  }
  func.func @transform_3(%arg0: i32, %arg1: i32, %arg2: i32, %arg3: memref<64xi32, #tpu.memory_space<smem>>) -> (i32, i32) {
    %c0_i32 = arith.constant 0 : i32
    %c0_i32_0 = arith.constant 0 : i32
    %c0_i32_1 = arith.constant 0 : i32
    return %c0_i32, %c0_i32_0 : i32, i32
  }
  func.func @transform_4(%arg0: i32, %arg1: i32, %arg2: i32, %arg3: memref<64xi32, #tpu.memory_space<smem>>) -> (i32, i32) {
    %c0_i32 = arith.constant 0 : i32
    %c0_i32_0 = arith.constant 0 : i32
    %c0_i32_1 = arith.constant 0 : i32
    return %c0_i32, %c0_i32_0 : i32, i32
  }
  func.func @transform_5(%arg0: i32, %arg1: i32, %arg2: i32, %arg3: memref<64xi32, #tpu.memory_space<smem>>) -> (i32, i32, i32) {
    %c0_i32 = arith.constant 0 : i32
    %c0_i32_0 = arith.constant 0 : i32
    return %arg0, %arg1, %c0_i32 : i32, i32, i32
  }
}

module attributes {stable_mosaic.version = 11 : i64} {
  func.func @_gather_mlp_norm_kernel(%arg0: i32, %arg1: i32, %arg2: i32, %arg3: memref<64xi32, #tpu.memory_space<smem>>, %arg4: memref<1x256x4xf32, #tpu.memory_space<vmem>>, %arg5: memref<4x128xbf16, #tpu.memory_space<vmem>>, %arg6: memref<1x128xf32, #tpu.memory_space<vmem>>, %arg7: memref<128x32xbf16, #tpu.memory_space<vmem>>, %arg8: memref<1x32xf32, #tpu.memory_space<vmem>>, %arg9: memref<1x64x32xf32, #tpu.memory_space<vmem>>, %arg10: memref<64x4xf32, #tpu.memory_space<vmem>>) attributes {dimension_semantics = [#tpu.dimension_semantics<parallel>, #tpu.dimension_semantics<parallel>, #tpu.dimension_semantics<arbitrary>], iteration_bounds = array<i64: 2, 1, 1>, scalar_prefetch = 1 : i64, scratch_operands = 1 : i64, tpu.core_type = #tpu.core_type<tc>, window_params = [{transform_indices = @transform_0, window_bounds = array<i64: 1, 256, 4>}, {pipeline_mode = #tpu.pipeline_mode<synchronous>, transform_indices = @transform_1, window_bounds = array<i64: 4, 128>}, {pipeline_mode = #tpu.pipeline_mode<synchronous>, transform_indices = @transform_2, window_bounds = array<i64: 1, 128>}, {pipeline_mode = #tpu.pipeline_mode<synchronous>, transform_indices = @transform_3, window_bounds = array<i64: 128, 32>}, {pipeline_mode = #tpu.pipeline_mode<synchronous>, transform_indices = @transform_4, window_bounds = array<i64: 1, 32>}, {transform_indices = @transform_5, window_bounds = array<i64: 1, 64, 32>}]} {
    %c64_i32 = arith.constant 64 : i32
    %0 = arith.muli %arg1, %c64_i32 : i32
    %c0_i32 = arith.constant 0 : i32
    %1 = arith.addi %0, %c0_i32 : i32
    %2 = arith.index_cast %1 : i32 to index
    %3 = memref.load %arg3[%2] : memref<64xi32, #tpu.memory_space<smem>>
    %c0 = arith.constant 0 : index
    %4 = arith.index_cast %3 : i32 to index
    %c0_0 = arith.constant 0 : index
    %5 = vector.load %arg4[%c0, %4, %c0_0] : memref<1x256x4xf32, #tpu.memory_space<vmem>>, vector<1x1x4xf32>
    %6 = vector.shape_cast %5 : vector<1x1x4xf32> to vector<1x4xf32>
    %c0_1 = arith.constant 0 : index
    %c0_2 = arith.constant 0 : index
    %7 = vector.load %arg10[%c0_1, %c0_2] : memref<64x4xf32, #tpu.memory_space<vmem>>, vector<1x4xf32>
    tpu.vector_store %arg10[%c0_1, %c0_2], %6 {strides = array<i32>} : memref<64x4xf32, #tpu.memory_space<vmem>>, vector<1x4xf32>,
    %c1_i32 = arith.constant 1 : i32
    %8 = arith.addi %0, %c1_i32 : i32
    %9 = arith.index_cast %8 : i32 to index
    %10 = memref.load %arg3[%9] : memref<64xi32, #tpu.memory_space<smem>>
    %c0_3 = arith.constant 0 : index
    %11 = arith.index_cast %10 : i32 to index
    %c0_4 = arith.constant 0 : index
    %12 = vector.load %arg4[%c0_3, %11, %c0_4] : memref<1x256x4xf32, #tpu.memory_space<vmem>>, vector<1x1x4xf32>
    %13 = vector.shape_cast %12 : vector<1x1x4xf32> to vector<1x4xf32>
    %c1 = arith.constant 1 : index
    %c0_5 = arith.constant 0 : index
    %14 = vector.load %arg10[%c1, %c0_5] : memref<64x4xf32, #tpu.memory_space<vmem>>, vector<1x4xf32>
    tpu.vector_store %arg10[%c1, %c0_5], %13 {strides = array<i32>} : memref<64x4xf32, #tpu.memory_space<vmem>>, vector<1x4xf32>,
    %c2_i32 = arith.constant 2 : i32
    %15 = arith.addi %0, %c2_i32 : i32
    %16 = arith.index_cast %15 : i32 to index
    %17 = memref.load %arg3[%16] : memref<64xi32, #tpu.memory_space<smem>>
    %c0_6 = arith.constant 0 : index
    %18 = arith.index_cast %17 : i32 to index
    %c0_7 = arith.constant 0 : index
    %19 = vector.load %arg4[%c0_6, %18, %c0_7] : memref<1x256x4xf32, #tpu.memory_space<vmem>>, vector<1x1x4xf32>
    %20 = vector.shape_cast %19 : vector<1x1x4xf32> to vector<1x4xf32>
    %c2 = arith.constant 2 : index
    %c0_8 = arith.constant 0 : index
    %21 = vector.load %arg10[%c2, %c0_8] : memref<64x4xf32, #tpu.memory_space<vmem>>, vector<1x4xf32>
    tpu.vector_store %arg10[%c2, %c0_8], %20 {strides = array<i32>} : memref<64x4xf32, #tpu.memory_space<vmem>>, vector<1x4xf32>,
    %c3_i32 = arith.constant 3 : i32
    %22 = arith.addi %0, %c3_i32 : i32
    %23 = arith.index_cast %22 : i32 to index
    %24 = memref.load %arg3[%23] : memref<64xi32, #tpu.memory_space<smem>>
    %c0_9 = arith.constant 0 : index
    %25 = arith.index_cast %24 : i32 to index
    %c0_10 = arith.constant 0 : index
    %26 = vector.load %arg4[%c0_9, %25, %c0_10] : memref<1x256x4xf32, #tpu.memory_space<vmem>>, vector<1x1x4xf32>
    %27 = vector.shape_cast %26 : vector<1x1x4xf32> to vector<1x4xf32>
    %c3 = arith.constant 3 : index
    %c0_11 = arith.constant 0 : index
    %28 = vector.load %arg10[%c3, %c0_11] : memref<64x4xf32, #tpu.memory_space<vmem>>, vector<1x4xf32>
    tpu.vector_store %arg10[%c3, %c0_11], %27 {strides = array<i32>} : memref<64x4xf32, #tpu.memory_space<vmem>>, vector<1x4xf32>,
    %c4_i32 = arith.constant 4 : i32
    %29 = arith.addi %0, %c4_i32 : i32
    %30 = arith.index_cast %29 : i32 to index
    %31 = memref.load %arg3[%30] : memref<64xi32, #tpu.memory_space<smem>>
    %c0_12 = arith.constant 0 : index
    %32 = arith.index_cast %31 : i32 to index
    %c0_13 = arith.constant 0 : index
    %33 = vector.load %arg4[%c0_12, %32, %c0_13] : memref<1x256x4xf32, #tpu.memory_space<vmem>>, vector<1x1x4xf32>
    %34 = vector.shape_cast %33 : vector<1x1x4xf32> to vector<1x4xf32>
    %c4 = arith.constant 4 : index
    %c0_14 = arith.constant 0 : index
    %35 = vector.load %arg10[%c4, %c0_14] : memref<64x4xf32, #tpu.memory_space<vmem>>, vector<1x4xf32>
    tpu.vector_store %arg10[%c4, %c0_14], %34 {strides = array<i32>} : memref<64x4xf32, #tpu.memory_space<vmem>>, vector<1x4xf32>,
    %c5_i32 = arith.constant 5 : i32
    %36 = arith.addi %0, %c5_i32 : i32
    %37 = arith.index_cast %36 : i32 to index
    %38 = memref.load %arg3[%37] : memref<64xi32, #tpu.memory_space<smem>>
    %c0_15 = arith.constant 0 : index
    %39 = arith.index_cast %38 : i32 to index
    %c0_16 = arith.constant 0 : index
    %40 = vector.load %arg4[%c0_15, %39, %c0_16] : memref<1x256x4xf32, #tpu.memory_space<vmem>>, vector<1x1x4xf32>
    %41 = vector.shape_cast %40 : vector<1x1x4xf32> to vector<1x4xf32>
    %c5 = arith.constant 5 : index
    %c0_17 = arith.constant 0 : index
    %42 = vector.load %arg10[%c5, %c0_17] : memref<64x4xf32, #tpu.memory_space<vmem>>, vector<1x4xf32>
    tpu.vector_store %arg10[%c5, %c0_17], %41 {strides = array<i32>} : memref<64x4xf32, #tpu.memory_space<vmem>>, vector<1x4xf32>,
    %c6_i32 = arith.constant 6 : i32
    %43 = arith.addi %0, %c6_i32 : i32
    %44 = arith.index_cast %43 : i32 to index
    %45 = memref.load %arg3[%44] : memref<64xi32, #tpu.memory_space<smem>>
    %c0_18 = arith.constant 0 : index
    %46 = arith.index_cast %45 : i32 to index
    %c0_19 = arith.constant 0 : index
    %47 = vector.load %arg4[%c0_18, %46, %c0_19] : memref<1x256x4xf32, #tpu.memory_space<vmem>>, vector<1x1x4xf32>
    %48 = vector.shape_cast %47 : vector<1x1x4xf32> to vector<1x4xf32>
    %c6 = arith.constant 6 : index
    %c0_20 = arith.constant 0 : index
    %49 = vector.load %arg10[%c6, %c0_20] : memref<64x4xf32, #tpu.memory_space<vmem>>, vector<1x4xf32>
    tpu.vector_store %arg10[%c6, %c0_20], %48 {strides = array<i32>} : memref<64x4xf32, #tpu.memory_space<vmem>>, vector<1x4xf32>,
    %c7_i32 = arith.constant 7 : i32
    %50 = arith.addi %0, %c7_i32 : i32
    %51 = arith.index_cast %50 : i32 to index
    %52 = memref.load %arg3[%51] : memref<64xi32, #tpu.memory_space<smem>>
    %c0_21 = arith.constant 0 : index
    %53 = arith.index_cast %52 : i32 to index
    %c0_22 = arith.constant 0 : index
    %54 = vector.load %arg4[%c0_21, %53, %c0_22] : memref<1x256x4xf32, #tpu.memory_space<vmem>>, vector<1x1x4xf32>
    %55 = vector.shape_cast %54 : vector<1x1x4xf32> to vector<1x4xf32>
    %c7 = arith.constant 7 : index
    %c0_23 = arith.constant 0 : index
    %56 = vector.load %arg10[%c7, %c0_23] : memref<64x4xf32, #tpu.memory_space<vmem>>, vector<1x4xf32>
    tpu.vector_store %arg10[%c7, %c0_23], %55 {strides = array<i32>} : memref<64x4xf32, #tpu.memory_space<vmem>>, vector<1x4xf32>,
    %c8_i32 = arith.constant 8 : i32
    %57 = arith.addi %0, %c8_i32 : i32
    %58 = arith.index_cast %57 : i32 to index
    %59 = memref.load %arg3[%58] : memref<64xi32, #tpu.memory_space<smem>>
    %c0_24 = arith.constant 0 : index
    %60 = arith.index_cast %59 : i32 to index
    %c0_25 = arith.constant 0 : index
    %61 = vector.load %arg4[%c0_24, %60, %c0_25] : memref<1x256x4xf32, #tpu.memory_space<vmem>>, vector<1x1x4xf32>
    %62 = vector.shape_cast %61 : vector<1x1x4xf32> to vector<1x4xf32>
    %c8 = arith.constant 8 : index
    %c0_26 = arith.constant 0 : index
    %63 = vector.load %arg10[%c8, %c0_26] : memref<64x4xf32, #tpu.memory_space<vmem>>, vector<1x4xf32>
    tpu.vector_store %arg10[%c8, %c0_26], %62 {strides = array<i32>} : memref<64x4xf32, #tpu.memory_space<vmem>>, vector<1x4xf32>,
    %c9_i32 = arith.constant 9 : i32
    %64 = arith.addi %0, %c9_i32 : i32
    %65 = arith.index_cast %64 : i32 to index
    %66 = memref.load %arg3[%65] : memref<64xi32, #tpu.memory_space<smem>>
    %c0_27 = arith.constant 0 : index
    %67 = arith.index_cast %66 : i32 to index
    %c0_28 = arith.constant 0 : index
    %68 = vector.load %arg4[%c0_27, %67, %c0_28] : memref<1x256x4xf32, #tpu.memory_space<vmem>>, vector<1x1x4xf32>
    %69 = vector.shape_cast %68 : vector<1x1x4xf32> to vector<1x4xf32>
    %c9 = arith.constant 9 : index
    %c0_29 = arith.constant 0 : index
    %70 = vector.load %arg10[%c9, %c0_29] : memref<64x4xf32, #tpu.memory_space<vmem>>, vector<1x4xf32>
    tpu.vector_store %arg10[%c9, %c0_29], %69 {strides = array<i32>} : memref<64x4xf32, #tpu.memory_space<vmem>>, vector<1x4xf32>,
    %c10_i32 = arith.constant 10 : i32
    %71 = arith.addi %0, %c10_i32 : i32
    %72 = arith.index_cast %71 : i32 to index
    %73 = memref.load %arg3[%72] : memref<64xi32, #tpu.memory_space<smem>>
    %c0_30 = arith.constant 0 : index
    %74 = arith.index_cast %73 : i32 to index
    %c0_31 = arith.constant 0 : index
    %75 = vector.load %arg4[%c0_30, %74, %c0_31] : memref<1x256x4xf32, #tpu.memory_space<vmem>>, vector<1x1x4xf32>
    %76 = vector.shape_cast %75 : vector<1x1x4xf32> to vector<1x4xf32>
    %c10 = arith.constant 10 : index
    %c0_32 = arith.constant 0 : index
    %77 = vector.load %arg10[%c10, %c0_32] : memref<64x4xf32, #tpu.memory_space<vmem>>, vector<1x4xf32>
    tpu.vector_store %arg10[%c10, %c0_32], %76 {strides = array<i32>} : memref<64x4xf32, #tpu.memory_space<vmem>>, vector<1x4xf32>,
    %c11_i32 = arith.constant 11 : i32
    %78 = arith.addi %0, %c11_i32 : i32
    %79 = arith.index_cast %78 : i32 to index
    %80 = memref.load %arg3[%79] : memref<64xi32, #tpu.memory_space<smem>>
    %c0_33 = arith.constant 0 : index
    %81 = arith.index_cast %80 : i32 to index
    %c0_34 = arith.constant 0 : index
    %82 = vector.load %arg4[%c0_33, %81, %c0_34] : memref<1x256x4xf32, #tpu.memory_space<vmem>>, vector<1x1x4xf32>
    %83 = vector.shape_cast %82 : vector<1x1x4xf32> to vector<1x4xf32>
    %c11 = arith.constant 11 : index
    %c0_35 = arith.constant 0 : index
    %84 = vector.load %arg10[%c11, %c0_35] : memref<64x4xf32, #tpu.memory_space<vmem>>, vector<1x4xf32>
    tpu.vector_store %arg10[%c11, %c0_35], %83 {strides = array<i32>} : memref<64x4xf32, #tpu.memory_space<vmem>>, vector<1x4xf32>,
    %c12_i32 = arith.constant 12 : i32
    %85 = arith.addi %0, %c12_i32 : i32
    %86 = arith.index_cast %85 : i32 to index
    %87 = memref.load %arg3[%86] : memref<64xi32, #tpu.memory_space<smem>>
    %c0_36 = arith.constant 0 : index
    %88 = arith.index_cast %87 : i32 to index
    %c0_37 = arith.constant 0 : index
    %89 = vector.load %arg4[%c0_36, %88, %c0_37] : memref<1x256x4xf32, #tpu.memory_space<vmem>>, vector<1x1x4xf32>
    %90 = vector.shape_cast %89 : vector<1x1x4xf32> to vector<1x4xf32>
    %c12 = arith.constant 12 : index
    %c0_38 = arith.constant 0 : index
    %91 = vector.load %arg10[%c12, %c0_38] : memref<64x4xf32, #tpu.memory_space<vmem>>, vector<1x4xf32>
    tpu.vector_store %arg10[%c12, %c0_38], %90 {strides = array<i32>} : memref<64x4xf32, #tpu.memory_space<vmem>>, vector<1x4xf32>,
    %c13_i32 = arith.constant 13 : i32
    %92 = arith.addi %0, %c13_i32 : i32
    %93 = arith.index_cast %92 : i32 to index
    %94 = memref.load %arg3[%93] : memref<64xi32, #tpu.memory_space<smem>>
    %c0_39 = arith.constant 0 : index
    %95 = arith.index_cast %94 : i32 to index
    %c0_40 = arith.constant 0 : index
    %96 = vector.load %arg4[%c0_39, %95, %c0_40] : memref<1x256x4xf32, #tpu.memory_space<vmem>>, vector<1x1x4xf32>
    %97 = vector.shape_cast %96 : vector<1x1x4xf32> to vector<1x4xf32>
    %c13 = arith.constant 13 : index
    %c0_41 = arith.constant 0 : index
    %98 = vector.load %arg10[%c13, %c0_41] : memref<64x4xf32, #tpu.memory_space<vmem>>, vector<1x4xf32>
    tpu.vector_store %arg10[%c13, %c0_41], %97 {strides = array<i32>} : memref<64x4xf32, #tpu.memory_space<vmem>>, vector<1x4xf32>,
    %c14_i32 = arith.constant 14 : i32
    %99 = arith.addi %0, %c14_i32 : i32
    %100 = arith.index_cast %99 : i32 to index
    %101 = memref.load %arg3[%100] : memref<64xi32, #tpu.memory_space<smem>>
    %c0_42 = arith.constant 0 : index
    %102 = arith.index_cast %101 : i32 to index
    %c0_43 = arith.constant 0 : index
    %103 = vector.load %arg4[%c0_42, %102, %c0_43] : memref<1x256x4xf32, #tpu.memory_space<vmem>>, vector<1x1x4xf32>
    %104 = vector.shape_cast %103 : vector<1x1x4xf32> to vector<1x4xf32>
    %c14 = arith.constant 14 : index
    %c0_44 = arith.constant 0 : index
    %105 = vector.load %arg10[%c14, %c0_44] : memref<64x4xf32, #tpu.memory_space<vmem>>, vector<1x4xf32>
    tpu.vector_store %arg10[%c14, %c0_44], %104 {strides = array<i32>} : memref<64x4xf32, #tpu.memory_space<vmem>>, vector<1x4xf32>,
    %c15_i32 = arith.constant 15 : i32
    %106 = arith.addi %0, %c15_i32 : i32
    %107 = arith.index_cast %106 : i32 to index
    %108 = memref.load %arg3[%107] : memref<64xi32, #tpu.memory_space<smem>>
    %c0_45 = arith.constant 0 : index
    %109 = arith.index_cast %108 : i32 to index
    %c0_46 = arith.constant 0 : index
    %110 = vector.load %arg4[%c0_45, %109, %c0_46] : memref<1x256x4xf32, #tpu.memory_space<vmem>>, vector<1x1x4xf32>
    %111 = vector.shape_cast %110 : vector<1x1x4xf32> to vector<1x4xf32>
    %c15 = arith.constant 15 : index
    %c0_47 = arith.constant 0 : index
    %112 = vector.load %arg10[%c15, %c0_47] : memref<64x4xf32, #tpu.memory_space<vmem>>, vector<1x4xf32>
    tpu.vector_store %arg10[%c15, %c0_47], %111 {strides = array<i32>} : memref<64x4xf32, #tpu.memory_space<vmem>>, vector<1x4xf32>,
    %c16_i32 = arith.constant 16 : i32
    %113 = arith.addi %0, %c16_i32 : i32
    %114 = arith.index_cast %113 : i32 to index
    %115 = memref.load %arg3[%114] : memref<64xi32, #tpu.memory_space<smem>>
    %c0_48 = arith.constant 0 : index
    %116 = arith.index_cast %115 : i32 to index
    %c0_49 = arith.constant 0 : index
    %117 = vector.load %arg4[%c0_48, %116, %c0_49] : memref<1x256x4xf32, #tpu.memory_space<vmem>>, vector<1x1x4xf32>
    %118 = vector.shape_cast %117 : vector<1x1x4xf32> to vector<1x4xf32>
    %c16 = arith.constant 16 : index
    %c0_50 = arith.constant 0 : index
    %119 = vector.load %arg10[%c16, %c0_50] : memref<64x4xf32, #tpu.memory_space<vmem>>, vector<1x4xf32>
    tpu.vector_store %arg10[%c16, %c0_50], %118 {strides = array<i32>} : memref<64x4xf32, #tpu.memory_space<vmem>>, vector<1x4xf32>,
    %c17_i32 = arith.constant 17 : i32
    %120 = arith.addi %0, %c17_i32 : i32
    %121 = arith.index_cast %120 : i32 to index
    %122 = memref.load %arg3[%121] : memref<64xi32, #tpu.memory_space<smem>>
    %c0_51 = arith.constant 0 : index
    %123 = arith.index_cast %122 : i32 to index
    %c0_52 = arith.constant 0 : index
    %124 = vector.load %arg4[%c0_51, %123, %c0_52] : memref<1x256x4xf32, #tpu.memory_space<vmem>>, vector<1x1x4xf32>
    %125 = vector.shape_cast %124 : vector<1x1x4xf32> to vector<1x4xf32>
    %c17 = arith.constant 17 : index
    %c0_53 = arith.constant 0 : index
    %126 = vector.load %arg10[%c17, %c0_53] : memref<64x4xf32, #tpu.memory_space<vmem>>, vector<1x4xf32>
    tpu.vector_store %arg10[%c17, %c0_53], %125 {strides = array<i32>} : memref<64x4xf32, #tpu.memory_space<vmem>>, vector<1x4xf32>,
    %c18_i32 = arith.constant 18 : i32
    %127 = arith.addi %0, %c18_i32 : i32
    %128 = arith.index_cast %127 : i32 to index
    %129 = memref.load %arg3[%128] : memref<64xi32, #tpu.memory_space<smem>>
    %c0_54 = arith.constant 0 : index
    %130 = arith.index_cast %129 : i32 to index
    %c0_55 = arith.constant 0 : index
    %131 = vector.load %arg4[%c0_54, %130, %c0_55] : memref<1x256x4xf32, #tpu.memory_space<vmem>>, vector<1x1x4xf32>
    %132 = vector.shape_cast %131 : vector<1x1x4xf32> to vector<1x4xf32>
    %c18 = arith.constant 18 : index
    %c0_56 = arith.constant 0 : index
    %133 = vector.load %arg10[%c18, %c0_56] : memref<64x4xf32, #tpu.memory_space<vmem>>, vector<1x4xf32>
    tpu.vector_store %arg10[%c18, %c0_56], %132 {strides = array<i32>} : memref<64x4xf32, #tpu.memory_space<vmem>>, vector<1x4xf32>,
    %c19_i32 = arith.constant 19 : i32
    %134 = arith.addi %0, %c19_i32 : i32
    %135 = arith.index_cast %134 : i32 to index
    %136 = memref.load %arg3[%135] : memref<64xi32, #tpu.memory_space<smem>>
    %c0_57 = arith.constant 0 : index
    %137 = arith.index_cast %136 : i32 to index
    %c0_58 = arith.constant 0 : index
    %138 = vector.load %arg4[%c0_57, %137, %c0_58] : memref<1x256x4xf32, #tpu.memory_space<vmem>>, vector<1x1x4xf32>
    %139 = vector.shape_cast %138 : vector<1x1x4xf32> to vector<1x4xf32>
    %c19 = arith.constant 19 : index
    %c0_59 = arith.constant 0 : index
    %140 = vector.load %arg10[%c19, %c0_59] : memref<64x4xf32, #tpu.memory_space<vmem>>, vector<1x4xf32>
    tpu.vector_store %arg10[%c19, %c0_59], %139 {strides = array<i32>} : memref<64x4xf32, #tpu.memory_space<vmem>>, vector<1x4xf32>,
    %c20_i32 = arith.constant 20 : i32
    %141 = arith.addi %0, %c20_i32 : i32
    %142 = arith.index_cast %141 : i32 to index
    %143 = memref.load %arg3[%142] : memref<64xi32, #tpu.memory_space<smem>>
    %c0_60 = arith.constant 0 : index
    %144 = arith.index_cast %143 : i32 to index
    %c0_61 = arith.constant 0 : index
    %145 = vector.load %arg4[%c0_60, %144, %c0_61] : memref<1x256x4xf32, #tpu.memory_space<vmem>>, vector<1x1x4xf32>
    %146 = vector.shape_cast %145 : vector<1x1x4xf32> to vector<1x4xf32>
    %c20 = arith.constant 20 : index
    %c0_62 = arith.constant 0 : index
    %147 = vector.load %arg10[%c20, %c0_62] : memref<64x4xf32, #tpu.memory_space<vmem>>, vector<1x4xf32>
    tpu.vector_store %arg10[%c20, %c0_62], %146 {strides = array<i32>} : memref<64x4xf32, #tpu.memory_space<vmem>>, vector<1x4xf32>,
    %c21_i32 = arith.constant 21 : i32
    %148 = arith.addi %0, %c21_i32 : i32
    %149 = arith.index_cast %148 : i32 to index
    %150 = memref.load %arg3[%149] : memref<64xi32, #tpu.memory_space<smem>>
    %c0_63 = arith.constant 0 : index
    %151 = arith.index_cast %150 : i32 to index
    %c0_64 = arith.constant 0 : index
    %152 = vector.load %arg4[%c0_63, %151, %c0_64] : memref<1x256x4xf32, #tpu.memory_space<vmem>>, vector<1x1x4xf32>
    %153 = vector.shape_cast %152 : vector<1x1x4xf32> to vector<1x4xf32>
    %c21 = arith.constant 21 : index
    %c0_65 = arith.constant 0 : index
    %154 = vector.load %arg10[%c21, %c0_65] : memref<64x4xf32, #tpu.memory_space<vmem>>, vector<1x4xf32>
    tpu.vector_store %arg10[%c21, %c0_65], %153 {strides = array<i32>} : memref<64x4xf32, #tpu.memory_space<vmem>>, vector<1x4xf32>,
    %c22_i32 = arith.constant 22 : i32
    %155 = arith.addi %0, %c22_i32 : i32
    %156 = arith.index_cast %155 : i32 to index
    %157 = memref.load %arg3[%156] : memref<64xi32, #tpu.memory_space<smem>>
    %c0_66 = arith.constant 0 : index
    %158 = arith.index_cast %157 : i32 to index
    %c0_67 = arith.constant 0 : index
    %159 = vector.load %arg4[%c0_66, %158, %c0_67] : memref<1x256x4xf32, #tpu.memory_space<vmem>>, vector<1x1x4xf32>
    %160 = vector.shape_cast %159 : vector<1x1x4xf32> to vector<1x4xf32>
    %c22 = arith.constant 22 : index
    %c0_68 = arith.constant 0 : index
    %161 = vector.load %arg10[%c22, %c0_68] : memref<64x4xf32, #tpu.memory_space<vmem>>, vector<1x4xf32>
    tpu.vector_store %arg10[%c22, %c0_68], %160 {strides = array<i32>} : memref<64x4xf32, #tpu.memory_space<vmem>>, vector<1x4xf32>,
    %c23_i32 = arith.constant 23 : i32
    %162 = arith.addi %0, %c23_i32 : i32
    %163 = arith.index_cast %162 : i32 to index
    %164 = memref.load %arg3[%163] : memref<64xi32, #tpu.memory_space<smem>>
    %c0_69 = arith.constant 0 : index
    %165 = arith.index_cast %164 : i32 to index
    %c0_70 = arith.constant 0 : index
    %166 = vector.load %arg4[%c0_69, %165, %c0_70] : memref<1x256x4xf32, #tpu.memory_space<vmem>>, vector<1x1x4xf32>
    %167 = vector.shape_cast %166 : vector<1x1x4xf32> to vector<1x4xf32>
    %c23 = arith.constant 23 : index
    %c0_71 = arith.constant 0 : index
    %168 = vector.load %arg10[%c23, %c0_71] : memref<64x4xf32, #tpu.memory_space<vmem>>, vector<1x4xf32>
    tpu.vector_store %arg10[%c23, %c0_71], %167 {strides = array<i32>} : memref<64x4xf32, #tpu.memory_space<vmem>>, vector<1x4xf32>,
    %c24_i32 = arith.constant 24 : i32
    %169 = arith.addi %0, %c24_i32 : i32
    %170 = arith.index_cast %169 : i32 to index
    %171 = memref.load %arg3[%170] : memref<64xi32, #tpu.memory_space<smem>>
    %c0_72 = arith.constant 0 : index
    %172 = arith.index_cast %171 : i32 to index
    %c0_73 = arith.constant 0 : index
    %173 = vector.load %arg4[%c0_72, %172, %c0_73] : memref<1x256x4xf32, #tpu.memory_space<vmem>>, vector<1x1x4xf32>
    %174 = vector.shape_cast %173 : vector<1x1x4xf32> to vector<1x4xf32>
    %c24 = arith.constant 24 : index
    %c0_74 = arith.constant 0 : index
    %175 = vector.load %arg10[%c24, %c0_74] : memref<64x4xf32, #tpu.memory_space<vmem>>, vector<1x4xf32>
    tpu.vector_store %arg10[%c24, %c0_74], %174 {strides = array<i32>} : memref<64x4xf32, #tpu.memory_space<vmem>>, vector<1x4xf32>,
    %c25_i32 = arith.constant 25 : i32
    %176 = arith.addi %0, %c25_i32 : i32
    %177 = arith.index_cast %176 : i32 to index
    %178 = memref.load %arg3[%177] : memref<64xi32, #tpu.memory_space<smem>>
    %c0_75 = arith.constant 0 : index
    %179 = arith.index_cast %178 : i32 to index
    %c0_76 = arith.constant 0 : index
    %180 = vector.load %arg4[%c0_75, %179, %c0_76] : memref<1x256x4xf32, #tpu.memory_space<vmem>>, vector<1x1x4xf32>
    %181 = vector.shape_cast %180 : vector<1x1x4xf32> to vector<1x4xf32>
    %c25 = arith.constant 25 : index
    %c0_77 = arith.constant 0 : index
    %182 = vector.load %arg10[%c25, %c0_77] : memref<64x4xf32, #tpu.memory_space<vmem>>, vector<1x4xf32>
    tpu.vector_store %arg10[%c25, %c0_77], %181 {strides = array<i32>} : memref<64x4xf32, #tpu.memory_space<vmem>>, vector<1x4xf32>,
    %c26_i32 = arith.constant 26 : i32
    %183 = arith.addi %0, %c26_i32 : i32
    %184 = arith.index_cast %183 : i32 to index
    %185 = memref.load %arg3[%184] : memref<64xi32, #tpu.memory_space<smem>>
    %c0_78 = arith.constant 0 : index
    %186 = arith.index_cast %185 : i32 to index
    %c0_79 = arith.constant 0 : index
    %187 = vector.load %arg4[%c0_78, %186, %c0_79] : memref<1x256x4xf32, #tpu.memory_space<vmem>>, vector<1x1x4xf32>
    %188 = vector.shape_cast %187 : vector<1x1x4xf32> to vector<1x4xf32>
    %c26 = arith.constant 26 : index
    %c0_80 = arith.constant 0 : index
    %189 = vector.load %arg10[%c26, %c0_80] : memref<64x4xf32, #tpu.memory_space<vmem>>, vector<1x4xf32>
    tpu.vector_store %arg10[%c26, %c0_80], %188 {strides = array<i32>} : memref<64x4xf32, #tpu.memory_space<vmem>>, vector<1x4xf32>,
    %c27_i32 = arith.constant 27 : i32
    %190 = arith.addi %0, %c27_i32 : i32
    %191 = arith.index_cast %190 : i32 to index
    %192 = memref.load %arg3[%191] : memref<64xi32, #tpu.memory_space<smem>>
    %c0_81 = arith.constant 0 : index
    %193 = arith.index_cast %192 : i32 to index
    %c0_82 = arith.constant 0 : index
    %194 = vector.load %arg4[%c0_81, %193, %c0_82] : memref<1x256x4xf32, #tpu.memory_space<vmem>>, vector<1x1x4xf32>
    %195 = vector.shape_cast %194 : vector<1x1x4xf32> to vector<1x4xf32>
    %c27 = arith.constant 27 : index
    %c0_83 = arith.constant 0 : index
    %196 = vector.load %arg10[%c27, %c0_83] : memref<64x4xf32, #tpu.memory_space<vmem>>, vector<1x4xf32>
    tpu.vector_store %arg10[%c27, %c0_83], %195 {strides = array<i32>} : memref<64x4xf32, #tpu.memory_space<vmem>>, vector<1x4xf32>,
    %c28_i32 = arith.constant 28 : i32
    %197 = arith.addi %0, %c28_i32 : i32
    %198 = arith.index_cast %197 : i32 to index
    %199 = memref.load %arg3[%198] : memref<64xi32, #tpu.memory_space<smem>>
    %c0_84 = arith.constant 0 : index
    %200 = arith.index_cast %199 : i32 to index
    %c0_85 = arith.constant 0 : index
    %201 = vector.load %arg4[%c0_84, %200, %c0_85] : memref<1x256x4xf32, #tpu.memory_space<vmem>>, vector<1x1x4xf32>
    %202 = vector.shape_cast %201 : vector<1x1x4xf32> to vector<1x4xf32>
    %c28 = arith.constant 28 : index
    %c0_86 = arith.constant 0 : index
    %203 = vector.load %arg10[%c28, %c0_86] : memref<64x4xf32, #tpu.memory_space<vmem>>, vector<1x4xf32>
    tpu.vector_store %arg10[%c28, %c0_86], %202 {strides = array<i32>} : memref<64x4xf32, #tpu.memory_space<vmem>>, vector<1x4xf32>,
    %c29_i32 = arith.constant 29 : i32
    %204 = arith.addi %0, %c29_i32 : i32
    %205 = arith.index_cast %204 : i32 to index
    %206 = memref.load %arg3[%205] : memref<64xi32, #tpu.memory_space<smem>>
    %c0_87 = arith.constant 0 : index
    %207 = arith.index_cast %206 : i32 to index
    %c0_88 = arith.constant 0 : index
    %208 = vector.load %arg4[%c0_87, %207, %c0_88] : memref<1x256x4xf32, #tpu.memory_space<vmem>>, vector<1x1x4xf32>
    %209 = vector.shape_cast %208 : vector<1x1x4xf32> to vector<1x4xf32>
    %c29 = arith.constant 29 : index
    %c0_89 = arith.constant 0 : index
    %210 = vector.load %arg10[%c29, %c0_89] : memref<64x4xf32, #tpu.memory_space<vmem>>, vector<1x4xf32>
    tpu.vector_store %arg10[%c29, %c0_89], %209 {strides = array<i32>} : memref<64x4xf32, #tpu.memory_space<vmem>>, vector<1x4xf32>,
    %c30_i32 = arith.constant 30 : i32
    %211 = arith.addi %0, %c30_i32 : i32
    %212 = arith.index_cast %211 : i32 to index
    %213 = memref.load %arg3[%212] : memref<64xi32, #tpu.memory_space<smem>>
    %c0_90 = arith.constant 0 : index
    %214 = arith.index_cast %213 : i32 to index
    %c0_91 = arith.constant 0 : index
    %215 = vector.load %arg4[%c0_90, %214, %c0_91] : memref<1x256x4xf32, #tpu.memory_space<vmem>>, vector<1x1x4xf32>
    %216 = vector.shape_cast %215 : vector<1x1x4xf32> to vector<1x4xf32>
    %c30 = arith.constant 30 : index
    %c0_92 = arith.constant 0 : index
    %217 = vector.load %arg10[%c30, %c0_92] : memref<64x4xf32, #tpu.memory_space<vmem>>, vector<1x4xf32>
    tpu.vector_store %arg10[%c30, %c0_92], %216 {strides = array<i32>} : memref<64x4xf32, #tpu.memory_space<vmem>>, vector<1x4xf32>,
    %c31_i32 = arith.constant 31 : i32
    %218 = arith.addi %0, %c31_i32 : i32
    %219 = arith.index_cast %218 : i32 to index
    %220 = memref.load %arg3[%219] : memref<64xi32, #tpu.memory_space<smem>>
    %c0_93 = arith.constant 0 : index
    %221 = arith.index_cast %220 : i32 to index
    %c0_94 = arith.constant 0 : index
    %222 = vector.load %arg4[%c0_93, %221, %c0_94] : memref<1x256x4xf32, #tpu.memory_space<vmem>>, vector<1x1x4xf32>
    %223 = vector.shape_cast %222 : vector<1x1x4xf32> to vector<1x4xf32>
    %c31 = arith.constant 31 : index
    %c0_95 = arith.constant 0 : index
    %224 = vector.load %arg10[%c31, %c0_95] : memref<64x4xf32, #tpu.memory_space<vmem>>, vector<1x4xf32>
    tpu.vector_store %arg10[%c31, %c0_95], %223 {strides = array<i32>} : memref<64x4xf32, #tpu.memory_space<vmem>>, vector<1x4xf32>,
    %c32_i32 = arith.constant 32 : i32
    %225 = arith.addi %0, %c32_i32 : i32
    %226 = arith.index_cast %225 : i32 to index
    %227 = memref.load %arg3[%226] : memref<64xi32, #tpu.memory_space<smem>>
    %c0_96 = arith.constant 0 : index
    %228 = arith.index_cast %227 : i32 to index
    %c0_97 = arith.constant 0 : index
    %229 = vector.load %arg4[%c0_96, %228, %c0_97] : memref<1x256x4xf32, #tpu.memory_space<vmem>>, vector<1x1x4xf32>
    %230 = vector.shape_cast %229 : vector<1x1x4xf32> to vector<1x4xf32>
    %c32 = arith.constant 32 : index
    %c0_98 = arith.constant 0 : index
    %231 = vector.load %arg10[%c32, %c0_98] : memref<64x4xf32, #tpu.memory_space<vmem>>, vector<1x4xf32>
    tpu.vector_store %arg10[%c32, %c0_98], %230 {strides = array<i32>} : memref<64x4xf32, #tpu.memory_space<vmem>>, vector<1x4xf32>,
    %c33_i32 = arith.constant 33 : i32
    %232 = arith.addi %0, %c33_i32 : i32
    %233 = arith.index_cast %232 : i32 to index
    %234 = memref.load %arg3[%233] : memref<64xi32, #tpu.memory_space<smem>>
    %c0_99 = arith.constant 0 : index
    %235 = arith.index_cast %234 : i32 to index
    %c0_100 = arith.constant 0 : index
    %236 = vector.load %arg4[%c0_99, %235, %c0_100] : memref<1x256x4xf32, #tpu.memory_space<vmem>>, vector<1x1x4xf32>
    %237 = vector.shape_cast %236 : vector<1x1x4xf32> to vector<1x4xf32>
    %c33 = arith.constant 33 : index
    %c0_101 = arith.constant 0 : index
    %238 = vector.load %arg10[%c33, %c0_101] : memref<64x4xf32, #tpu.memory_space<vmem>>, vector<1x4xf32>
    tpu.vector_store %arg10[%c33, %c0_101], %237 {strides = array<i32>} : memref<64x4xf32, #tpu.memory_space<vmem>>, vector<1x4xf32>,
    %c34_i32 = arith.constant 34 : i32
    %239 = arith.addi %0, %c34_i32 : i32
    %240 = arith.index_cast %239 : i32 to index
    %241 = memref.load %arg3[%240] : memref<64xi32, #tpu.memory_space<smem>>
    %c0_102 = arith.constant 0 : index
    %242 = arith.index_cast %241 : i32 to index
    %c0_103 = arith.constant 0 : index
    %243 = vector.load %arg4[%c0_102, %242, %c0_103] : memref<1x256x4xf32, #tpu.memory_space<vmem>>, vector<1x1x4xf32>
    %244 = vector.shape_cast %243 : vector<1x1x4xf32> to vector<1x4xf32>
    %c34 = arith.constant 34 : index
    %c0_104 = arith.constant 0 : index
    %245 = vector.load %arg10[%c34, %c0_104] : memref<64x4xf32, #tpu.memory_space<vmem>>, vector<1x4xf32>
    tpu.vector_store %arg10[%c34, %c0_104], %244 {strides = array<i32>} : memref<64x4xf32, #tpu.memory_space<vmem>>, vector<1x4xf32>,
    %c35_i32 = arith.constant 35 : i32
    %246 = arith.addi %0, %c35_i32 : i32
    %247 = arith.index_cast %246 : i32 to index
    %248 = memref.load %arg3[%247] : memref<64xi32, #tpu.memory_space<smem>>
    %c0_105 = arith.constant 0 : index
    %249 = arith.index_cast %248 : i32 to index
    %c0_106 = arith.constant 0 : index
    %250 = vector.load %arg4[%c0_105, %249, %c0_106] : memref<1x256x4xf32, #tpu.memory_space<vmem>>, vector<1x1x4xf32>
    %251 = vector.shape_cast %250 : vector<1x1x4xf32> to vector<1x4xf32>
    %c35 = arith.constant 35 : index
    %c0_107 = arith.constant 0 : index
    %252 = vector.load %arg10[%c35, %c0_107] : memref<64x4xf32, #tpu.memory_space<vmem>>, vector<1x4xf32>
    tpu.vector_store %arg10[%c35, %c0_107], %251 {strides = array<i32>} : memref<64x4xf32, #tpu.memory_space<vmem>>, vector<1x4xf32>,
    %c36_i32 = arith.constant 36 : i32
    %253 = arith.addi %0, %c36_i32 : i32
    %254 = arith.index_cast %253 : i32 to index
    %255 = memref.load %arg3[%254] : memref<64xi32, #tpu.memory_space<smem>>
    %c0_108 = arith.constant 0 : index
    %256 = arith.index_cast %255 : i32 to index
    %c0_109 = arith.constant 0 : index
    %257 = vector.load %arg4[%c0_108, %256, %c0_109] : memref<1x256x4xf32, #tpu.memory_space<vmem>>, vector<1x1x4xf32>
    %258 = vector.shape_cast %257 : vector<1x1x4xf32> to vector<1x4xf32>
    %c36 = arith.constant 36 : index
    %c0_110 = arith.constant 0 : index
    %259 = vector.load %arg10[%c36, %c0_110] : memref<64x4xf32, #tpu.memory_space<vmem>>, vector<1x4xf32>
    tpu.vector_store %arg10[%c36, %c0_110], %258 {strides = array<i32>} : memref<64x4xf32, #tpu.memory_space<vmem>>, vector<1x4xf32>,
    %c37_i32 = arith.constant 37 : i32
    %260 = arith.addi %0, %c37_i32 : i32
    %261 = arith.index_cast %260 : i32 to index
    %262 = memref.load %arg3[%261] : memref<64xi32, #tpu.memory_space<smem>>
    %c0_111 = arith.constant 0 : index
    %263 = arith.index_cast %262 : i32 to index
    %c0_112 = arith.constant 0 : index
    %264 = vector.load %arg4[%c0_111, %263, %c0_112] : memref<1x256x4xf32, #tpu.memory_space<vmem>>, vector<1x1x4xf32>
    %265 = vector.shape_cast %264 : vector<1x1x4xf32> to vector<1x4xf32>
    %c37 = arith.constant 37 : index
    %c0_113 = arith.constant 0 : index
    %266 = vector.load %arg10[%c37, %c0_113] : memref<64x4xf32, #tpu.memory_space<vmem>>, vector<1x4xf32>
    tpu.vector_store %arg10[%c37, %c0_113], %265 {strides = array<i32>} : memref<64x4xf32, #tpu.memory_space<vmem>>, vector<1x4xf32>,
    %c38_i32 = arith.constant 38 : i32
    %267 = arith.addi %0, %c38_i32 : i32
    %268 = arith.index_cast %267 : i32 to index
    %269 = memref.load %arg3[%268] : memref<64xi32, #tpu.memory_space<smem>>
    %c0_114 = arith.constant 0 : index
    %270 = arith.index_cast %269 : i32 to index
    %c0_115 = arith.constant 0 : index
    %271 = vector.load %arg4[%c0_114, %270, %c0_115] : memref<1x256x4xf32, #tpu.memory_space<vmem>>, vector<1x1x4xf32>
    %272 = vector.shape_cast %271 : vector<1x1x4xf32> to vector<1x4xf32>
    %c38 = arith.constant 38 : index
    %c0_116 = arith.constant 0 : index
    %273 = vector.load %arg10[%c38, %c0_116] : memref<64x4xf32, #tpu.memory_space<vmem>>, vector<1x4xf32>
    tpu.vector_store %arg10[%c38, %c0_116], %272 {strides = array<i32>} : memref<64x4xf32, #tpu.memory_space<vmem>>, vector<1x4xf32>,
    %c39_i32 = arith.constant 39 : i32
    %274 = arith.addi %0, %c39_i32 : i32
    %275 = arith.index_cast %274 : i32 to index
    %276 = memref.load %arg3[%275] : memref<64xi32, #tpu.memory_space<smem>>
    %c0_117 = arith.constant 0 : index
    %277 = arith.index_cast %276 : i32 to index
    %c0_118 = arith.constant 0 : index
    %278 = vector.load %arg4[%c0_117, %277, %c0_118] : memref<1x256x4xf32, #tpu.memory_space<vmem>>, vector<1x1x4xf32>
    %279 = vector.shape_cast %278 : vector<1x1x4xf32> to vector<1x4xf32>
    %c39 = arith.constant 39 : index
    %c0_119 = arith.constant 0 : index
    %280 = vector.load %arg10[%c39, %c0_119] : memref<64x4xf32, #tpu.memory_space<vmem>>, vector<1x4xf32>
    tpu.vector_store %arg10[%c39, %c0_119], %279 {strides = array<i32>} : memref<64x4xf32, #tpu.memory_space<vmem>>, vector<1x4xf32>,
    %c40_i32 = arith.constant 40 : i32
    %281 = arith.addi %0, %c40_i32 : i32
    %282 = arith.index_cast %281 : i32 to index
    %283 = memref.load %arg3[%282] : memref<64xi32, #tpu.memory_space<smem>>
    %c0_120 = arith.constant 0 : index
    %284 = arith.index_cast %283 : i32 to index
    %c0_121 = arith.constant 0 : index
    %285 = vector.load %arg4[%c0_120, %284, %c0_121] : memref<1x256x4xf32, #tpu.memory_space<vmem>>, vector<1x1x4xf32>
    %286 = vector.shape_cast %285 : vector<1x1x4xf32> to vector<1x4xf32>
    %c40 = arith.constant 40 : index
    %c0_122 = arith.constant 0 : index
    %287 = vector.load %arg10[%c40, %c0_122] : memref<64x4xf32, #tpu.memory_space<vmem>>, vector<1x4xf32>
    tpu.vector_store %arg10[%c40, %c0_122], %286 {strides = array<i32>} : memref<64x4xf32, #tpu.memory_space<vmem>>, vector<1x4xf32>,
    %c41_i32 = arith.constant 41 : i32
    %288 = arith.addi %0, %c41_i32 : i32
    %289 = arith.index_cast %288 : i32 to index
    %290 = memref.load %arg3[%289] : memref<64xi32, #tpu.memory_space<smem>>
    %c0_123 = arith.constant 0 : index
    %291 = arith.index_cast %290 : i32 to index
    %c0_124 = arith.constant 0 : index
    %292 = vector.load %arg4[%c0_123, %291, %c0_124] : memref<1x256x4xf32, #tpu.memory_space<vmem>>, vector<1x1x4xf32>
    %293 = vector.shape_cast %292 : vector<1x1x4xf32> to vector<1x4xf32>
    %c41 = arith.constant 41 : index
    %c0_125 = arith.constant 0 : index
    %294 = vector.load %arg10[%c41, %c0_125] : memref<64x4xf32, #tpu.memory_space<vmem>>, vector<1x4xf32>
    tpu.vector_store %arg10[%c41, %c0_125], %293 {strides = array<i32>} : memref<64x4xf32, #tpu.memory_space<vmem>>, vector<1x4xf32>,
    %c42_i32 = arith.constant 42 : i32
    %295 = arith.addi %0, %c42_i32 : i32
    %296 = arith.index_cast %295 : i32 to index
    %297 = memref.load %arg3[%296] : memref<64xi32, #tpu.memory_space<smem>>
    %c0_126 = arith.constant 0 : index
    %298 = arith.index_cast %297 : i32 to index
    %c0_127 = arith.constant 0 : index
    %299 = vector.load %arg4[%c0_126, %298, %c0_127] : memref<1x256x4xf32, #tpu.memory_space<vmem>>, vector<1x1x4xf32>
    %300 = vector.shape_cast %299 : vector<1x1x4xf32> to vector<1x4xf32>
    %c42 = arith.constant 42 : index
    %c0_128 = arith.constant 0 : index
    %301 = vector.load %arg10[%c42, %c0_128] : memref<64x4xf32, #tpu.memory_space<vmem>>, vector<1x4xf32>
    tpu.vector_store %arg10[%c42, %c0_128], %300 {strides = array<i32>} : memref<64x4xf32, #tpu.memory_space<vmem>>, vector<1x4xf32>,
    %c43_i32 = arith.constant 43 : i32
    %302 = arith.addi %0, %c43_i32 : i32
    %303 = arith.index_cast %302 : i32 to index
    %304 = memref.load %arg3[%303] : memref<64xi32, #tpu.memory_space<smem>>
    %c0_129 = arith.constant 0 : index
    %305 = arith.index_cast %304 : i32 to index
    %c0_130 = arith.constant 0 : index
    %306 = vector.load %arg4[%c0_129, %305, %c0_130] : memref<1x256x4xf32, #tpu.memory_space<vmem>>, vector<1x1x4xf32>
    %307 = vector.shape_cast %306 : vector<1x1x4xf32> to vector<1x4xf32>
    %c43 = arith.constant 43 : index
    %c0_131 = arith.constant 0 : index
    %308 = vector.load %arg10[%c43, %c0_131] : memref<64x4xf32, #tpu.memory_space<vmem>>, vector<1x4xf32>
    tpu.vector_store %arg10[%c43, %c0_131], %307 {strides = array<i32>} : memref<64x4xf32, #tpu.memory_space<vmem>>, vector<1x4xf32>,
    %c44_i32 = arith.constant 44 : i32
    %309 = arith.addi %0, %c44_i32 : i32
    %310 = arith.index_cast %309 : i32 to index
    %311 = memref.load %arg3[%310] : memref<64xi32, #tpu.memory_space<smem>>
    %c0_132 = arith.constant 0 : index
    %312 = arith.index_cast %311 : i32 to index
    %c0_133 = arith.constant 0 : index
    %313 = vector.load %arg4[%c0_132, %312, %c0_133] : memref<1x256x4xf32, #tpu.memory_space<vmem>>, vector<1x1x4xf32>
    %314 = vector.shape_cast %313 : vector<1x1x4xf32> to vector<1x4xf32>
    %c44 = arith.constant 44 : index
    %c0_134 = arith.constant 0 : index
    %315 = vector.load %arg10[%c44, %c0_134] : memref<64x4xf32, #tpu.memory_space<vmem>>, vector<1x4xf32>
    tpu.vector_store %arg10[%c44, %c0_134], %314 {strides = array<i32>} : memref<64x4xf32, #tpu.memory_space<vmem>>, vector<1x4xf32>,
    %c45_i32 = arith.constant 45 : i32
    %316 = arith.addi %0, %c45_i32 : i32
    %317 = arith.index_cast %316 : i32 to index
    %318 = memref.load %arg3[%317] : memref<64xi32, #tpu.memory_space<smem>>
    %c0_135 = arith.constant 0 : index
    %319 = arith.index_cast %318 : i32 to index
    %c0_136 = arith.constant 0 : index
    %320 = vector.load %arg4[%c0_135, %319, %c0_136] : memref<1x256x4xf32, #tpu.memory_space<vmem>>, vector<1x1x4xf32>
    %321 = vector.shape_cast %320 : vector<1x1x4xf32> to vector<1x4xf32>
    %c45 = arith.constant 45 : index
    %c0_137 = arith.constant 0 : index
    %322 = vector.load %arg10[%c45, %c0_137] : memref<64x4xf32, #tpu.memory_space<vmem>>, vector<1x4xf32>
    tpu.vector_store %arg10[%c45, %c0_137], %321 {strides = array<i32>} : memref<64x4xf32, #tpu.memory_space<vmem>>, vector<1x4xf32>,
    %c46_i32 = arith.constant 46 : i32
    %323 = arith.addi %0, %c46_i32 : i32
    %324 = arith.index_cast %323 : i32 to index
    %325 = memref.load %arg3[%324] : memref<64xi32, #tpu.memory_space<smem>>
    %c0_138 = arith.constant 0 : index
    %326 = arith.index_cast %325 : i32 to index
    %c0_139 = arith.constant 0 : index
    %327 = vector.load %arg4[%c0_138, %326, %c0_139] : memref<1x256x4xf32, #tpu.memory_space<vmem>>, vector<1x1x4xf32>
    %328 = vector.shape_cast %327 : vector<1x1x4xf32> to vector<1x4xf32>
    %c46 = arith.constant 46 : index
    %c0_140 = arith.constant 0 : index
    %329 = vector.load %arg10[%c46, %c0_140] : memref<64x4xf32, #tpu.memory_space<vmem>>, vector<1x4xf32>
    tpu.vector_store %arg10[%c46, %c0_140], %328 {strides = array<i32>} : memref<64x4xf32, #tpu.memory_space<vmem>>, vector<1x4xf32>,
    %c47_i32 = arith.constant 47 : i32
    %330 = arith.addi %0, %c47_i32 : i32
    %331 = arith.index_cast %330 : i32 to index
    %332 = memref.load %arg3[%331] : memref<64xi32, #tpu.memory_space<smem>>
    %c0_141 = arith.constant 0 : index
    %333 = arith.index_cast %332 : i32 to index
    %c0_142 = arith.constant 0 : index
    %334 = vector.load %arg4[%c0_141, %333, %c0_142] : memref<1x256x4xf32, #tpu.memory_space<vmem>>, vector<1x1x4xf32>
    %335 = vector.shape_cast %334 : vector<1x1x4xf32> to vector<1x4xf32>
    %c47 = arith.constant 47 : index
    %c0_143 = arith.constant 0 : index
    %336 = vector.load %arg10[%c47, %c0_143] : memref<64x4xf32, #tpu.memory_space<vmem>>, vector<1x4xf32>
    tpu.vector_store %arg10[%c47, %c0_143], %335 {strides = array<i32>} : memref<64x4xf32, #tpu.memory_space<vmem>>, vector<1x4xf32>,
    %c48_i32 = arith.constant 48 : i32
    %337 = arith.addi %0, %c48_i32 : i32
    %338 = arith.index_cast %337 : i32 to index
    %339 = memref.load %arg3[%338] : memref<64xi32, #tpu.memory_space<smem>>
    %c0_144 = arith.constant 0 : index
    %340 = arith.index_cast %339 : i32 to index
    %c0_145 = arith.constant 0 : index
    %341 = vector.load %arg4[%c0_144, %340, %c0_145] : memref<1x256x4xf32, #tpu.memory_space<vmem>>, vector<1x1x4xf32>
    %342 = vector.shape_cast %341 : vector<1x1x4xf32> to vector<1x4xf32>
    %c48 = arith.constant 48 : index
    %c0_146 = arith.constant 0 : index
    %343 = vector.load %arg10[%c48, %c0_146] : memref<64x4xf32, #tpu.memory_space<vmem>>, vector<1x4xf32>
    tpu.vector_store %arg10[%c48, %c0_146], %342 {strides = array<i32>} : memref<64x4xf32, #tpu.memory_space<vmem>>, vector<1x4xf32>,
    %c49_i32 = arith.constant 49 : i32
    %344 = arith.addi %0, %c49_i32 : i32
    %345 = arith.index_cast %344 : i32 to index
    %346 = memref.load %arg3[%345] : memref<64xi32, #tpu.memory_space<smem>>
    %c0_147 = arith.constant 0 : index
    %347 = arith.index_cast %346 : i32 to index
    %c0_148 = arith.constant 0 : index
    %348 = vector.load %arg4[%c0_147, %347, %c0_148] : memref<1x256x4xf32, #tpu.memory_space<vmem>>, vector<1x1x4xf32>
    %349 = vector.shape_cast %348 : vector<1x1x4xf32> to vector<1x4xf32>
    %c49 = arith.constant 49 : index
    %c0_149 = arith.constant 0 : index
    %350 = vector.load %arg10[%c49, %c0_149] : memref<64x4xf32, #tpu.memory_space<vmem>>, vector<1x4xf32>
    tpu.vector_store %arg10[%c49, %c0_149], %349 {strides = array<i32>} : memref<64x4xf32, #tpu.memory_space<vmem>>, vector<1x4xf32>,
    %c50_i32 = arith.constant 50 : i32
    %351 = arith.addi %0, %c50_i32 : i32
    %352 = arith.index_cast %351 : i32 to index
    %353 = memref.load %arg3[%352] : memref<64xi32, #tpu.memory_space<smem>>
    %c0_150 = arith.constant 0 : index
    %354 = arith.index_cast %353 : i32 to index
    %c0_151 = arith.constant 0 : index
    %355 = vector.load %arg4[%c0_150, %354, %c0_151] : memref<1x256x4xf32, #tpu.memory_space<vmem>>, vector<1x1x4xf32>
    %356 = vector.shape_cast %355 : vector<1x1x4xf32> to vector<1x4xf32>
    %c50 = arith.constant 50 : index
    %c0_152 = arith.constant 0 : index
    %357 = vector.load %arg10[%c50, %c0_152] : memref<64x4xf32, #tpu.memory_space<vmem>>, vector<1x4xf32>
    tpu.vector_store %arg10[%c50, %c0_152], %356 {strides = array<i32>} : memref<64x4xf32, #tpu.memory_space<vmem>>, vector<1x4xf32>,
    %c51_i32 = arith.constant 51 : i32
    %358 = arith.addi %0, %c51_i32 : i32
    %359 = arith.index_cast %358 : i32 to index
    %360 = memref.load %arg3[%359] : memref<64xi32, #tpu.memory_space<smem>>
    %c0_153 = arith.constant 0 : index
    %361 = arith.index_cast %360 : i32 to index
    %c0_154 = arith.constant 0 : index
    %362 = vector.load %arg4[%c0_153, %361, %c0_154] : memref<1x256x4xf32, #tpu.memory_space<vmem>>, vector<1x1x4xf32>
    %363 = vector.shape_cast %362 : vector<1x1x4xf32> to vector<1x4xf32>
    %c51 = arith.constant 51 : index
    %c0_155 = arith.constant 0 : index
    %364 = vector.load %arg10[%c51, %c0_155] : memref<64x4xf32, #tpu.memory_space<vmem>>, vector<1x4xf32>
    tpu.vector_store %arg10[%c51, %c0_155], %363 {strides = array<i32>} : memref<64x4xf32, #tpu.memory_space<vmem>>, vector<1x4xf32>,
    %c52_i32 = arith.constant 52 : i32
    %365 = arith.addi %0, %c52_i32 : i32
    %366 = arith.index_cast %365 : i32 to index
    %367 = memref.load %arg3[%366] : memref<64xi32, #tpu.memory_space<smem>>
    %c0_156 = arith.constant 0 : index
    %368 = arith.index_cast %367 : i32 to index
    %c0_157 = arith.constant 0 : index
    %369 = vector.load %arg4[%c0_156, %368, %c0_157] : memref<1x256x4xf32, #tpu.memory_space<vmem>>, vector<1x1x4xf32>
    %370 = vector.shape_cast %369 : vector<1x1x4xf32> to vector<1x4xf32>
    %c52 = arith.constant 52 : index
    %c0_158 = arith.constant 0 : index
    %371 = vector.load %arg10[%c52, %c0_158] : memref<64x4xf32, #tpu.memory_space<vmem>>, vector<1x4xf32>
    tpu.vector_store %arg10[%c52, %c0_158], %370 {strides = array<i32>} : memref<64x4xf32, #tpu.memory_space<vmem>>, vector<1x4xf32>,
    %c53_i32 = arith.constant 53 : i32
    %372 = arith.addi %0, %c53_i32 : i32
    %373 = arith.index_cast %372 : i32 to index
    %374 = memref.load %arg3[%373] : memref<64xi32, #tpu.memory_space<smem>>
    %c0_159 = arith.constant 0 : index
    %375 = arith.index_cast %374 : i32 to index
    %c0_160 = arith.constant 0 : index
    %376 = vector.load %arg4[%c0_159, %375, %c0_160] : memref<1x256x4xf32, #tpu.memory_space<vmem>>, vector<1x1x4xf32>
    %377 = vector.shape_cast %376 : vector<1x1x4xf32> to vector<1x4xf32>
    %c53 = arith.constant 53 : index
    %c0_161 = arith.constant 0 : index
    %378 = vector.load %arg10[%c53, %c0_161] : memref<64x4xf32, #tpu.memory_space<vmem>>, vector<1x4xf32>
    tpu.vector_store %arg10[%c53, %c0_161], %377 {strides = array<i32>} : memref<64x4xf32, #tpu.memory_space<vmem>>, vector<1x4xf32>,
    %c54_i32 = arith.constant 54 : i32
    %379 = arith.addi %0, %c54_i32 : i32
    %380 = arith.index_cast %379 : i32 to index
    %381 = memref.load %arg3[%380] : memref<64xi32, #tpu.memory_space<smem>>
    %c0_162 = arith.constant 0 : index
    %382 = arith.index_cast %381 : i32 to index
    %c0_163 = arith.constant 0 : index
    %383 = vector.load %arg4[%c0_162, %382, %c0_163] : memref<1x256x4xf32, #tpu.memory_space<vmem>>, vector<1x1x4xf32>
    %384 = vector.shape_cast %383 : vector<1x1x4xf32> to vector<1x4xf32>
    %c54 = arith.constant 54 : index
    %c0_164 = arith.constant 0 : index
    %385 = vector.load %arg10[%c54, %c0_164] : memref<64x4xf32, #tpu.memory_space<vmem>>, vector<1x4xf32>
    tpu.vector_store %arg10[%c54, %c0_164], %384 {strides = array<i32>} : memref<64x4xf32, #tpu.memory_space<vmem>>, vector<1x4xf32>,
    %c55_i32 = arith.constant 55 : i32
    %386 = arith.addi %0, %c55_i32 : i32
    %387 = arith.index_cast %386 : i32 to index
    %388 = memref.load %arg3[%387] : memref<64xi32, #tpu.memory_space<smem>>
    %c0_165 = arith.constant 0 : index
    %389 = arith.index_cast %388 : i32 to index
    %c0_166 = arith.constant 0 : index
    %390 = vector.load %arg4[%c0_165, %389, %c0_166] : memref<1x256x4xf32, #tpu.memory_space<vmem>>, vector<1x1x4xf32>
    %391 = vector.shape_cast %390 : vector<1x1x4xf32> to vector<1x4xf32>
    %c55 = arith.constant 55 : index
    %c0_167 = arith.constant 0 : index
    %392 = vector.load %arg10[%c55, %c0_167] : memref<64x4xf32, #tpu.memory_space<vmem>>, vector<1x4xf32>
    tpu.vector_store %arg10[%c55, %c0_167], %391 {strides = array<i32>} : memref<64x4xf32, #tpu.memory_space<vmem>>, vector<1x4xf32>,
    %c56_i32 = arith.constant 56 : i32
    %393 = arith.addi %0, %c56_i32 : i32
    %394 = arith.index_cast %393 : i32 to index
    %395 = memref.load %arg3[%394] : memref<64xi32, #tpu.memory_space<smem>>
    %c0_168 = arith.constant 0 : index
    %396 = arith.index_cast %395 : i32 to index
    %c0_169 = arith.constant 0 : index
    %397 = vector.load %arg4[%c0_168, %396, %c0_169] : memref<1x256x4xf32, #tpu.memory_space<vmem>>, vector<1x1x4xf32>
    %398 = vector.shape_cast %397 : vector<1x1x4xf32> to vector<1x4xf32>
    %c56 = arith.constant 56 : index
    %c0_170 = arith.constant 0 : index
    %399 = vector.load %arg10[%c56, %c0_170] : memref<64x4xf32, #tpu.memory_space<vmem>>, vector<1x4xf32>
    tpu.vector_store %arg10[%c56, %c0_170], %398 {strides = array<i32>} : memref<64x4xf32, #tpu.memory_space<vmem>>, vector<1x4xf32>,
    %c57_i32 = arith.constant 57 : i32
    %400 = arith.addi %0, %c57_i32 : i32
    %401 = arith.index_cast %400 : i32 to index
    %402 = memref.load %arg3[%401] : memref<64xi32, #tpu.memory_space<smem>>
    %c0_171 = arith.constant 0 : index
    %403 = arith.index_cast %402 : i32 to index
    %c0_172 = arith.constant 0 : index
    %404 = vector.load %arg4[%c0_171, %403, %c0_172] : memref<1x256x4xf32, #tpu.memory_space<vmem>>, vector<1x1x4xf32>
    %405 = vector.shape_cast %404 : vector<1x1x4xf32> to vector<1x4xf32>
    %c57 = arith.constant 57 : index
    %c0_173 = arith.constant 0 : index
    %406 = vector.load %arg10[%c57, %c0_173] : memref<64x4xf32, #tpu.memory_space<vmem>>, vector<1x4xf32>
    tpu.vector_store %arg10[%c57, %c0_173], %405 {strides = array<i32>} : memref<64x4xf32, #tpu.memory_space<vmem>>, vector<1x4xf32>,
    %c58_i32 = arith.constant 58 : i32
    %407 = arith.addi %0, %c58_i32 : i32
    %408 = arith.index_cast %407 : i32 to index
    %409 = memref.load %arg3[%408] : memref<64xi32, #tpu.memory_space<smem>>
    %c0_174 = arith.constant 0 : index
    %410 = arith.index_cast %409 : i32 to index
    %c0_175 = arith.constant 0 : index
    %411 = vector.load %arg4[%c0_174, %410, %c0_175] : memref<1x256x4xf32, #tpu.memory_space<vmem>>, vector<1x1x4xf32>
    %412 = vector.shape_cast %411 : vector<1x1x4xf32> to vector<1x4xf32>
    %c58 = arith.constant 58 : index
    %c0_176 = arith.constant 0 : index
    %413 = vector.load %arg10[%c58, %c0_176] : memref<64x4xf32, #tpu.memory_space<vmem>>, vector<1x4xf32>
    tpu.vector_store %arg10[%c58, %c0_176], %412 {strides = array<i32>} : memref<64x4xf32, #tpu.memory_space<vmem>>, vector<1x4xf32>,
    %c59_i32 = arith.constant 59 : i32
    %414 = arith.addi %0, %c59_i32 : i32
    %415 = arith.index_cast %414 : i32 to index
    %416 = memref.load %arg3[%415] : memref<64xi32, #tpu.memory_space<smem>>
    %c0_177 = arith.constant 0 : index
    %417 = arith.index_cast %416 : i32 to index
    %c0_178 = arith.constant 0 : index
    %418 = vector.load %arg4[%c0_177, %417, %c0_178] : memref<1x256x4xf32, #tpu.memory_space<vmem>>, vector<1x1x4xf32>
    %419 = vector.shape_cast %418 : vector<1x1x4xf32> to vector<1x4xf32>
    %c59 = arith.constant 59 : index
    %c0_179 = arith.constant 0 : index
    %420 = vector.load %arg10[%c59, %c0_179] : memref<64x4xf32, #tpu.memory_space<vmem>>, vector<1x4xf32>
    tpu.vector_store %arg10[%c59, %c0_179], %419 {strides = array<i32>} : memref<64x4xf32, #tpu.memory_space<vmem>>, vector<1x4xf32>,
    %c60_i32 = arith.constant 60 : i32
    %421 = arith.addi %0, %c60_i32 : i32
    %422 = arith.index_cast %421 : i32 to index
    %423 = memref.load %arg3[%422] : memref<64xi32, #tpu.memory_space<smem>>
    %c0_180 = arith.constant 0 : index
    %424 = arith.index_cast %423 : i32 to index
    %c0_181 = arith.constant 0 : index
    %425 = vector.load %arg4[%c0_180, %424, %c0_181] : memref<1x256x4xf32, #tpu.memory_space<vmem>>, vector<1x1x4xf32>
    %426 = vector.shape_cast %425 : vector<1x1x4xf32> to vector<1x4xf32>
    %c60 = arith.constant 60 : index
    %c0_182 = arith.constant 0 : index
    %427 = vector.load %arg10[%c60, %c0_182] : memref<64x4xf32, #tpu.memory_space<vmem>>, vector<1x4xf32>
    tpu.vector_store %arg10[%c60, %c0_182], %426 {strides = array<i32>} : memref<64x4xf32, #tpu.memory_space<vmem>>, vector<1x4xf32>,
    %c61_i32 = arith.constant 61 : i32
    %428 = arith.addi %0, %c61_i32 : i32
    %429 = arith.index_cast %428 : i32 to index
    %430 = memref.load %arg3[%429] : memref<64xi32, #tpu.memory_space<smem>>
    %c0_183 = arith.constant 0 : index
    %431 = arith.index_cast %430 : i32 to index
    %c0_184 = arith.constant 0 : index
    %432 = vector.load %arg4[%c0_183, %431, %c0_184] : memref<1x256x4xf32, #tpu.memory_space<vmem>>, vector<1x1x4xf32>
    %433 = vector.shape_cast %432 : vector<1x1x4xf32> to vector<1x4xf32>
    %c61 = arith.constant 61 : index
    %c0_185 = arith.constant 0 : index
    %434 = vector.load %arg10[%c61, %c0_185] : memref<64x4xf32, #tpu.memory_space<vmem>>, vector<1x4xf32>
    tpu.vector_store %arg10[%c61, %c0_185], %433 {strides = array<i32>} : memref<64x4xf32, #tpu.memory_space<vmem>>, vector<1x4xf32>,
    %c62_i32 = arith.constant 62 : i32
    %435 = arith.addi %0, %c62_i32 : i32
    %436 = arith.index_cast %435 : i32 to index
    %437 = memref.load %arg3[%436] : memref<64xi32, #tpu.memory_space<smem>>
    %c0_186 = arith.constant 0 : index
    %438 = arith.index_cast %437 : i32 to index
    %c0_187 = arith.constant 0 : index
    %439 = vector.load %arg4[%c0_186, %438, %c0_187] : memref<1x256x4xf32, #tpu.memory_space<vmem>>, vector<1x1x4xf32>
    %440 = vector.shape_cast %439 : vector<1x1x4xf32> to vector<1x4xf32>
    %c62 = arith.constant 62 : index
    %c0_188 = arith.constant 0 : index
    %441 = vector.load %arg10[%c62, %c0_188] : memref<64x4xf32, #tpu.memory_space<vmem>>, vector<1x4xf32>
    tpu.vector_store %arg10[%c62, %c0_188], %440 {strides = array<i32>} : memref<64x4xf32, #tpu.memory_space<vmem>>, vector<1x4xf32>,
    %c63_i32 = arith.constant 63 : i32
    %442 = arith.addi %0, %c63_i32 : i32
    %443 = arith.index_cast %442 : i32 to index
    %444 = memref.load %arg3[%443] : memref<64xi32, #tpu.memory_space<smem>>
    %c0_189 = arith.constant 0 : index
    %445 = arith.index_cast %444 : i32 to index
    %c0_190 = arith.constant 0 : index
    %446 = vector.load %arg4[%c0_189, %445, %c0_190] : memref<1x256x4xf32, #tpu.memory_space<vmem>>, vector<1x1x4xf32>
    %447 = vector.shape_cast %446 : vector<1x1x4xf32> to vector<1x4xf32>
    %c63 = arith.constant 63 : index
    %c0_191 = arith.constant 0 : index
    %448 = vector.load %arg10[%c63, %c0_191] : memref<64x4xf32, #tpu.memory_space<vmem>>, vector<1x4xf32>
    tpu.vector_store %arg10[%c63, %c0_191], %447 {strides = array<i32>} : memref<64x4xf32, #tpu.memory_space<vmem>>, vector<1x4xf32>,
    %c0_192 = arith.constant 0 : index
    %c0_193 = arith.constant 0 : index
    %449 = vector.load %arg10[%c0_192, %c0_193] : memref<64x4xf32, #tpu.memory_space<vmem>>, vector<64x4xf32>
    %450 = arith.truncf %449 : vector<64x4xf32> to vector<64x4xbf16>
    %c0_194 = arith.constant 0 : index
    %c0_195 = arith.constant 0 : index
    %451 = vector.load %arg5[%c0_194, %c0_195] : memref<4x128xbf16, #tpu.memory_space<vmem>>, vector<4x128xbf16>
    %cst = arith.constant dense<0.000000e+00> : vector<64x128xf32>
    %452 = tpu.matmul %450, %451, %cst {dimension_numbers = #tpu.dot_dimension_numbers<[1], [0], [0], [1], [0, 0, 1, 1], [], []>} : vector<64x4xbf16>, vector<4x128xbf16>, vector<64x128xf32> -> vector<64x128xf32>
    %c0_196 = arith.constant 0 : index
    %c0_197 = arith.constant 0 : index
    %453 = vector.load %arg6[%c0_196, %c0_197] : memref<1x128xf32, #tpu.memory_space<vmem>>, vector<1x128xf32>
    %454 = vector.broadcast %453 : vector<1x128xf32> to vector<64x128xf32>
    %455 = arith.addf %452, %454 : vector<64x128xf32>
    %cst_198 = arith.constant 0.000000e+00 : f32
    %456 = vector.broadcast %cst_198 : f32 to vector<64x128xf32>
    %457 = arith.maximumf %455, %456 : vector<64x128xf32>
    %458 = arith.truncf %457 : vector<64x128xf32> to vector<64x128xbf16>
    %c0_199 = arith.constant 0 : index
    %c0_200 = arith.constant 0 : index
    %459 = vector.load %arg7[%c0_199, %c0_200] : memref<128x32xbf16, #tpu.memory_space<vmem>>, vector<128x32xbf16>
    %cst_201 = arith.constant dense<0.000000e+00> : vector<64x32xf32>
    %460 = tpu.matmul %458, %459, %cst_201 {dimension_numbers = #tpu.dot_dimension_numbers<[1], [0], [0], [1], [0, 0, 1, 1], [], []>} : vector<64x128xbf16>, vector<128x32xbf16>, vector<64x32xf32> -> vector<64x32xf32>
    %c0_202 = arith.constant 0 : index
    %c0_203 = arith.constant 0 : index
    %461 = vector.load %arg8[%c0_202, %c0_203] : memref<1x32xf32, #tpu.memory_space<vmem>>, vector<1x32xf32>
    %462 = vector.broadcast %461 : vector<1x32xf32> to vector<64x32xf32>
    %463 = arith.addf %460, %462 : vector<64x32xf32>
    %464 = arith.mulf %463, %463 : vector<64x32xf32>
    %cst_204 = arith.constant dense<0.000000e+00> : vector<64xf32>
    %465 = vector.multi_reduction <add>, %464, %cst_204 [1] : vector<64x32xf32> to vector<64xf32>
    %466 = vector.shape_cast %465 : vector<64xf32> to vector<64x1xf32>
    %cst_205 = arith.constant 9.99999996E-13 : f32
    %467 = vector.broadcast %cst_205 : f32 to vector<64x1xf32>
    %468 = arith.addf %466, %467 : vector<64x1xf32>
    %469 = math.rsqrt %468 : vector<64x1xf32>
    %470 = vector.broadcast %469 : vector<64x1xf32> to vector<64x32xf32>
    %471 = arith.mulf %463, %470 : vector<64x32xf32>
    %472 = vector.shape_cast %471 : vector<64x32xf32> to vector<1x64x32xf32>
    %c0_206 = arith.constant 0 : index
    %c0_207 = arith.constant 0 : index
    %c0_208 = arith.constant 0 : index
    %473 = vector.load %arg9[%c0_206, %c0_207, %c0_208] : memref<1x64x32xf32, #tpu.memory_space<vmem>>, vector<1x64x32xf32>
    tpu.vector_store %arg9[%c0_206, %c0_207, %c0_208], %472 {strides = array<i32>} : memref<1x64x32xf32, #tpu.memory_space<vmem>>, vector<1x64x32xf32>,
    return
  }
  func.func @transform_0(%arg0: i32, %arg1: i32, %arg2: i32, %arg3: memref<64xi32, #tpu.memory_space<smem>>) -> (i32, i32, i32) {
    %c0_i32 = arith.constant 0 : i32
    %c0_i32_0 = arith.constant 0 : i32
    return %arg0, %arg2, %c0_i32 : i32, i32, i32
  }
  func.func @transform_1(%arg0: i32, %arg1: i32, %arg2: i32, %arg3: memref<64xi32, #tpu.memory_space<smem>>) -> (i32, i32) {
    %c0_i32 = arith.constant 0 : i32
    %c0_i32_0 = arith.constant 0 : i32
    %c0_i32_1 = arith.constant 0 : i32
    return %c0_i32, %c0_i32_0 : i32, i32
  }
  func.func @transform_2(%arg0: i32, %arg1: i32, %arg2: i32, %arg3: memref<64xi32, #tpu.memory_space<smem>>) -> (i32, i32) {
    %c0_i32 = arith.constant 0 : i32
    %c0_i32_0 = arith.constant 0 : i32
    %c0_i32_1 = arith.constant 0 : i32
    return %c0_i32, %c0_i32_0 : i32, i32
  }
  func.func @transform_3(%arg0: i32, %arg1: i32, %arg2: i32, %arg3: memref<64xi32, #tpu.memory_space<smem>>) -> (i32, i32) {
    %c0_i32 = arith.constant 0 : i32
    %c0_i32_0 = arith.constant 0 : i32
    %c0_i32_1 = arith.constant 0 : i32
    return %c0_i32, %c0_i32_0 : i32, i32
  }
  func.func @transform_4(%arg0: i32, %arg1: i32, %arg2: i32, %arg3: memref<64xi32, #tpu.memory_space<smem>>) -> (i32, i32) {
    %c0_i32 = arith.constant 0 : i32
    %c0_i32_0 = arith.constant 0 : i32
    %c0_i32_1 = arith.constant 0 : i32
    return %c0_i32, %c0_i32_0 : i32, i32
  }
  func.func @transform_5(%arg0: i32, %arg1: i32, %arg2: i32, %arg3: memref<64xi32, #tpu.memory_space<smem>>) -> (i32, i32, i32) {
    %c0_i32 = arith.constant 0 : i32
    %c0_i32_0 = arith.constant 0 : i32
    return %arg0, %arg1, %c0_i32 : i32, i32, i32
  }
}

</mosaic_0001>

<bundles_post_ra>
// kernel: _lambda_.2
= control target key start
LH: loop header
LB: loop body
LE: loop exit
PB: predicated region body
PF: predicated region fallthrough
CT: control target
= control target key end

     0   :  { %s1735_s0 = inlined_call_operand.vmem [shape: s32[64], index: 0, kind: input, shape index: {}]   ;;  %s1736_s1 = inlined_call_operand.vmem [shape: f32[2,256,4], index: 1, kind: input, shape index: {}]   ;;  %s1737_s2 = inlined_call_operand.vmem [shape: bf16[4,128], index: 2, kind: input, shape index: {}]   ;;  %s1738_s3 = inlined_call_operand.vmem [shape: f32[1,128], index: 3, kind: input, shape index: {}]   ;;  %s1739_s4 = inlined_call_operand.vmem [shape: bf16[128,32], index: 4, kind: input, shape index: {}]   ;;  %s1740_s5 = inlined_call_operand.vmem [shape: f32[1,32], index: 5, kind: input, shape index: {}]   ;;  %s1741_s6 = inlined_call_operand.vmem [shape: f32[2,64,32], index: 6, kind: output, shape index: {}]  }
   0x1   :  { %s11_s23 = sshll.u32 %s1735_s0, 4  ;;  %s12_s23 = int_to_ptr.vmem [resolvable:$true] %s11_s23 }
   0x2   :  { %s1276_s24 = scalar_lea.vmem %s12_s23, 16  ;;  %p1281_p1 = scmp.lt.s32.totalorder %s12_s23, %s12_s23 }
   0x3   :  { %p1277_p0 = scmp.ne.s32.totalorder %s12_s23, %s1276_s24  ;;  %p1282_p2 = scmp.lt.s32.totalorder %s1276_s24, %s1276_s24 }
   0x5   :  { %p1283_p3 = por %p1282_p2, %p1281_p1 }
   0x7   :  { %p1284_p4 = pnand %p1283_p3, %p1277_p0 }
   0x9   :  { %1287 = shalt.err (!%p1284_p4)  }
   0xa   :  { %s1314_s25 = smov [#allocation4]  }
   0xb   :  { %14 = dma.vmem_to_smem %s12_s23, 16, %s1314_s25, [#allocation3] }
   0xc   :  { %1300 = dma.done.wait [#allocation3], 16 }
   0xd   :  { %1301 = vsyncadd [#allocation3], 4294967280 }
   0xe   :  { %16 = sfence }
   0xf   :  { %s1353_s26 = smov 0   ;;  %s1355_s27 = smov 0  }
  0x10   :  { %s1357_s28 = smov 0  }
  0x11 LB: > { %s41_s0 = sadd.s32 1, %s1308_s27  ;;  %p1073_p5 = scmp.ge.s32.totalorder %s1312_s28, 1  ;;  %s1312_s28 = sphi %s1357_s28, %s22_s28   ;;  %s1308_s27 = sphi %s1355_s27, %s1743_s27   ;;  %s1304_s26 = sphi %s1353_s26, %s1742_s26  }
  0x12   : > { %p43_p6 = scmp.ge.s32.totalorder %s41_s0, 2  ;;  %p222_p7 = scmp.lt.s32.totalorder %s1312_s28, 3 }
  0x14   : > { %s1745_s0 = smov (%p43_p6, %s41_s0), 0  ;;  %p223_p8 = pnand %p1073_p5, %p222_p7 }
  0x15   : > { %v612_v0 = vld [vmem:[%s1737_s2] sm:$0x3] (!%p223_p8)  ;;  %vm633_vm0 = vcmask (!%p223_p8), 1041408   ;;  %p259_p9 = scmp.lt.s32.totalorder (!%p223_p8), %s1304_s26, 1  ;;  %s280_s7 = sld [smem:[#allocation4]] (!%p223_p8)  ;;  %vm283_vm1 = vcmask (!%p223_p8), 24576  }
  0x16   : > { %226 = sbr.rel (%p223_p8) target bundleno = 713 (0x2c9), region = 40  ;;  %1226 = vmatprep.subr.msk.bf16.mxu0 (!%p223_p8), %vm633_vm0, %v612_v0  ;;  %v635_v1 = vsel (!%p223_p8), %vm633_vm0, %v612_v0, 0  ;;  %s1078_s8 = sld [smem:[#allocation4 + $0x1]] (!%p223_p8)  ;;  %v1379_v2 = vld [vmem:[%s1739_s4] sm:$0xff] (!%p223_p8)   ;;  %v1387_v3 = vld [vmem:[%s1739_s4 + $0x8] sm:$0xff] (!%p223_p8)   ;;  %v1415_v7 = vld [vmem:[%s1739_s4 + $0x10] sm:$0xff] (!%p223_p8)  }
  0x17   : > { %s1079_s9 = sld [smem:[#allocation4 + $0x2]] (!%p223_p8)  ;;  %1177 = vmatpush3.bf16.msra.mxu0 (!%p223_p8), %v635_v1  ;;  %s1080_s10 = sld [smem:[#allocation4 + $0x3]] (!%p223_p8)  ;;  %1210 = vmatprep.subr.bf16.mxu1 (!%p223_p8), %v1379_v2  ;;  %v1429_v11 = vld [vmem:[%s1739_s4 + $0x18] sm:$0xff] (!%p223_p8)   ;;  %v1449_v15 = vld [vmem:[%s1739_s4 + $0x20] sm:$0xff] (!%p223_p8)   ;;  %v1483_v22 = vld [vmem:[%s1739_s4 + $0x28] sm:$0xff] (!%p223_p8)   ;;  %vm620_vm2 = vcmask (!%p223_p8), 31744  }
  0x18   : > { %s1081_s11 = sld [smem:[#allocation4 + $0x4]] (!%p223_p8)  ;;  %s1382_s15 = sld [smem:[#allocation4 + $0x5]] (!%p223_p8)  ;;  %1186 = vmatprep.subr.bf16.mxu0 (!%p223_p8), %v1379_v2  ;;  %1218 = vmatpush3.bf16.msra.mxu1 (!%p223_p8), %v1379_v2  ;;  %vm858_vm3 = vcmask (!%p223_p8), 261120  }
  0x19   : > { %s1394_s21 = sld [smem:[#allocation4 + $0x6]] (!%p223_p8)  ;;  %s1399_s23 = sld [smem:[#allocation4 + $0x7]] (!%p223_p8)  ;;  %1211 = vmatprep.subr.bf16.mxu1 (!%p223_p8), %v1387_v3 }
  0x1a   : > { %s1406_s29 = sld [smem:[#allocation4 + $0x8]] (!%p223_p8)  ;;  %s1088_s17 = sld [smem:[#allocation4 + $0xb]] (!%p223_p8) }
  0x1b   : > { %s1089_s18 = sld [smem:[#allocation4 + $0xc]] (!%p223_p8)  ;;  %s1090_s19 = sld [smem:[#allocation4 + $0xd]] (!%p223_p8) }
  0x1c   : > { %1219 = vmatpush3.bf16.msra.mxu1 (!%p223_p8), %v1387_v3  ;;  %s1458_s13 = sld [smem:[#allocation4 + $0x12]] (!%p223_p8)  ;;  %s1472_s16 = sld [smem:[#allocation4 + $0x14]] (!%p223_p8) }
  0x1d   : > { %s1747_s26 = smov (!%p259_p9, %s1304_s26), 1  ;;  %1212 = vmatprep.subr.bf16.mxu1 %v1415_v7 }
  0x1e   : > { %s1157_s14 = sshll.u32 %s1747_s26, 8 }
  0x1f   : > { %s1392_s20 = scalar_lea.vmem %s1736_s1, %s1157_s14 }
  0x20   : > { %s281_s22 = scalar_lea.vmem %s1392_s20, %s280_s7  ;;  %s287_s24 = scalar_lea.vmem %s1392_s20, %s1078_s8  ;;  %1220 = vmatpush3.bf16.msra.mxu1 %v1415_v7 }
  0x21   : > { %v282_v4 = vld [vmem:[%s281_s22] sm:$0x1]  ;;  %s292_s25 = scalar_lea.vmem %s1392_s20, %s1079_s9  ;;  %s297_s30 = scalar_lea.vmem %s1392_s20, %s1080_s10  ;;  %1213 = vmatprep.subr.bf16.mxu1 %v1429_v11 }
  0x22   : > { %284 = vst.msk [vmem:[#allocation2] sm:$0x1] %vm283_vm1, %v282_v4  ;;  %v288_v5 = vld [vmem:[%s287_s24] sm:$0x1]  ;;  %s302_s7 = scalar_lea.vmem %s1392_s20, %s1081_s11  ;;  %s307_s8 = scalar_lea.vmem %s1392_s20, %s1382_s15 }
  0x23   : > { %v293_v6 = vld [vmem:[%s292_s25] sm:$0x1]  ;;  %289 = vst.msk [vmem:[#allocation2 + $0x1] sm:$0x1] %vm283_vm1, %v288_v5  ;;  %s1419_s9 = sld [smem:[#allocation4 + $0x9]]  ;;  %s312_s10 = scalar_lea.vmem %s1392_s20, %s1394_s21 }
  0x24   : > { %294 = vst.msk [vmem:[#allocation2 + $0x2] sm:$0x1] %vm283_vm1, %v293_v6  ;;  %v298_v8 = vld [vmem:[%s297_s30] sm:$0x1]  ;;  %s1087_s11 = sld [smem:[#allocation4 + $0xa]]  ;;  %s317_s15 = scalar_lea.vmem %s1392_s20, %s1399_s23  ;;  %1221 = vmatpush3.bf16.msra.mxu1 %v1429_v11 }
  0x25   : > { %v303_v9 = vld [vmem:[%s302_s7] sm:$0x1]  ;;  %299 = vst.msk [vmem:[#allocation2 + $0x3] sm:$0x1] %vm283_vm1, %v298_v8  ;;  %s322_s21 = scalar_lea.vmem %s1392_s20, %s1406_s29  ;;  %s1439_s22 = sld [smem:[#allocation4 + $0xe]]  ;;  %1214 = vmatprep.subr.bf16.mxu1 %v1449_v15 }
  0x26   : > { %304 = vst.msk [vmem:[#allocation2 + $0x4] sm:$0x1] %vm283_vm1, %v303_v9  ;;  %v308_v10 = vld [vmem:[%s307_s8] sm:$0x1]  ;;  %s1442_s24 = sld [smem:[#allocation4 + $0xf]]  ;;  %s1444_s23 = sld [smem:[#allocation4 + $0x10]] }
  0x27   : > { %309 = vst.msk [vmem:[#allocation2 + $0x5] sm:$0x1] %vm283_vm1, %v308_v10  ;;  %v313_v12 = vld [vmem:[%s312_s10] sm:$0x1]  ;;  %s1455_s7 = sld [smem:[#allocation4 + $0x11]]  ;;  %s337_s8 = scalar_lea.vmem %s1392_s20, %s1088_s17 }
  0x28   : > { %314 = vst.msk [vmem:[#allocation2 + $0x6] sm:$0x1] %vm283_vm1, %v313_v12  ;;  %v318_v13 = vld [vmem:[%s317_s15] sm:$0x1]  ;;  %s1462_s10 = sld [smem:[#allocation4 + $0x13]]  ;;  %s347_s14 = scalar_lea.vmem %s1392_s20, %s1090_s19  ;;  %1222 = vmatpush3.bf16.msra.mxu1 %v1449_v15 }
  0x29   : > { %319 = vst.msk [vmem:[#allocation2 + $0x7] sm:$0x1] %vm283_vm1, %v318_v13  ;;  %v323_v14 = vld [vmem:[%s322_s21] sm:$0x1]  ;;  %s327_s29 = scalar_lea.vmem %s1392_s20, %s1419_s9  ;;  %s342_s9 = scalar_lea.vmem %s1392_s20, %s1089_s18  ;;  %1215 = vmatprep.subr.bf16.mxu1 %v1483_v22 }
  0x2a   : > { %324 = vst.msk [vmem:[#allocation2 + $0x8] sm:$0x1] %vm283_vm1, %v323_v14  ;;  %v328_v16 = vld [vmem:[%s327_s29] sm:$0x1]  ;;  %s332_s12 = scalar_lea.vmem %s1392_s20, %s1087_s11  ;;  %s1100_s30 = sld [smem:[#allocation4 + $0x17]] }
  0x2b   : > { %329 = vst.msk [vmem:[#allocation2 + $0x9] sm:$0x1] %vm283_vm1, %v328_v16  ;;  %v333_v17 = vld [vmem:[%s332_s12] sm:$0x1]  ;;  %s352_s11 = scalar_lea.vmem %s1392_s20, %s1439_s22  ;;  %s1098_s22 = sld [smem:[#allocation4 + $0x15]] }
  0x2c   : > { %334 = vst.msk [vmem:[#allocation2 + $0xa] sm:$0x1] %vm283_vm1, %v333_v17  ;;  %v338_v18 = vld [vmem:[%s337_s8] sm:$0x1]  ;;  %s357_s15 = scalar_lea.vmem %s1392_s20, %s1442_s24  ;;  %s362_s17 = scalar_lea.vmem %s1392_s20, %s1444_s23  ;;  %1223 = vmatpush3.bf16.msra.mxu1 %v1483_v22 }
  0x2d   : > { %339 = vst.msk [vmem:[#allocation2 + $0xb] sm:$0x1] %vm283_vm1, %v338_v18  ;;  %v343_v19 = vld [vmem:[%s342_s9] sm:$0x1]  ;;  %s367_s21 = scalar_lea.vmem %s1392_s20, %s1455_s7  ;;  %s372_s24 = scalar_lea.vmem %s1392_s20, %s1458_s13 }
  0x2e   : > { %v348_v20 = vld [vmem:[%s347_s14] sm:$0x1]  ;;  %344 = vst.msk [vmem:[#allocation2 + $0xc] sm:$0x1] %vm283_vm1, %v343_v19  ;;  %s1099_s23 = sld [smem:[#allocation4 + $0x16]]  ;;  %s377_s25 = scalar_lea.vmem %s1392_s20, %s1462_s10 }
  0x2f   : > { %349 = vst.msk [vmem:[#allocation2 + $0xd] sm:$0x1] %vm283_vm1, %v348_v20  ;;  %v353_v21 = vld [vmem:[%s352_s11] sm:$0x1]  ;;  %s1101_s29 = sld [smem:[#allocation4 + $0x18]]  ;;  %s1102_s7 = sld [smem:[#allocation4 + $0x19]] }
  0x30   : > { %354 = vst.msk [vmem:[#allocation2 + $0xe] sm:$0x1] %vm283_vm1, %v353_v21  ;;  %v358_v23 = vld [vmem:[%s357_s15] sm:$0x1]  ;;  %s382_s12 = scalar_lea.vmem %s1392_s20, %s1472_s16  ;;  %s1501_s8 = sld [smem:[#allocation4 + $0x1a]]  ;;  %v1258_v20 = vld [vmem:[%s1739_s4 + $0x30] sm:$0xff]  }
  0x31   : > { %v363_v24 = vld [vmem:[%s362_s17] sm:$0x1]  ;;  %359 = vst.msk [vmem:[#allocation2 + $0xf] sm:$0x1] %vm283_vm1, %v358_v23  ;;  %s1504_s13 = sld [smem:[#allocation4 + $0x1b]]  ;;  %s1506_s9 = sld [smem:[#allocation4 + $0x1c]]  ;;  %1216 = vmatprep.subr.bf16.mxu1 %v1258_v20 }
  0x32   : > { %364 = vst.msk [vmem:[#allocation2 + $0x10] sm:$0x1] %vm283_vm1, %v363_v24  ;;  %v368_v25 = vld [vmem:[%s367_s21] sm:$0x1]  ;;  %s387_s10 = scalar_lea.vmem %s1392_s20, %s1098_s22  ;;  %s1510_s14 = sld [smem:[#allocation4 + $0x1d]]  ;;  %v1259_v21 = vld [vmem:[%s1739_s4 + $0x38] sm:$0xff]   ;;  %1224 = vmatpush3.bf16.msra.mxu1 %v1258_v20 }
  0x33   : > { %369 = vst.msk [vmem:[#allocation2 + $0x11] sm:$0x1] %vm283_vm1, %v368_v25  ;;  %v373_v26 = vld [vmem:[%s372_s24] sm:$0x1]  ;;  %s1513_s16 = sld [smem:[#allocation4 + $0x1e]]  ;;  %s397_s15 = scalar_lea.vmem %s1392_s20, %s1100_s30  ;;  %1217 = vmatprep.subr.bf16.mxu1 %v1259_v21 }
  0x34   : > { %374 = vst.msk [vmem:[#allocation2 + $0x12] sm:$0x1] %vm283_vm1, %v373_v26  ;;  %v378_v27 = vld [vmem:[%s377_s25] sm:$0x1]  ;;  %s392_s11 = scalar_lea.vmem %s1392_s20, %s1099_s23  ;;  %s1517_s17 = sld [smem:[#allocation4 + $0x1f]] }
  0x35   : > { %379 = vst.msk [vmem:[#allocation2 + $0x13] sm:$0x1] %vm283_vm1, %v378_v27  ;;  %v383_v28 = vld [vmem:[%s382_s12] sm:$0x1]  ;;  %s402_s18 = scalar_lea.vmem %s1392_s20, %s1101_s29  ;;  %s407_s19 = scalar_lea.vmem %s1392_s20, %s1102_s7 }
  0x36   : > { %v600_v29 = vld [vmem:[#allocation2] sm:$0xff]  ;;  %384 = vst.msk [vmem:[#allocation2 + $0x14] sm:$0x1] %vm283_vm1, %v383_v28  ;;  %s412_s21 = scalar_lea.vmem %s1392_s20, %s1501_s8  ;;  %s1109_s22 = sld [smem:[#allocation4 + $0x20]]  ;;  %1225 = vmatpush3.bf16.msra.mxu1 %v1259_v21 }
  0x37   : > { %v388_v30 = vld [vmem:[%s387_s10] sm:$0x1]  ;;  %s417_s24 = scalar_lea.vmem %s1392_s20, %s1504_s13  ;;  %s422_s23 = scalar_lea.vmem %s1392_s20, %s1506_s9 }
  0x38   : > { %v601_v31 = vld [vmem:[#allocation2 + $0x8] sm:$0xff]  ;;  %389 = vst.msk [vmem:[#allocation2 + $0x15] sm:$0x1] %vm283_vm1, %v388_v30  ;;  %v393_v32 = vld [vmem:[%s392_s11] sm:$0x1]  ;;  %s427_s25 = scalar_lea.vmem %s1392_s20, %s1510_s14  ;;  %s1110_s30 = sld [smem:[#allocation4 + $0x21]] }
  0x39   : > { %v608_v33 = vpack.c.bf16 %v601_v31, %v600_v29  ;;  %394 = vst.msk [vmem:[#allocation2 + $0x16] sm:$0x1] %vm283_vm1, %v393_v32  ;;  %v398_v34 = vld [vmem:[%s397_s15] sm:$0x1]  ;;  %s432_s29 = scalar_lea.vmem %s1392_s20, %s1513_s16  ;;  %s1111_s7 = sld [smem:[#allocation4 + $0x22]] }
  0x3a   : > { %399 = vst.msk [vmem:[#allocation2 + $0x17] sm:$0x1] %vm283_vm1, %v398_v34  ;;  %v403_v35 = vld [vmem:[%s402_s18] sm:$0x1]  ;;  %s437_s12 = scalar_lea.vmem %s1392_s20, %s1517_s17  ;;  %s1112_s8 = sld [smem:[#allocation4 + $0x23]] }
  0x3b   : > { %v408_v36 = vld [vmem:[%s407_s19] sm:$0x1]  ;;  %1178 = vmatprep.mubr.msk.bf16.mxu0 %vm620_vm2, %v608_v33  ;;  %404 = vst.msk [vmem:[#allocation2 + $0x18] sm:$0x1] %vm283_vm1, %v403_v35  ;;  %s1113_s13 = sld [smem:[#allocation4 + $0x24]]  ;;  %s1114_s9 = sld [smem:[#allocation4 + $0x25]] }
  0x3c   : > { %409 = vst.msk [vmem:[#allocation2 + $0x19] sm:$0x1] %vm283_vm1, %v408_v36  ;;  %v413_v37 = vld [vmem:[%s412_s21] sm:$0x1]  ;;  %s442_s10 = scalar_lea.vmem %s1392_s20, %s1109_s22  ;;  %s1115_s14 = sld [smem:[#allocation4 + $0x26]] }
  0x3d   : > { %414 = vst.msk [vmem:[#allocation2 + $0x1a] sm:$0x1] %vm283_vm1, %v413_v37  ;;  %v418_v38 = vld [vmem:[%s417_s24] sm:$0x1]  ;;  %s1545_s11 = sld [smem:[#allocation4 + $0x27]]  ;;  %s1549_s15 = sld [smem:[#allocation4 + $0x28]] }
  0x3e   : > { %v423_v39 = vld [vmem:[%s422_s23] sm:$0x1]  ;;  %419 = vst.msk [vmem:[#allocation2 + $0x1b] sm:$0x1] %vm283_vm1, %v418_v38  ;;  %s447_s16 = scalar_lea.vmem %s1392_s20, %s1110_s30  ;;  %s1552_s18 = sld [smem:[#allocation4 + $0x29]] }
  0x3f   : > { %424 = vst.msk [vmem:[#allocation2 + $0x1c] sm:$0x1] %vm283_vm1, %v423_v39  ;;  %v428_v40 = vld [vmem:[%s427_s25] sm:$0x1]  ;;  %s452_s17 = scalar_lea.vmem %s1392_s20, %s1111_s7  ;;  %s1556_s21 = sld [smem:[#allocation4 + $0x2a]] }
  0x40   : > { %429 = vst.msk [vmem:[#allocation2 + $0x1d] sm:$0x1] %vm283_vm1, %v428_v40  ;;  %v433_v41 = vld [vmem:[%s432_s29] sm:$0x1]  ;;  %s457_s19 = scalar_lea.vmem %s1392_s20, %s1112_s8  ;;  %s1563_s25 = sld [smem:[#allocation4 + $0x2b]] }
  0x41   : > { %434 = vst.msk [vmem:[#allocation2 + $0x1e] sm:$0x1] %vm283_vm1, %v433_v41  ;;  %v438_v42 = vld [vmem:[%s437_s12] sm:$0x1]  ;;  %v602_v46 = vld [vmem:[#allocation2 + $0x10] sm:$0xff]  ;;  %s462_s22 = scalar_lea.vmem %s1392_s20, %s1113_s13  ;;  %s467_s24 = scalar_lea.vmem %s1392_s20, %s1114_s9 }
  0x42   : > { %439 = vst.msk [vmem:[#allocation2 + $0x1f] sm:$0x1] %vm283_vm1, %v438_v42  ;;  %v443_v43 = vld [vmem:[%s442_s10] sm:$0x1]  ;;  %s472_s23 = scalar_lea.vmem %s1392_s20, %s1115_s14  ;;  %s1121_s29 = sld [smem:[#allocation4 + $0x2c]] }
  0x43   : > { %444 = vst.msk [vmem:[#allocation2 + $0x20] sm:$0x1] %vm283_vm1, %v443_v43  ;;  %v448_v44 = vld [vmem:[%s447_s16] sm:$0x1]  ;;  %s477_s30 = scalar_lea.vmem %s1392_s20, %s1545_s11  ;;  %s482_s7 = scalar_lea.vmem %s1392_s20, %s1549_s15 }
  0x44   : > { %449 = vst.msk [vmem:[#allocation2 + $0x21] sm:$0x1] %vm283_vm1, %v448_v44  ;;  %v453_v45 = vld [vmem:[%s452_s17] sm:$0x1]  ;;  %s1122_s12 = sld [smem:[#allocation4 + $0x2d]]  ;;  %s487_s8 = scalar_lea.vmem %s1392_s20, %s1552_s18 }
  0x45   : > { %454 = vst.msk [vmem:[#allocation2 + $0x22] sm:$0x1] %vm283_vm1, %v453_v45  ;;  %v458_v47 = vld [vmem:[%s457_s19] sm:$0x1]  ;;  %s1123_s13 = sld [smem:[#allocation4 + $0x2e]]  ;;  %s492_s9 = scalar_lea.vmem %s1392_s20, %s1556_s21 }
  0x46   : > { %459 = vst.msk [vmem:[#allocation2 + $0x23] sm:$0x1] %vm283_vm1, %v458_v47  ;;  %v463_v48 = vld [vmem:[%s462_s22] sm:$0x1]  ;;  %s1124_s10 = sld [smem:[#allocation4 + $0x2f]]  ;;  %s1580_s14 = sld [smem:[#allocation4 + $0x30]] }
  0x47   : > { %v468_v49 = vld [vmem:[%s467_s24] sm:$0x1]  ;;  %464 = vst.msk [vmem:[#allocation2 + $0x24] sm:$0x1] %vm283_vm1, %v463_v48  ;;  %s1582_s11 = sld [smem:[#allocation4 + $0x31]]  ;;  %s497_s16 = scalar_lea.vmem %s1392_s20, %s1563_s25 }
  0x48   : > { %469 = vst.msk [vmem:[#allocation2 + $0x25] sm:$0x1] %vm283_vm1, %v468_v49  ;;  %v473_v51 = vld [vmem:[%s472_s23] sm:$0x1]  ;;  %s1588_s15 = sld [smem:[#allocation4 + $0x32]]  ;;  %s502_s17 = scalar_lea.vmem %s1392_s20, %s1121_s29 }
  0x49   : > { %v603_v50 = vld [vmem:[#allocation2 + $0x18] sm:$0xff]  ;;  %474 = vst.msk [vmem:[#allocation2 + $0x26] sm:$0x1] %vm283_vm1, %v473_v51  ;;  %v478_v53 = vld [vmem:[%s477_s30] sm:$0x1]  ;;  %s1592_s18 = sld [smem:[#allocation4 + $0x33]] }
  0x4a   : > { %v609_v52 = vpack.c.bf16 %v603_v50, %v602_v46  ;;  %479 = vst.msk [vmem:[#allocation2 + $0x27] sm:$0x1] %vm283_vm1, %v478_v53  ;;  %v483_v54 = vld [vmem:[%s482_s7] sm:$0x1]  ;;  %s507_s19 = scalar_lea.vmem %s1392_s20, %s1122_s12  ;;  %s1596_s21 = sld [smem:[#allocation4 + $0x34]] }
  0x4b   : > { %484 = vst.msk [vmem:[#allocation2 + $0x28] sm:$0x1] %vm283_vm1, %v483_v54  ;;  %v488_v55 = vld [vmem:[%s487_s8] sm:$0x1]  ;;  %s512_s22 = scalar_lea.vmem %s1392_s20, %s1123_s13  ;;  %s1600_s24 = sld [smem:[#allocation4 + $0x35]] }
  0x4c   : > { %1179 = vmatmul.mubr.msk.bf16.vlgmr.msra.gmra.mrb[0].mxu0 %vm620_vm2, %v609_v52  ;;  %489 = vst.msk [vmem:[#allocation2 + $0x29] sm:$0x1] %vm283_vm1, %v488_v55  ;;  %v493_v56 = vld [vmem:[%s492_s9] sm:$0x1]  ;;  %s517_s23 = scalar_lea.vmem %s1392_s20, %s1124_s10  ;;  %s1605_s25 = sld [smem:[#allocation4 + $0x36]] }
  0x4d   : > { %1187 = vmatpush3.bf16.msra.mxu0 %v1379_v2  ;;  %494 = vst.msk [vmem:[#allocation2 + $0x2a] sm:$0x1] %vm283_vm1, %v493_v56  ;;  %v498_v57 = vld [vmem:[%s497_s16] sm:$0x1]  ;;  %s522_s30 = scalar_lea.vmem %s1392_s20, %s1580_s14  ;;  %s527_s29 = scalar_lea.vmem %s1392_s20, %s1582_s11 }
  0x4e   : > { %1188 = vmatprep.subr.bf16.mxu0 %v1387_v3  ;;  %499 = vst.msk [vmem:[#allocation2 + $0x2b] sm:$0x1] %vm283_vm1, %v498_v57  ;;  %v503_v58 = vld [vmem:[%s502_s17] sm:$0x1]  ;;  %s532_s7 = scalar_lea.vmem %s1392_s20, %s1588_s15  ;;  %s1616_s12 = sld [smem:[#allocation4 + $0x37]] }
  0x4f   : > { %504 = vst.msk [vmem:[#allocation2 + $0x2c] sm:$0x1] %vm283_vm1, %v503_v58  ;;  %v508_v59 = vld [vmem:[%s507_s19] sm:$0x1]  ;;  %s537_s8 = scalar_lea.vmem %s1392_s20, %s1592_s18  ;;  %s1622_s13 = sld [smem:[#allocation4 + $0x38]] }
  0x50   : > { %509 = vst.msk [vmem:[#allocation2 + $0x2d] sm:$0x1] %vm283_vm1, %v508_v59  ;;  %v513_v60 = vld [vmem:[%s512_s22] sm:$0x1]  ;;  %s542_s9 = scalar_lea.vmem %s1392_s20, %s1596_s21  ;;  %s1628_s10 = sld [smem:[#allocation4 + $0x39]] }
  0x51   : > { %1189 = vmatpush3.bf16.msra.mxu0 %v1387_v3  ;;  %514 = vst.msk [vmem:[#allocation2 + $0x2e] sm:$0x1] %vm283_vm1, %v513_v60  ;;  %v518_v61 = vld [vmem:[%s517_s23] sm:$0x1]  ;;  %s547_s14 = scalar_lea.vmem %s1392_s20, %s1600_s24  ;;  %s1634_s11 = sld [smem:[#allocation4 + $0x3a]] }
  0x52   : > { %1190 = vmatprep.subr.bf16.mxu0 %v1415_v7  ;;  %519 = vst.msk [vmem:[#allocation2 + $0x2f] sm:$0x1] %vm283_vm1, %v518_v61  ;;  %v523_v62 = vld [vmem:[%s522_s30] sm:$0x1]  ;;  %s552_s16 = scalar_lea.vmem %s1392_s20, %s1605_s25  ;;  %s1136_s15 = sld [smem:[#allocation4 + $0x3b]] }
  0x53   : > { %v528_v63 = vld [vmem:[%s527_s29] sm:$0x1]  ;;  %524 = vst.msk [vmem:[#allocation2 + $0x30] sm:$0x1] %vm283_vm1, %v523_v62  ;;  %s1640_s17 = sld [smem:[#allocation4 + $0x3c]]  ;;  %s1642_s18 = sld [smem:[#allocation4 + $0x3d]] }
  0x54   : > { %529 = vst.msk [vmem:[#allocation2 + $0x31] sm:$0x1] %vm283_vm1, %v528_v63  ;;  %v533_v0 = vld [vmem:[%s532_s7] sm:$0x1]  ;;  %s557_s19 = scalar_lea.vmem %s1392_s20, %s1616_s12  ;;  %s1648_s21 = sld [smem:[#allocation4 + $0x3e]] }
  0x55   : > { %1191 = vmatpush3.bf16.msra.mxu0 %v1415_v7  ;;  %534 = vst.msk [vmem:[#allocation2 + $0x32] sm:$0x1] %vm283_vm1, %v533_v0  ;;  %v538_v1 = vld [vmem:[%s537_s8] sm:$0x1]  ;;  %s562_s22 = scalar_lea.vmem %s1392_s20, %s1622_s13  ;;  %s1140_s24 = sld [smem:[#allocation4 + $0x3f]] }
  0x56   : > { %1192 = vmatprep.subr.bf16.mxu0 %v1429_v11  ;;  %539 = vst.msk [vmem:[#allocation2 + $0x33] sm:$0x1] %vm283_vm1, %v538_v1  ;;  %v543_v2 = vld [vmem:[%s542_s9] sm:$0x1]  ;;  %s567_s23 = scalar_lea.vmem %s1392_s20, %s1628_s10 }
  0x57   : > { %v604_v3 = vld [vmem:[#allocation2 + $0x20] sm:$0xff]  ;;  %544 = vst.msk [vmem:[#allocation2 + $0x34] sm:$0x1] %vm283_vm1, %v543_v2  ;;  %s572_s25 = scalar_lea.vmem %s1392_s20, %s1634_s11 }
  0x58   : > { %v548_v4 = vld [vmem:[%s547_s14] sm:$0x1]  ;;  %s577_s30 = scalar_lea.vmem %s1392_s20, %s1136_s15 }
  0x59   : > { %549 = vst.msk [vmem:[#allocation2 + $0x35] sm:$0x1] %vm283_vm1, %v548_v4  ;;  %v553_v5 = vld [vmem:[%s552_s16] sm:$0x1]  ;;  %1193 = vmatpush3.bf16.msra.mxu0 %v1429_v11  ;;  %v605_v6 = vld [vmem:[#allocation2 + $0x28] sm:$0xff]  ;;  %s582_s29 = scalar_lea.vmem %s1392_s20, %s1640_s17  ;;  %s587_s7 = scalar_lea.vmem %s1392_s20, %s1642_s18 }
  0x5a   : > { %554 = vst.msk [vmem:[#allocation2 + $0x36] sm:$0x1] %vm283_vm1, %v553_v5  ;;  %1194 = vmatprep.subr.bf16.mxu0 %v1449_v15  ;;  %v558_v7 = vld [vmem:[%s557_s19] sm:$0x1]  ;;  %v610_v8 = vpack.c.bf16 %v605_v6, %v604_v3  ;;  %s592_s12 = scalar_lea.vmem %s1392_s20, %s1648_s21  ;;  %s1158_s17 = sshll.u32 %s1747_s26, 6 }
  0x5b   : > { %559 = vst.msk [vmem:[#allocation2 + $0x37] sm:$0x1] %vm283_vm1, %v558_v7  ;;  %v563_v9 = vld [vmem:[%s562_s22] sm:$0x1]  ;;  %s597_s8 = scalar_lea.vmem %s1392_s20, %s1140_s24  ;;  %s1707_s21 = scalar_lea.vmem %s1741_s6, %s1158_s17 }
  0x5c   : > { %564 = vst.msk [vmem:[#allocation2 + $0x38] sm:$0x1] %vm283_vm1, %v563_v9  ;;  %v568_v10 = vld [vmem:[%s567_s23] sm:$0x1]  ;;  %1182 = vmatprep.mubr.msk.bf16.mxu0 %vm620_vm2, %v610_v8 }
  0x5d   : > { %1195 = vmatpush3.bf16.msra.mxu0 %v1449_v15  ;;  %569 = vst.msk [vmem:[#allocation2 + $0x39] sm:$0x1] %vm283_vm1, %v568_v10  ;;  %v573_v11 = vld [vmem:[%s572_s25] sm:$0x1] }
  0x5e   : > { %1196 = vmatprep.subr.bf16.mxu0 %v1483_v22  ;;  %574 = vst.msk [vmem:[#allocation2 + $0x3a] sm:$0x1] %vm283_vm1, %v573_v11  ;;  %v578_v12 = vld [vmem:[%s577_s30] sm:$0x1] }
  0x5f   : > { %579 = vst.msk [vmem:[#allocation2 + $0x3b] sm:$0x1] %vm283_vm1, %v578_v12  ;;  %v583_v13 = vld [vmem:[%s582_s29] sm:$0x1] }
  0x60   : > { %v588_v14 = vld [vmem:[%s587_s7] sm:$0x1]  ;;  %584 = vst.msk [vmem:[#allocation2 + $0x3c] sm:$0x1] %vm283_vm1, %v583_v13 }
  0x61   : > { %589 = vst.msk [vmem:[#allocation2 + $0x3d] sm:$0x1] %vm283_vm1, %v588_v14  ;;  %v593_v15 = vld [vmem:[%s592_s12] sm:$0x1]  ;;  %1197 = vmatpush3.bf16.msra.mxu0 %v1483_v22 }
  0x62   : > { %594 = vst.msk [vmem:[#allocation2 + $0x3e] sm:$0x1] %vm283_vm1, %v593_v15  ;;  %v598_v16 = vld [vmem:[%s597_s8] sm:$0x1]  ;;  %v606_v17 = vld [vmem:[#allocation2 + $0x30] sm:$0xff]  ;;  %1198 = vmatprep.subr.bf16.mxu0 %v1258_v20 }
  0x63   : > { %599 = vst.msk [vmem:[#allocation2 + $0x3f] sm:$0x1] %vm283_vm1, %v598_v16  ;;  %v1141_v22 = vld [vmem:[%s1738_s3] ss:$0 sm:$0xff] }
  0x64   : > { %v1146_v51 = vld [vmem:[%s1740_s5] ss:$0 sm:$0xff] }
  0x65   : > { %1199 = vmatpush3.bf16.msra.mxu0 %v1258_v20 }
  0x66   : > { %1200 = vmatprep.subr.bf16.mxu0 %v1259_v21 }
  0x69   : > { %1201 = vmatpush3.bf16.msra.mxu0 %v1259_v21 }
  0x6a   : > { %v607_v18 = vld [vmem:[#allocation2 + $0x38] sm:$0xff] }
  0x6b   : > { %v611_v19 = vpack.c.bf16 %v607_v18, %v606_v17 }
  0x6d   : > { %1183 = vmatmul.mubr.msk.bf16.gmra.mrb[4].mxu0 %vm620_vm2, %v611_v19 }
 0x11f   : > { %v1180_v23 = vpop.f32.mrb[0].mxu0 }
 0x120   : > { %v680_v24 = vadd.f32 %v1180_v23, %v1141_v22  ;;  %v671_v25 = vpop.f32.mrb[1].mxu0 }
 0x121   : > { %v672_v26 = vadd.f32 %v1141_v22, %v671_v25  ;;  %v1181_v27 = vpop.f32.mrb[2].mxu0 }
 0x122   : > { %v683_v28 = vadd.f32 %v1181_v27, %v1141_v22  ;;  %v674_v29 = vpop.f32.mrb[3].mxu0  ;;  %v704_v31 = vmax.f32 %v680_v24, 0.0 }
 0x123   : > { %v675_v30 = vadd.f32 %v1141_v22, %v674_v29  ;;  %v702_v33 = vmax.f32 %v672_v26, 0.0 }
 0x124   : > { %v705_v32 = vmax.f32 %v683_v28, 0.0 }
 0x125   : > { %v703_v34 = vmax.f32 %v675_v30, 0.0 }
 0x126   : > { %v711_v35 = vpack.c.bf16 %v705_v32, %v704_v31 }
 0x127   : > { %v710_v36 = vpack.c.bf16 %v703_v34, %v702_v33 }
 0x129   : > { %1202 = vmatprep.mubr.bf16.mxu0 %v710_v36 }
 0x12a   : > { %1203 = vmatmul.mubr.bf16.vlgmr.msra.gmra.mrb[8].mxu0 %v711_v35 }
 0x140   : > { %v1184_v37 = vpop.f32.mrb[4].mxu0 }
 0x141   : > { %v696_v38 = vadd.f32 %v1184_v37, %v1141_v22  ;;  %v687_v39 = vpop.f32.mrb[5].mxu0 }
 0x142   : > { %v688_v40 = vadd.f32 %v1141_v22, %v687_v39  ;;  %v1185_v41 = vpop.f32.mrb[6].mxu0 }
 0x143   : > { %v699_v42 = vadd.f32 %v1185_v41, %v1141_v22  ;;  %v690_v43 = vpop.f32.mrb[7].mxu0  ;;  %v708_v45 = vmax.f32 %v696_v38, 0.0 }
 0x144   : > { %v691_v44 = vadd.f32 %v1141_v22, %v690_v43  ;;  %v706_v47 = vmax.f32 %v688_v40, 0.0 }
 0x145   : > { %v709_v46 = vmax.f32 %v699_v42, 0.0 }
 0x146   : > { %v707_v48 = vmax.f32 %v691_v44, 0.0 }
 0x147   : > { %v713_v49 = vpack.c.bf16 %v709_v46, %v708_v45 }
 0x148   : > { %v712_v50 = vpack.c.bf16 %v707_v48, %v706_v47 }
 0x14a   : > { %1206 = vmatprep.mubr.bf16.mxu1 %v712_v50 }
 0x14b   : > { %1207 = vmatmul.mubr.bf16.vlgmr.msra.gmra.mrb[0].mxu1 %v713_v49 }
 0x1fd   : > { %v1204_v52 = vpop.f32.mrb[8].mxu0 }
 0x1fe   : > { %v828_v53 = vadd.f32 %v1204_v52, %v1146_v51  ;;  %v819_v54 = vpop.f32.mrb[9].mxu0 }
 0x1ff   : > { %v820_v55 = vadd.f32 %v1146_v51, %v819_v54  ;;  %v1205_v56 = vpop.f32.mrb[10].mxu0 }
 0x200   : > { %v831_v57 = vadd.f32 %v1205_v56, %v1146_v51  ;;  %v822_v58 = vpop.f32.mrb[11].mxu0  ;;  %v852_v59 = vmul.f32 %v828_v53, %v828_v53 }
 0x201   : > { %v823_v60 = vadd.f32 %v1146_v51, %v822_v58  ;;  %v850_v61 = vmul.f32 %v820_v55, %v820_v55 }
 0x202   : > { %v865_v62 = vsel %vm858_vm3, %v852_v59, 0.0  ;;  %v853_v63 = vmul.f32 %v831_v57, %v831_v57 }
 0x203   : > { %866 = vadd.xlane.f32.xlu1 %v865_v62  ;;  %v859_v0 = vsel %vm858_vm3, %v850_v61, 0.0  ;;  %v851_v1 = vmul.f32 %v823_v60, %v823_v60 }
 0x204   : > { %860 = vadd.xlane.f32.xlu0 %v859_v0  ;;  %v868_v2 = vsel %vm858_vm3, %v853_v63, 0.0 }
 0x205   : > { %v862_v3 = vsel %vm858_vm3, %v851_v1, 0.0 }
 0x207   : > { %869 = vadd.xlane.f32.xlu1 %v868_v2 }
 0x208   : > { %863 = vadd.xlane.f32.xlu0 %v862_v3 }
 0x21e   : > { %v1208_v4 = vpop.f32.mrb[0].mxu1 }
 0x21f   : > { %v835_v5 = vpop.f32.mrb[1].mxu1  ;;  %v1695_v6 = vadd.f32 %v1208_v4, %v1146_v51 }
 0x220   : > { %v836_v7 = vadd.f32 %v1146_v51, %v835_v5  ;;  %v1209_v8 = vpop.f32.mrb[2].mxu1 }
 0x221   : > { %v838_v9 = vpop.f32.mrb[3].mxu1  ;;  %v847_v10 = vadd.f32 %v1209_v8, %v1146_v51  ;;  %v856_v15 = vmul.f32 %v1695_v6, %v1695_v6 }
 0x222   : > { %v839_v11 = vadd.f32 %v1146_v51, %v838_v9  ;;  %v854_v12 = vmul.f32 %v836_v7, %v836_v7 }
 0x223   : > { %v857_v17 = vmul.f32 %v847_v10, %v847_v10  ;;  %v877_v18 = vsel %vm858_vm3, %v856_v15, 0.0 }
 0x224   : > { %v871_v13 = vsel %vm858_vm3, %v854_v12, 0.0  ;;  %v855_v14 = vmul.f32 %v839_v11, %v839_v11 }
 0x225   : > { %872 = vadd.xlane.f32.xlu0 %v871_v13  ;;  %v880_v19 = vsel %vm858_vm3, %v857_v17, 0.0 }
 0x226   : > { %v874_v16 = vsel %vm858_vm3, %v855_v14, 0.0 }
 0x227   : > { %875 = vadd.xlane.f32.xlu1 %v874_v16 }
 0x229   : > { %878 = vadd.xlane.f32.xlu0 %v877_v18 }
 0x22b   : > { %881 = vadd.xlane.f32.xlu1 %v880_v19 }
 0x290   : > { %v867_v20 = vpop.xlane.xlu1 %866 }
 0x291   : > { %v885_v21 = vadd.f32 1e-12, %v867_v20  ;;  %v861_v22 = vpop.xlane.xlu0 %860 }
 0x292   : > { %v883_v23 = vadd.f32 1e-12, %v861_v22 }
 0x293   : > { %1260 = vrsqrt.f32 %v885_v21 }
 0x294   : > { %1262 = vrsqrt.f32 %v883_v23  ;;  %v870_v24 = vpop.xlane.xlu1 %869 }
 0x295   : > { %v886_v25 = vadd.f32 1e-12, %v870_v24  ;;  %v864_v26 = vpop.xlane.xlu0 %863 }
 0x296   : > { %v884_v27 = vadd.f32 1e-12, %v864_v26 }
 0x297   : > { %1264 = vrsqrt.f32 %v886_v25 }
 0x298   : > { %1266 = vrsqrt.f32 %v884_v27 }
 0x29d   : > { %v1261_v28 = vpop.eup %1260 }
 0x29e   : > { %v1263_v29 = vpop.eup %1262  ;;  %v901_v30 = vmul.f32 %v1261_v28, %v828_v53 }
 0x29f   : > { %v899_v31 = vmul.f32 %v1263_v29, %v820_v55 }
 0x2a0   : > { %909 = vst.msk [vmem:[%s1707_s21 + $0x10] sm:$0xff] %vm858_vm3, %v901_v30 }
 0x2a1   : > { %v1265_v32 = vpop.eup %1264  ;;  %907 = vst.msk [vmem:[%s1707_s21] sm:$0xff] %vm858_vm3, %v899_v31 }
 0x2a2   : > { %v1267_v33 = vpop.eup %1266  ;;  %v902_v34 = vmul.f32 %v1265_v32, %v831_v57 }
 0x2a3   : > { %v900_v35 = vmul.f32 %v1267_v33, %v823_v60 }
 0x2a4   : > { %910 = vst.msk [vmem:[%s1707_s21 + $0x18] sm:$0xff] %vm858_vm3, %v902_v34 }
 0x2a5   : > { %908 = vst.msk [vmem:[%s1707_s21 + $0x8] sm:$0xff] %vm858_vm3, %v900_v35 }
 0x2b2   : > { %v873_v36 = vpop.xlane.xlu0 %872 }
 0x2b3   : > { %v887_v37 = vadd.f32 1e-12, %v873_v36 }
 0x2b4   : > { %v876_v38 = vpop.xlane.xlu1 %875 }
 0x2b5   : > { %1268 = vrsqrt.f32 %v887_v37  ;;  %v888_v39 = vadd.f32 1e-12, %v876_v38 }
 0x2b6   : > { %v879_v40 = vpop.xlane.xlu0 %878 }
 0x2b7   : > { %1270 = vrsqrt.f32 %v888_v39  ;;  %v889_v41 = vadd.f32 1e-12, %v879_v40 }
 0x2b8   : > { %v882_v42 = vpop.xlane.xlu1 %881 }
 0x2b9   : > { %1272 = vrsqrt.f32 %v889_v41  ;;  %v890_v43 = vadd.f32 1e-12, %v882_v42 }
 0x2bb   : > { %1274 = vrsqrt.f32 %v890_v43 }
 0x2bf   : > { %v1269_v44 = vpop.eup %1268 }
 0x2c0   : > { %v903_v45 = vmul.f32 %v1269_v44, %v836_v7 }
 0x2c1   : > { %v1271_v46 = vpop.eup %1270 }
 0x2c2   : > { %911 = vst.msk [vmem:[%s1707_s21 + $0x20] sm:$0xff] %vm858_vm3, %v903_v45  ;;  %v904_v47 = vmul.f32 %v1271_v46, %v839_v11 }
 0x2c3   : > { %v1273_v48 = vpop.eup %1272 }
 0x2c4   : > { %912 = vst.msk [vmem:[%s1707_s21 + $0x28] sm:$0xff] %vm858_vm3, %v904_v47  ;;  %v905_v49 = vmul.f32 %v1273_v48, %v1695_v6 }
 0x2c5   : > { %v1275_v50 = vpop.eup %1274 }
 0x2c6   : > { %913 = vst.msk [vmem:[%s1707_s21 + $0x30] sm:$0xff] %vm858_vm3, %v905_v49  ;;  %v906_v51 = vmul.f32 %v1275_v50, %v847_v10 }
 0x2c8   : > { %914 = vst.msk [vmem:[%s1707_s21 + $0x38] sm:$0xff] %vm858_vm3, %v906_v51 }
 0x2c9 PF: > { %s22_s28 = sadd.s32 1, %s1312_s28   ;;  %s1742_s26 = smov %s1308_s27 }
 0x2ca   : > { %p19_p10 = scmp.ge.s32.totalorder %s22_s28, 4   ;;  %s1743_s27 = smov %s1745_s0 }
 0x2cc   :  { %21 = sbr.rel (!%p19_p10) target bundleno = 17 (0x11), region = 134 }

// kernel: _lambda_.3
= control target key start
LH: loop header
LB: loop body
LE: loop exit
PB: predicated region body
PF: predicated region fallthrough
CT: control target
= control target key end

     0   :  { %s1733_s0 = inlined_call_operand.vmem [shape: s32[64], index: 0, kind: input, shape index: {}]   ;;  %s1734_s1 = inlined_call_operand.vmem [shape: f32[2,64,8], index: 1, kind: input, shape index: {}]   ;;  %s1735_s2 = inlined_call_operand.vmem [shape: bf16[8,128], index: 2, kind: input, shape index: {}]   ;;  %s1736_s3 = inlined_call_operand.vmem [shape: f32[1,128], index: 3, kind: input, shape index: {}]   ;;  %s1737_s4 = inlined_call_operand.vmem [shape: bf16[128,32], index: 4, kind: input, shape index: {}]   ;;  %s1738_s5 = inlined_call_operand.vmem [shape: f32[1,32], index: 5, kind: input, shape index: {}]   ;;  %s1739_s6 = inlined_call_operand.vmem [shape: f32[2,64,32], index: 6, kind: output, shape index: {}]  }
   0x1   :  { %s11_s23 = sshll.u32 %s1733_s0, 4  ;;  %s12_s23 = int_to_ptr.vmem [resolvable:$true] %s11_s23 }
   0x2   :  { %s1276_s24 = scalar_lea.vmem %s12_s23, 16  ;;  %p1281_p1 = scmp.lt.s32.totalorder %s12_s23, %s12_s23 }
   0x3   :  { %p1277_p0 = scmp.ne.s32.totalorder %s12_s23, %s1276_s24  ;;  %p1282_p2 = scmp.lt.s32.totalorder %s1276_s24, %s1276_s24 }
   0x5   :  { %p1283_p3 = por %p1282_p2, %p1281_p1 }
   0x7   :  { %p1284_p4 = pnand %p1283_p3, %p1277_p0 }
   0x9   :  { %1287 = shalt.err (!%p1284_p4)  }
   0xa   :  { %s1314_s25 = smov [#allocation4]  }
   0xb   :  { %14 = dma.vmem_to_smem %s12_s23, 16, %s1314_s25, [#allocation3] }
   0xc   :  { %1300 = dma.done.wait [#allocation3], 16 }
   0xd   :  { %1301 = vsyncadd [#allocation3], 4294967280 }
   0xe   :  { %16 = sfence }
   0xf   :  { %s1353_s26 = smov 0   ;;  %s1355_s27 = smov 0  }
  0x10   :  { %s1357_s28 = smov 0  }
  0x11 LB: > { %s41_s0 = sadd.s32 1, %s1308_s27  ;;  %p1073_p5 = scmp.ge.s32.totalorder %s1312_s28, 1  ;;  %s1312_s28 = sphi %s1357_s28, %s22_s28   ;;  %s1308_s27 = sphi %s1355_s27, %s1741_s27   ;;  %s1304_s26 = sphi %s1353_s26, %s1740_s26  }
  0x12   : > { %p43_p6 = scmp.ge.s32.totalorder %s41_s0, 2  ;;  %p222_p7 = scmp.lt.s32.totalorder %s1312_s28, 3 }
  0x14   : > { %s1743_s0 = smov (%p43_p6, %s41_s0), 0  ;;  %p223_p8 = pnand %p1073_p5, %p222_p7 }
  0x15   : > { %v612_v0 = vld [vmem:[%s1735_s2] sm:$0xf] (!%p223_p8)  ;;  %vm633_vm0 = vcmask (!%p223_p8), 1043456   ;;  %p259_p9 = scmp.lt.s32.totalorder (!%p223_p8), %s1304_s26, 1  ;;  %s280_s7 = sld [smem:[#allocation4]] (!%p223_p8)  ;;  %vm283_vm1 = vcmask (!%p223_p8), 57344  }
  0x16   : > { %226 = sbr.rel (%p223_p8) target bundleno = 713 (0x2c9), region = 40  ;;  %1226 = vmatprep.subr.msk.bf16.mxu0 (!%p223_p8), %vm633_vm0, %v612_v0  ;;  %v635_v1 = vsel (!%p223_p8), %vm633_vm0, %v612_v0, 0  ;;  %s1078_s8 = sld [smem:[#allocation4 + $0x1]] (!%p223_p8)  ;;  %v1379_v2 = vld [vmem:[%s1737_s4] sm:$0xff] (!%p223_p8)   ;;  %v1387_v3 = vld [vmem:[%s1737_s4 + $0x8] sm:$0xff] (!%p223_p8)   ;;  %v1417_v7 = vld [vmem:[%s1737_s4 + $0x10] sm:$0xff] (!%p223_p8)  }
  0x17   : > { %s1079_s9 = sld [smem:[#allocation4 + $0x2]] (!%p223_p8)  ;;  %1177 = vmatpush3.bf16.msra.mxu0 (!%p223_p8), %v635_v1  ;;  %s1080_s10 = sld [smem:[#allocation4 + $0x3]] (!%p223_p8)  ;;  %1210 = vmatprep.subr.bf16.mxu1 (!%p223_p8), %v1379_v2  ;;  %v1431_v11 = vld [vmem:[%s1737_s4 + $0x18] sm:$0xff] (!%p223_p8)   ;;  %v1451_v15 = vld [vmem:[%s1737_s4 + $0x20] sm:$0xff] (!%p223_p8)   ;;  %v1485_v22 = vld [vmem:[%s1737_s4 + $0x28] sm:$0xff] (!%p223_p8)   ;;  %vm620_vm2 = vcmask (!%p223_p8), 64512  }
  0x18   : > { %s1081_s11 = sld [smem:[#allocation4 + $0x4]] (!%p223_p8)  ;;  %s1382_s15 = sld [smem:[#allocation4 + $0x5]] (!%p223_p8)  ;;  %1186 = vmatprep.subr.bf16.mxu0 (!%p223_p8), %v1379_v2  ;;  %1218 = vmatpush3.bf16.msra.mxu1 (!%p223_p8), %v1379_v2  ;;  %vm858_vm3 = vcmask (!%p223_p8), 261120  }
  0x19   : > { %s1396_s21 = sld [smem:[#allocation4 + $0x6]] (!%p223_p8)  ;;  %s1401_s23 = sld [smem:[#allocation4 + $0x7]] (!%p223_p8)  ;;  %1211 = vmatprep.subr.bf16.mxu1 (!%p223_p8), %v1387_v3 }
  0x1a   : > { %s1408_s29 = sld [smem:[#allocation4 + $0x8]] (!%p223_p8)  ;;  %s1088_s18 = sld [smem:[#allocation4 + $0xb]] (!%p223_p8) }
  0x1b   : > { %s1089_s19 = sld [smem:[#allocation4 + $0xc]] (!%p223_p8)  ;;  %s1457_s12 = sld [smem:[#allocation4 + $0x11]] (!%p223_p8) }
  0x1c   : > { %1219 = vmatpush3.bf16.msra.mxu1 (!%p223_p8), %v1387_v3  ;;  %s1464_s16 = sld [smem:[#allocation4 + $0x13]] (!%p223_p8) }
  0x1d   : > { %s1745_s26 = smov (!%p259_p9, %s1304_s26), 1  ;;  %1212 = vmatprep.subr.bf16.mxu1 %v1417_v7 }
  0x1e   : > { %s1157_s14 = sshll.u32 %s1745_s26, 6 }
  0x1f   : > { %s1394_s20 = scalar_lea.vmem %s1734_s1, %s1157_s14 }
  0x20   : > { %s281_s22 = scalar_lea.vmem %s1394_s20, %s280_s7  ;;  %s287_s24 = scalar_lea.vmem %s1394_s20, %s1078_s8  ;;  %1220 = vmatpush3.bf16.msra.mxu1 %v1417_v7 }
  0x21   : > { %v282_v4 = vld [vmem:[%s281_s22] sm:$0x1]  ;;  %s292_s25 = scalar_lea.vmem %s1394_s20, %s1079_s9  ;;  %s297_s30 = scalar_lea.vmem %s1394_s20, %s1080_s10  ;;  %1213 = vmatprep.subr.bf16.mxu1 %v1431_v11 }
  0x22   : > { %284 = vst.msk [vmem:[#allocation2] sm:$0x1] %vm283_vm1, %v282_v4  ;;  %v288_v5 = vld [vmem:[%s287_s24] sm:$0x1]  ;;  %s302_s7 = scalar_lea.vmem %s1394_s20, %s1081_s11  ;;  %s307_s8 = scalar_lea.vmem %s1394_s20, %s1382_s15 }
  0x23   : > { %v293_v6 = vld [vmem:[%s292_s25] sm:$0x1]  ;;  %289 = vst.msk [vmem:[#allocation2 + $0x1] sm:$0x1] %vm283_vm1, %v288_v5  ;;  %s1421_s9 = sld [smem:[#allocation4 + $0x9]]  ;;  %s312_s10 = scalar_lea.vmem %s1394_s20, %s1396_s21 }
  0x24   : > { %294 = vst.msk [vmem:[#allocation2 + $0x2] sm:$0x1] %vm283_vm1, %v293_v6  ;;  %v298_v8 = vld [vmem:[%s297_s30] sm:$0x1]  ;;  %s1087_s11 = sld [smem:[#allocation4 + $0xa]]  ;;  %s317_s15 = scalar_lea.vmem %s1394_s20, %s1401_s23  ;;  %1221 = vmatpush3.bf16.msra.mxu1 %v1431_v11 }
  0x25   : > { %v303_v9 = vld [vmem:[%s302_s7] sm:$0x1]  ;;  %299 = vst.msk [vmem:[#allocation2 + $0x3] sm:$0x1] %vm283_vm1, %v298_v8  ;;  %s1090_s21 = sld [smem:[#allocation4 + $0xd]]  ;;  %s322_s22 = scalar_lea.vmem %s1394_s20, %s1408_s29  ;;  %1214 = vmatprep.subr.bf16.mxu1 %v1451_v15 }
  0x26   : > { %304 = vst.msk [vmem:[#allocation2 + $0x4] sm:$0x1] %vm283_vm1, %v303_v9  ;;  %v308_v10 = vld [vmem:[%s307_s8] sm:$0x1]  ;;  %s1441_s24 = sld [smem:[#allocation4 + $0xe]]  ;;  %s1444_s25 = sld [smem:[#allocation4 + $0xf]] }
  0x27   : > { %309 = vst.msk [vmem:[#allocation2 + $0x5] sm:$0x1] %vm283_vm1, %v308_v10  ;;  %v313_v12 = vld [vmem:[%s312_s10] sm:$0x1]  ;;  %s1446_s23 = sld [smem:[#allocation4 + $0x10]]  ;;  %s1460_s8 = sld [smem:[#allocation4 + $0x12]] }
  0x28   : > { %314 = vst.msk [vmem:[#allocation2 + $0x6] sm:$0x1] %vm283_vm1, %v313_v12  ;;  %v318_v13 = vld [vmem:[%s317_s15] sm:$0x1]  ;;  %s337_s10 = scalar_lea.vmem %s1394_s20, %s1088_s18  ;;  %s1474_s15 = sld [smem:[#allocation4 + $0x14]]  ;;  %1222 = vmatpush3.bf16.msra.mxu1 %v1451_v15 }
  0x29   : > { %319 = vst.msk [vmem:[#allocation2 + $0x7] sm:$0x1] %vm283_vm1, %v318_v13  ;;  %v323_v14 = vld [vmem:[%s322_s22] sm:$0x1]  ;;  %s327_s29 = scalar_lea.vmem %s1394_s20, %s1421_s9  ;;  %s342_s9 = scalar_lea.vmem %s1394_s20, %s1089_s19  ;;  %1215 = vmatprep.subr.bf16.mxu1 %v1485_v22 }
  0x2a   : > { %324 = vst.msk [vmem:[#allocation2 + $0x8] sm:$0x1] %vm283_vm1, %v323_v14  ;;  %v328_v16 = vld [vmem:[%s327_s29] sm:$0x1]  ;;  %s332_s13 = scalar_lea.vmem %s1394_s20, %s1087_s11  ;;  %s1098_s30 = sld [smem:[#allocation4 + $0x15]] }
  0x2b   : > { %329 = vst.msk [vmem:[#allocation2 + $0x9] sm:$0x1] %vm283_vm1, %v328_v16  ;;  %v333_v17 = vld [vmem:[%s332_s13] sm:$0x1]  ;;  %s347_s17 = scalar_lea.vmem %s1394_s20, %s1090_s21  ;;  %s377_s7 = scalar_lea.vmem %s1394_s20, %s1464_s16 }
  0x2c   : > { %334 = vst.msk [vmem:[#allocation2 + $0xa] sm:$0x1] %vm283_vm1, %v333_v17  ;;  %v338_v18 = vld [vmem:[%s337_s10] sm:$0x1]  ;;  %s352_s11 = scalar_lea.vmem %s1394_s20, %s1441_s24  ;;  %s357_s18 = scalar_lea.vmem %s1394_s20, %s1444_s25  ;;  %1223 = vmatpush3.bf16.msra.mxu1 %v1485_v22 }
  0x2d   : > { %339 = vst.msk [vmem:[#allocation2 + $0xb] sm:$0x1] %vm283_vm1, %v338_v18  ;;  %v343_v19 = vld [vmem:[%s342_s9] sm:$0x1]  ;;  %s362_s19 = scalar_lea.vmem %s1394_s20, %s1446_s23  ;;  %s367_s24 = scalar_lea.vmem %s1394_s20, %s1457_s12 }
  0x2e   : > { %v348_v20 = vld [vmem:[%s347_s17] sm:$0x1]  ;;  %344 = vst.msk [vmem:[#allocation2 + $0xc] sm:$0x1] %vm283_vm1, %v343_v19  ;;  %s372_s25 = scalar_lea.vmem %s1394_s20, %s1460_s8  ;;  %s1099_s23 = sld [smem:[#allocation4 + $0x16]] }
  0x2f   : > { %349 = vst.msk [vmem:[#allocation2 + $0xd] sm:$0x1] %vm283_vm1, %v348_v20  ;;  %v353_v21 = vld [vmem:[%s352_s11] sm:$0x1]  ;;  %s1100_s29 = sld [smem:[#allocation4 + $0x17]]  ;;  %s1101_s12 = sld [smem:[#allocation4 + $0x18]] }
  0x30   : > { %354 = vst.msk [vmem:[#allocation2 + $0xe] sm:$0x1] %vm283_vm1, %v353_v21  ;;  %v358_v23 = vld [vmem:[%s357_s18] sm:$0x1]  ;;  %s1102_s13 = sld [smem:[#allocation4 + $0x19]]  ;;  %s382_s10 = scalar_lea.vmem %s1394_s20, %s1474_s15  ;;  %v1258_v20 = vld [vmem:[%s1737_s4 + $0x30] sm:$0xff]  }
  0x31   : > { %v363_v24 = vld [vmem:[%s362_s19] sm:$0x1]  ;;  %359 = vst.msk [vmem:[#allocation2 + $0xf] sm:$0x1] %vm283_vm1, %v358_v23  ;;  %s1503_s9 = sld [smem:[#allocation4 + $0x1a]]  ;;  %s1506_s8 = sld [smem:[#allocation4 + $0x1b]]  ;;  %1216 = vmatprep.subr.bf16.mxu1 %v1258_v20 }
  0x32   : > { %364 = vst.msk [vmem:[#allocation2 + $0x10] sm:$0x1] %vm283_vm1, %v363_v24  ;;  %v368_v25 = vld [vmem:[%s367_s24] sm:$0x1]  ;;  %s1508_s17 = sld [smem:[#allocation4 + $0x1c]]  ;;  %s387_s16 = scalar_lea.vmem %s1394_s20, %s1098_s30  ;;  %v1259_v21 = vld [vmem:[%s1737_s4 + $0x38] sm:$0xff]   ;;  %1224 = vmatpush3.bf16.msra.mxu1 %v1258_v20 }
  0x33   : > { %369 = vst.msk [vmem:[#allocation2 + $0x11] sm:$0x1] %vm283_vm1, %v368_v25  ;;  %v373_v26 = vld [vmem:[%s372_s25] sm:$0x1]  ;;  %s1512_s11 = sld [smem:[#allocation4 + $0x1d]]  ;;  %s1515_s18 = sld [smem:[#allocation4 + $0x1e]]  ;;  %1217 = vmatprep.subr.bf16.mxu1 %v1259_v21 }
  0x34   : > { %374 = vst.msk [vmem:[#allocation2 + $0x12] sm:$0x1] %vm283_vm1, %v373_v26  ;;  %v378_v27 = vld [vmem:[%s377_s7] sm:$0x1]  ;;  %s392_s15 = scalar_lea.vmem %s1394_s20, %s1099_s23  ;;  %s1519_s21 = sld [smem:[#allocation4 + $0x1f]] }
  0x35   : > { %379 = vst.msk [vmem:[#allocation2 + $0x13] sm:$0x1] %vm283_vm1, %v378_v27  ;;  %v383_v28 = vld [vmem:[%s382_s10] sm:$0x1]  ;;  %s397_s19 = scalar_lea.vmem %s1394_s20, %s1100_s29  ;;  %s402_s22 = scalar_lea.vmem %s1394_s20, %s1101_s12 }
  0x36   : > { %v600_v29 = vld [vmem:[#allocation2] sm:$0xff]  ;;  %384 = vst.msk [vmem:[#allocation2 + $0x14] sm:$0x1] %vm283_vm1, %v383_v28  ;;  %s407_s24 = scalar_lea.vmem %s1394_s20, %s1102_s13  ;;  %s1109_s25 = sld [smem:[#allocation4 + $0x20]]  ;;  %1225 = vmatpush3.bf16.msra.mxu1 %v1259_v21 }
  0x37   : > { %v388_v30 = vld [vmem:[%s387_s16] sm:$0x1]  ;;  %s412_s30 = scalar_lea.vmem %s1394_s20, %s1503_s9  ;;  %s417_s23 = scalar_lea.vmem %s1394_s20, %s1506_s8 }
  0x38   : > { %v601_v31 = vld [vmem:[#allocation2 + $0x8] sm:$0xff]  ;;  %389 = vst.msk [vmem:[#allocation2 + $0x15] sm:$0x1] %vm283_vm1, %v388_v30  ;;  %v393_v32 = vld [vmem:[%s392_s15] sm:$0x1]  ;;  %s422_s7 = scalar_lea.vmem %s1394_s20, %s1508_s17  ;;  %s1110_s12 = sld [smem:[#allocation4 + $0x21]] }
  0x39   : > { %v608_v33 = vpack.c.bf16 %v601_v31, %v600_v29  ;;  %394 = vst.msk [vmem:[#allocation2 + $0x16] sm:$0x1] %vm283_vm1, %v393_v32  ;;  %v398_v34 = vld [vmem:[%s397_s19] sm:$0x1]  ;;  %s427_s29 = scalar_lea.vmem %s1394_s20, %s1512_s11  ;;  %s432_s13 = scalar_lea.vmem %s1394_s20, %s1515_s18 }
  0x3a   : > { %399 = vst.msk [vmem:[#allocation2 + $0x17] sm:$0x1] %vm283_vm1, %v398_v34  ;;  %v403_v35 = vld [vmem:[%s402_s22] sm:$0x1]  ;;  %s1111_s10 = sld [smem:[#allocation4 + $0x22]]  ;;  %s437_s9 = scalar_lea.vmem %s1394_s20, %s1519_s21 }
  0x3b   : > { %v408_v36 = vld [vmem:[%s407_s24] sm:$0x1]  ;;  %1178 = vmatprep.mubr.msk.bf16.mxu0 %vm620_vm2, %v608_v33  ;;  %404 = vst.msk [vmem:[#allocation2 + $0x18] sm:$0x1] %vm283_vm1, %v403_v35  ;;  %s1112_s8 = sld [smem:[#allocation4 + $0x23]]  ;;  %s1113_s17 = sld [smem:[#allocation4 + $0x24]] }
  0x3c   : > { %409 = vst.msk [vmem:[#allocation2 + $0x19] sm:$0x1] %vm283_vm1, %v408_v36  ;;  %v413_v37 = vld [vmem:[%s412_s30] sm:$0x1]  ;;  %s1114_s16 = sld [smem:[#allocation4 + $0x25]]  ;;  %s442_s11 = scalar_lea.vmem %s1394_s20, %s1109_s25 }
  0x3d   : > { %414 = vst.msk [vmem:[#allocation2 + $0x1a] sm:$0x1] %vm283_vm1, %v413_v37  ;;  %v418_v38 = vld [vmem:[%s417_s23] sm:$0x1]  ;;  %s1115_s15 = sld [smem:[#allocation4 + $0x26]]  ;;  %s1547_s18 = sld [smem:[#allocation4 + $0x27]] }
  0x3e   : > { %v423_v39 = vld [vmem:[%s422_s7] sm:$0x1]  ;;  %419 = vst.msk [vmem:[#allocation2 + $0x1b] sm:$0x1] %vm283_vm1, %v418_v38  ;;  %s447_s19 = scalar_lea.vmem %s1394_s20, %s1110_s12  ;;  %s1551_s21 = sld [smem:[#allocation4 + $0x28]] }
  0x3f   : > { %424 = vst.msk [vmem:[#allocation2 + $0x1c] sm:$0x1] %vm283_vm1, %v423_v39  ;;  %v428_v40 = vld [vmem:[%s427_s29] sm:$0x1]  ;;  %s1554_s24 = sld [smem:[#allocation4 + $0x29]]  ;;  %s1558_s25 = sld [smem:[#allocation4 + $0x2a]] }
  0x40   : > { %429 = vst.msk [vmem:[#allocation2 + $0x1d] sm:$0x1] %vm283_vm1, %v428_v40  ;;  %v433_v41 = vld [vmem:[%s432_s13] sm:$0x1]  ;;  %s452_s22 = scalar_lea.vmem %s1394_s20, %s1111_s10  ;;  %s1565_s12 = sld [smem:[#allocation4 + $0x2b]] }
  0x41   : > { %434 = vst.msk [vmem:[#allocation2 + $0x1e] sm:$0x1] %vm283_vm1, %v433_v41  ;;  %v438_v42 = vld [vmem:[%s437_s9] sm:$0x1]  ;;  %s457_s30 = scalar_lea.vmem %s1394_s20, %s1112_s8  ;;  %v602_v46 = vld [vmem:[#allocation2 + $0x10] sm:$0xff]  ;;  %s462_s23 = scalar_lea.vmem %s1394_s20, %s1113_s17 }
  0x42   : > { %439 = vst.msk [vmem:[#allocation2 + $0x1f] sm:$0x1] %vm283_vm1, %v438_v42  ;;  %v443_v43 = vld [vmem:[%s442_s11] sm:$0x1]  ;;  %s467_s7 = scalar_lea.vmem %s1394_s20, %s1114_s16  ;;  %s1121_s10 = sld [smem:[#allocation4 + $0x2c]] }
  0x43   : > { %444 = vst.msk [vmem:[#allocation2 + $0x20] sm:$0x1] %vm283_vm1, %v443_v43  ;;  %v448_v44 = vld [vmem:[%s447_s19] sm:$0x1]  ;;  %s472_s29 = scalar_lea.vmem %s1394_s20, %s1115_s15  ;;  %s477_s13 = scalar_lea.vmem %s1394_s20, %s1547_s18 }
  0x44   : > { %449 = vst.msk [vmem:[#allocation2 + $0x21] sm:$0x1] %vm283_vm1, %v448_v44  ;;  %v453_v45 = vld [vmem:[%s452_s22] sm:$0x1]  ;;  %s482_s9 = scalar_lea.vmem %s1394_s20, %s1551_s21  ;;  %s1122_s8 = sld [smem:[#allocation4 + $0x2d]] }
  0x45   : > { %454 = vst.msk [vmem:[#allocation2 + $0x22] sm:$0x1] %vm283_vm1, %v453_v45  ;;  %v458_v47 = vld [vmem:[%s457_s30] sm:$0x1]  ;;  %s487_s17 = scalar_lea.vmem %s1394_s20, %s1554_s24  ;;  %s1123_s16 = sld [smem:[#allocation4 + $0x2e]] }
  0x46   : > { %459 = vst.msk [vmem:[#allocation2 + $0x23] sm:$0x1] %vm283_vm1, %v458_v47  ;;  %v463_v48 = vld [vmem:[%s462_s23] sm:$0x1]  ;;  %s492_s11 = scalar_lea.vmem %s1394_s20, %s1558_s25  ;;  %s1124_s15 = sld [smem:[#allocation4 + $0x2f]] }
  0x47   : > { %v468_v49 = vld [vmem:[%s467_s7] sm:$0x1]  ;;  %464 = vst.msk [vmem:[#allocation2 + $0x24] sm:$0x1] %vm283_vm1, %v463_v48  ;;  %s1582_s18 = sld [smem:[#allocation4 + $0x30]]  ;;  %s1584_s19 = sld [smem:[#allocation4 + $0x31]] }
  0x48   : > { %469 = vst.msk [vmem:[#allocation2 + $0x25] sm:$0x1] %vm283_vm1, %v468_v49  ;;  %v473_v51 = vld [vmem:[%s472_s29] sm:$0x1]  ;;  %s497_s21 = scalar_lea.vmem %s1394_s20, %s1565_s12  ;;  %s1590_s22 = sld [smem:[#allocation4 + $0x32]] }
  0x49   : > { %v603_v50 = vld [vmem:[#allocation2 + $0x18] sm:$0xff]  ;;  %474 = vst.msk [vmem:[#allocation2 + $0x26] sm:$0x1] %vm283_vm1, %v473_v51  ;;  %v478_v53 = vld [vmem:[%s477_s13] sm:$0x1]  ;;  %s502_s24 = scalar_lea.vmem %s1394_s20, %s1121_s10  ;;  %s1594_s30 = sld [smem:[#allocation4 + $0x33]] }
  0x4a   : > { %v609_v52 = vpack.c.bf16 %v603_v50, %v602_v46  ;;  %479 = vst.msk [vmem:[#allocation2 + $0x27] sm:$0x1] %vm283_vm1, %v478_v53  ;;  %v483_v54 = vld [vmem:[%s482_s9] sm:$0x1]  ;;  %s507_s25 = scalar_lea.vmem %s1394_s20, %s1122_s8  ;;  %s1598_s23 = sld [smem:[#allocation4 + $0x34]] }
  0x4b   : > { %484 = vst.msk [vmem:[#allocation2 + $0x28] sm:$0x1] %vm283_vm1, %v483_v54  ;;  %v488_v55 = vld [vmem:[%s487_s17] sm:$0x1]  ;;  %s512_s7 = scalar_lea.vmem %s1394_s20, %s1123_s16  ;;  %s1602_s29 = sld [smem:[#allocation4 + $0x35]] }
  0x4c   : > { %1179 = vmatmul.mubr.msk.bf16.vlgmr.msra.gmra.mrb[0].mxu0 %vm620_vm2, %v609_v52  ;;  %489 = vst.msk [vmem:[#allocation2 + $0x29] sm:$0x1] %vm283_vm1, %v488_v55  ;;  %v493_v56 = vld [vmem:[%s492_s11] sm:$0x1]  ;;  %s517_s12 = scalar_lea.vmem %s1394_s20, %s1124_s15  ;;  %s1607_s13 = sld [smem:[#allocation4 + $0x36]] }
  0x4d   : > { %1187 = vmatpush3.bf16.msra.mxu0 %v1379_v2  ;;  %494 = vst.msk [vmem:[#allocation2 + $0x2a] sm:$0x1] %vm283_vm1, %v493_v56  ;;  %v498_v57 = vld [vmem:[%s497_s21] sm:$0x1]  ;;  %s522_s10 = scalar_lea.vmem %s1394_s20, %s1582_s18  ;;  %s527_s9 = scalar_lea.vmem %s1394_s20, %s1584_s19 }
  0x4e   : > { %1188 = vmatprep.subr.bf16.mxu0 %v1387_v3  ;;  %499 = vst.msk [vmem:[#allocation2 + $0x2b] sm:$0x1] %vm283_vm1, %v498_v57  ;;  %v503_v58 = vld [vmem:[%s502_s24] sm:$0x1]  ;;  %s532_s8 = scalar_lea.vmem %s1394_s20, %s1590_s22  ;;  %s1618_s17 = sld [smem:[#allocation4 + $0x37]] }
  0x4f   : > { %504 = vst.msk [vmem:[#allocation2 + $0x2c] sm:$0x1] %vm283_vm1, %v503_v58  ;;  %v508_v59 = vld [vmem:[%s507_s25] sm:$0x1]  ;;  %s537_s16 = scalar_lea.vmem %s1394_s20, %s1594_s30  ;;  %s1624_s11 = sld [smem:[#allocation4 + $0x38]] }
  0x50   : > { %509 = vst.msk [vmem:[#allocation2 + $0x2d] sm:$0x1] %vm283_vm1, %v508_v59  ;;  %v513_v60 = vld [vmem:[%s512_s7] sm:$0x1]  ;;  %s542_s15 = scalar_lea.vmem %s1394_s20, %s1598_s23  ;;  %s1630_s18 = sld [smem:[#allocation4 + $0x39]] }
  0x51   : > { %1189 = vmatpush3.bf16.msra.mxu0 %v1387_v3  ;;  %514 = vst.msk [vmem:[#allocation2 + $0x2e] sm:$0x1] %vm283_vm1, %v513_v60  ;;  %v518_v61 = vld [vmem:[%s517_s12] sm:$0x1]  ;;  %s547_s19 = scalar_lea.vmem %s1394_s20, %s1602_s29  ;;  %s1636_s21 = sld [smem:[#allocation4 + $0x3a]] }
  0x52   : > { %1190 = vmatprep.subr.bf16.mxu0 %v1417_v7  ;;  %519 = vst.msk [vmem:[#allocation2 + $0x2f] sm:$0x1] %vm283_vm1, %v518_v61  ;;  %v523_v62 = vld [vmem:[%s522_s10] sm:$0x1]  ;;  %s552_s22 = scalar_lea.vmem %s1394_s20, %s1607_s13  ;;  %s1136_s24 = sld [smem:[#allocation4 + $0x3b]] }
  0x53   : > { %v528_v63 = vld [vmem:[%s527_s9] sm:$0x1]  ;;  %524 = vst.msk [vmem:[#allocation2 + $0x30] sm:$0x1] %vm283_vm1, %v523_v62  ;;  %s1642_s30 = sld [smem:[#allocation4 + $0x3c]]  ;;  %s1644_s25 = sld [smem:[#allocation4 + $0x3d]] }
  0x54   : > { %529 = vst.msk [vmem:[#allocation2 + $0x31] sm:$0x1] %vm283_vm1, %v528_v63  ;;  %v533_v0 = vld [vmem:[%s532_s8] sm:$0x1]  ;;  %s557_s23 = scalar_lea.vmem %s1394_s20, %s1618_s17  ;;  %s1650_s7 = sld [smem:[#allocation4 + $0x3e]] }
  0x55   : > { %1191 = vmatpush3.bf16.msra.mxu0 %v1417_v7  ;;  %534 = vst.msk [vmem:[#allocation2 + $0x32] sm:$0x1] %vm283_vm1, %v533_v0  ;;  %v538_v1 = vld [vmem:[%s537_s16] sm:$0x1]  ;;  %s562_s29 = scalar_lea.vmem %s1394_s20, %s1624_s11  ;;  %s1140_s12 = sld [smem:[#allocation4 + $0x3f]] }
  0x56   : > { %1192 = vmatprep.subr.bf16.mxu0 %v1431_v11  ;;  %539 = vst.msk [vmem:[#allocation2 + $0x33] sm:$0x1] %vm283_vm1, %v538_v1  ;;  %v543_v2 = vld [vmem:[%s542_s15] sm:$0x1]  ;;  %s567_s13 = scalar_lea.vmem %s1394_s20, %s1630_s18 }
  0x57   : > { %v604_v3 = vld [vmem:[#allocation2 + $0x20] sm:$0xff]  ;;  %544 = vst.msk [vmem:[#allocation2 + $0x34] sm:$0x1] %vm283_vm1, %v543_v2  ;;  %s572_s10 = scalar_lea.vmem %s1394_s20, %s1636_s21 }
  0x58   : > { %v548_v4 = vld [vmem:[%s547_s19] sm:$0x1]  ;;  %s577_s9 = scalar_lea.vmem %s1394_s20, %s1136_s24 }
  0x59   : > { %549 = vst.msk [vmem:[#allocation2 + $0x35] sm:$0x1] %vm283_vm1, %v548_v4  ;;  %v553_v5 = vld [vmem:[%s552_s22] sm:$0x1]  ;;  %1193 = vmatpush3.bf16.msra.mxu0 %v1431_v11  ;;  %v605_v6 = vld [vmem:[#allocation2 + $0x28] sm:$0xff]  ;;  %s582_s8 = scalar_lea.vmem %s1394_s20, %s1642_s30  ;;  %s587_s17 = scalar_lea.vmem %s1394_s20, %s1644_s25 }
  0x5a   : > { %554 = vst.msk [vmem:[#allocation2 + $0x36] sm:$0x1] %vm283_vm1, %v553_v5  ;;  %1194 = vmatprep.subr.bf16.mxu0 %v1451_v15  ;;  %v558_v7 = vld [vmem:[%s557_s23] sm:$0x1]  ;;  %v610_v8 = vpack.c.bf16 %v605_v6, %v604_v3  ;;  %s592_s16 = scalar_lea.vmem %s1394_s20, %s1650_s7  ;;  %s1706_s7 = scalar_lea.vmem %s1739_s6, %s1157_s14 }
  0x5b   : > { %559 = vst.msk [vmem:[#allocation2 + $0x37] sm:$0x1] %vm283_vm1, %v558_v7  ;;  %v563_v9 = vld [vmem:[%s562_s29] sm:$0x1]  ;;  %s597_s11 = scalar_lea.vmem %s1394_s20, %s1140_s12 }
  0x5c   : > { %564 = vst.msk [vmem:[#allocation2 + $0x38] sm:$0x1] %vm283_vm1, %v563_v9  ;;  %v568_v10 = vld [vmem:[%s567_s13] sm:$0x1]  ;;  %1182 = vmatprep.mubr.msk.bf16.mxu0 %vm620_vm2, %v610_v8 }
  0x5d   : > { %1195 = vmatpush3.bf16.msra.mxu0 %v1451_v15  ;;  %569 = vst.msk [vmem:[#allocation2 + $0x39] sm:$0x1] %vm283_vm1, %v568_v10  ;;  %v573_v11 = vld [vmem:[%s572_s10] sm:$0x1] }
  0x5e   : > { %1196 = vmatprep.subr.bf16.mxu0 %v1485_v22  ;;  %574 = vst.msk [vmem:[#allocation2 + $0x3a] sm:$0x1] %vm283_vm1, %v573_v11  ;;  %v578_v12 = vld [vmem:[%s577_s9] sm:$0x1] }
  0x5f   : > { %579 = vst.msk [vmem:[#allocation2 + $0x3b] sm:$0x1] %vm283_vm1, %v578_v12  ;;  %v583_v13 = vld [vmem:[%s582_s8] sm:$0x1] }
  0x60   : > { %v588_v14 = vld [vmem:[%s587_s17] sm:$0x1]  ;;  %584 = vst.msk [vmem:[#allocation2 + $0x3c] sm:$0x1] %vm283_vm1, %v583_v13 }
  0x61   : > { %589 = vst.msk [vmem:[#allocation2 + $0x3d] sm:$0x1] %vm283_vm1, %v588_v14  ;;  %v593_v15 = vld [vmem:[%s592_s16] sm:$0x1]  ;;  %1197 = vmatpush3.bf16.msra.mxu0 %v1485_v22 }
  0x62   : > { %594 = vst.msk [vmem:[#allocation2 + $0x3e] sm:$0x1] %vm283_vm1, %v593_v15  ;;  %v598_v16 = vld [vmem:[%s597_s11] sm:$0x1]  ;;  %v606_v17 = vld [vmem:[#allocation2 + $0x30] sm:$0xff]  ;;  %1198 = vmatprep.subr.bf16.mxu0 %v1258_v20 }
  0x63   : > { %599 = vst.msk [vmem:[#allocation2 + $0x3f] sm:$0x1] %vm283_vm1, %v598_v16  ;;  %v1141_v22 = vld [vmem:[%s1736_s3] ss:$0 sm:$0xff] }
  0x64   : > { %v1146_v51 = vld [vmem:[%s1738_s5] ss:$0 sm:$0xff] }
  0x65   : > { %1199 = vmatpush3.bf16.msra.mxu0 %v1258_v20 }
  0x66   : > { %1200 = vmatprep.subr.bf16.mxu0 %v1259_v21 }
  0x69   : > { %1201 = vmatpush3.bf16.msra.mxu0 %v1259_v21 }
  0x6a   : > { %v607_v18 = vld [vmem:[#allocation2 + $0x38] sm:$0xff] }
  0x6b   : > { %v611_v19 = vpack.c.bf16 %v607_v18, %v606_v17 }
  0x6d   : > { %1183 = vmatmul.mubr.msk.bf16.gmra.mrb[4].mxu0 %vm620_vm2, %v611_v19 }
 0x11f   : > { %v1180_v23 = vpop.f32.mrb[0].mxu0 }
 0x120   : > { %v680_v24 = vadd.f32 %v1180_v23, %v1141_v22  ;;  %v671_v25 = vpop.f32.mrb[1].mxu0 }
 0x121   : > { %v672_v26 = vadd.f32 %v1141_v22, %v671_v25  ;;  %v1181_v27 = vpop.f32.mrb[2].mxu0 }
 0x122   : > { %v683_v28 = vadd.f32 %v1181_v27, %v1141_v22  ;;  %v674_v29 = vpop.f32.mrb[3].mxu0  ;;  %v704_v31 = vmax.f32 %v680_v24, 0.0 }
 0x123   : > { %v675_v30 = vadd.f32 %v1141_v22, %v674_v29  ;;  %v702_v33 = vmax.f32 %v672_v26, 0.0 }
 0x124   : > { %v705_v32 = vmax.f32 %v683_v28, 0.0 }
 0x125   : > { %v703_v34 = vmax.f32 %v675_v30, 0.0 }
 0x126   : > { %v711_v35 = vpack.c.bf16 %v705_v32, %v704_v31 }
 0x127   : > { %v710_v36 = vpack.c.bf16 %v703_v34, %v702_v33 }
 0x129   : > { %1202 = vmatprep.mubr.bf16.mxu0 %v710_v36 }
 0x12a   : > { %1203 = vmatmul.mubr.bf16.vlgmr.msra.gmra.mrb[8].mxu0 %v711_v35 }
 0x140   : > { %v1184_v37 = vpop.f32.mrb[4].mxu0 }
 0x141   : > { %v696_v38 = vadd.f32 %v1184_v37, %v1141_v22  ;;  %v687_v39 = vpop.f32.mrb[5].mxu0 }
 0x142   : > { %v688_v40 = vadd.f32 %v1141_v22, %v687_v39  ;;  %v1185_v41 = vpop.f32.mrb[6].mxu0 }
 0x143   : > { %v699_v42 = vadd.f32 %v1185_v41, %v1141_v22  ;;  %v690_v43 = vpop.f32.mrb[7].mxu0  ;;  %v708_v45 = vmax.f32 %v696_v38, 0.0 }
 0x144   : > { %v691_v44 = vadd.f32 %v1141_v22, %v690_v43  ;;  %v706_v47 = vmax.f32 %v688_v40, 0.0 }
 0x145   : > { %v709_v46 = vmax.f32 %v699_v42, 0.0 }
 0x146   : > { %v707_v48 = vmax.f32 %v691_v44, 0.0 }
 0x147   : > { %v713_v49 = vpack.c.bf16 %v709_v46, %v708_v45 }
 0x148   : > { %v712_v50 = vpack.c.bf16 %v707_v48, %v706_v47 }
 0x14a   : > { %1206 = vmatprep.mubr.bf16.mxu1 %v712_v50 }
 0x14b   : > { %1207 = vmatmul.mubr.bf16.vlgmr.msra.gmra.mrb[0].mxu1 %v713_v49 }
 0x1fd   : > { %v1204_v52 = vpop.f32.mrb[8].mxu0 }
 0x1fe   : > { %v828_v53 = vadd.f32 %v1204_v52, %v1146_v51  ;;  %v819_v54 = vpop.f32.mrb[9].mxu0 }
 0x1ff   : > { %v820_v55 = vadd.f32 %v1146_v51, %v819_v54  ;;  %v1205_v56 = vpop.f32.mrb[10].mxu0 }
 0x200   : > { %v831_v57 = vadd.f32 %v1205_v56, %v1146_v51  ;;  %v822_v58 = vpop.f32.mrb[11].mxu0  ;;  %v852_v59 = vmul.f32 %v828_v53, %v828_v53 }
 0x201   : > { %v823_v60 = vadd.f32 %v1146_v51, %v822_v58  ;;  %v850_v61 = vmul.f32 %v820_v55, %v820_v55 }
 0x202   : > { %v865_v62 = vsel %vm858_vm3, %v852_v59, 0.0  ;;  %v853_v63 = vmul.f32 %v831_v57, %v831_v57 }
 0x203   : > { %866 = vadd.xlane.f32.xlu1 %v865_v62  ;;  %v859_v0 = vsel %vm858_vm3, %v850_v61, 0.0  ;;  %v851_v1 = vmul.f32 %v823_v60, %v823_v60 }
 0x204   : > { %860 = vadd.xlane.f32.xlu0 %v859_v0  ;;  %v868_v2 = vsel %vm858_vm3, %v853_v63, 0.0 }
 0x205   : > { %v862_v3 = vsel %vm858_vm3, %v851_v1, 0.0 }
 0x207   : > { %869 = vadd.xlane.f32.xlu1 %v868_v2 }
 0x208   : > { %863 = vadd.xlane.f32.xlu0 %v862_v3 }
 0x21e   : > { %v1208_v4 = vpop.f32.mrb[0].mxu1 }
 0x21f   : > { %v835_v5 = vpop.f32.mrb[1].mxu1  ;;  %v844_v6 = vadd.f32 %v1208_v4, %v1146_v51 }
 0x220   : > { %v836_v7 = vadd.f32 %v1146_v51, %v835_v5  ;;  %v1209_v8 = vpop.f32.mrb[2].mxu1 }
 0x221   : > { %v838_v9 = vpop.f32.mrb[3].mxu1  ;;  %v847_v10 = vadd.f32 %v1209_v8, %v1146_v51  ;;  %v856_v15 = vmul.f32 %v844_v6, %v844_v6 }
 0x222   : > { %v839_v11 = vadd.f32 %v1146_v51, %v838_v9  ;;  %v854_v12 = vmul.f32 %v836_v7, %v836_v7 }
 0x223   : > { %v857_v17 = vmul.f32 %v847_v10, %v847_v10  ;;  %v877_v18 = vsel %vm858_vm3, %v856_v15, 0.0 }
 0x224   : > { %v871_v13 = vsel %vm858_vm3, %v854_v12, 0.0  ;;  %v855_v14 = vmul.f32 %v839_v11, %v839_v11 }
 0x225   : > { %872 = vadd.xlane.f32.xlu0 %v871_v13  ;;  %v880_v19 = vsel %vm858_vm3, %v857_v17, 0.0 }
 0x226   : > { %v874_v16 = vsel %vm858_vm3, %v855_v14, 0.0 }
 0x227   : > { %875 = vadd.xlane.f32.xlu1 %v874_v16 }
 0x229   : > { %878 = vadd.xlane.f32.xlu0 %v877_v18 }
 0x22b   : > { %881 = vadd.xlane.f32.xlu1 %v880_v19 }
 0x290   : > { %v867_v20 = vpop.xlane.xlu1 %866 }
 0x291   : > { %v885_v21 = vadd.f32 1e-12, %v867_v20  ;;  %v861_v22 = vpop.xlane.xlu0 %860 }
 0x292   : > { %v883_v23 = vadd.f32 1e-12, %v861_v22 }
 0x293   : > { %1260 = vrsqrt.f32 %v885_v21 }
 0x294   : > { %1262 = vrsqrt.f32 %v883_v23  ;;  %v870_v24 = vpop.xlane.xlu1 %869 }
 0x295   : > { %v886_v25 = vadd.f32 1e-12, %v870_v24  ;;  %v864_v26 = vpop.xlane.xlu0 %863 }
 0x296   : > { %v884_v27 = vadd.f32 1e-12, %v864_v26 }
 0x297   : > { %1264 = vrsqrt.f32 %v886_v25 }
 0x298   : > { %1266 = vrsqrt.f32 %v884_v27 }
 0x29d   : > { %v1261_v28 = vpop.eup %1260 }
 0x29e   : > { %v1263_v29 = vpop.eup %1262  ;;  %v901_v30 = vmul.f32 %v1261_v28, %v828_v53 }
 0x29f   : > { %v899_v31 = vmul.f32 %v1263_v29, %v820_v55 }
 0x2a0   : > { %909 = vst.msk [vmem:[%s1706_s7 + $0x10] sm:$0xff] %vm858_vm3, %v901_v30 }
 0x2a1   : > { %v1265_v32 = vpop.eup %1264  ;;  %907 = vst.msk [vmem:[%s1706_s7] sm:$0xff] %vm858_vm3, %v899_v31 }
 0x2a2   : > { %v1267_v33 = vpop.eup %1266  ;;  %v902_v34 = vmul.f32 %v1265_v32, %v831_v57 }
 0x2a3   : > { %v900_v35 = vmul.f32 %v1267_v33, %v823_v60 }
 0x2a4   : > { %910 = vst.msk [vmem:[%s1706_s7 + $0x18] sm:$0xff] %vm858_vm3, %v902_v34 }
 0x2a5   : > { %908 = vst.msk [vmem:[%s1706_s7 + $0x8] sm:$0xff] %vm858_vm3, %v900_v35 }
 0x2b2   : > { %v873_v36 = vpop.xlane.xlu0 %872 }
 0x2b3   : > { %v887_v37 = vadd.f32 1e-12, %v873_v36 }
 0x2b4   : > { %v876_v38 = vpop.xlane.xlu1 %875 }
 0x2b5   : > { %1268 = vrsqrt.f32 %v887_v37  ;;  %v888_v39 = vadd.f32 1e-12, %v876_v38 }
 0x2b6   : > { %v879_v40 = vpop.xlane.xlu0 %878 }
 0x2b7   : > { %1270 = vrsqrt.f32 %v888_v39  ;;  %v889_v41 = vadd.f32 1e-12, %v879_v40 }
 0x2b8   : > { %v882_v42 = vpop.xlane.xlu1 %881 }
 0x2b9   : > { %1272 = vrsqrt.f32 %v889_v41  ;;  %v890_v43 = vadd.f32 1e-12, %v882_v42 }
 0x2bb   : > { %1274 = vrsqrt.f32 %v890_v43 }
 0x2bf   : > { %v1269_v44 = vpop.eup %1268 }
 0x2c0   : > { %v903_v45 = vmul.f32 %v1269_v44, %v836_v7 }
 0x2c1   : > { %v1271_v46 = vpop.eup %1270 }
 0x2c2   : > { %911 = vst.msk [vmem:[%s1706_s7 + $0x20] sm:$0xff] %vm858_vm3, %v903_v45  ;;  %v904_v47 = vmul.f32 %v1271_v46, %v839_v11 }
 0x2c3   : > { %v1273_v48 = vpop.eup %1272 }
 0x2c4   : > { %912 = vst.msk [vmem:[%s1706_s7 + $0x28] sm:$0xff] %vm858_vm3, %v904_v47  ;;  %v905_v49 = vmul.f32 %v1273_v48, %v844_v6 }
 0x2c5   : > { %v1275_v50 = vpop.eup %1274 }
 0x2c6   : > { %913 = vst.msk [vmem:[%s1706_s7 + $0x30] sm:$0xff] %vm858_vm3, %v905_v49  ;;  %v906_v51 = vmul.f32 %v1275_v50, %v847_v10 }
 0x2c8   : > { %914 = vst.msk [vmem:[%s1706_s7 + $0x38] sm:$0xff] %vm858_vm3, %v906_v51 }
 0x2c9 PF: > { %s22_s28 = sadd.s32 1, %s1312_s28   ;;  %s1740_s26 = smov %s1308_s27 }
 0x2ca   : > { %p19_p10 = scmp.ge.s32.totalorder %s22_s28, 4   ;;  %s1741_s27 = smov %s1743_s0 }
 0x2cc   :  { %21 = sbr.rel (!%p19_p10) target bundleno = 17 (0x11), region = 134 }

</bundles_post_ra>
